<compile_context>
chip_gen: v6e
topology: v6e:2x2x1
jax: 0.10.0
libtpu: 0.0.40
codegen_flags: <defaults>
</compile_context>

<pallas_src>
import functools

import jax
import jax.numpy as jnp
from jax import lax
from jax.experimental import pallas as pl
from jax.experimental.pallas import tpu as pltpu


def bottleneck_kernel(x_hbm, w1_ref, sb1_ref, w2_ref, sb2_ref, w3_ref, sb3_ref,
                      o_ref, xbuf, pad_scr, sem, *, hp2):
    # x_hbm   : (N*(H+2), W, Cp)  bf16  HBM, spatially pre-padded (1 zero row top+bottom)
    # w1_ref  : (Cp, Cm)          bf16  1x1 conv1
    # sb1_ref : (2, Cm)           f32   folded BN1 [scale; bias]
    # w2_ref  : (3, 3*Cm, Cm)     bf16  3x3 conv2, per-ky with kx folded into K
    # sb2_ref : (2, Cm)           f32   folded BN2
    # w3_ref  : (Cm, Cp)          bf16  1x1 conv3
    # sb3_ref : (2, Cp)           f32   folded BN3
    # o_ref   : (1, TH, W, Cp)    bf16  output strip
    # xbuf    : (2, TH+2, W, Cp)  bf16  double-buffered input strip (+1-row halo)
    # pad_scr : (TH+2, W+2, Cm)   bf16  column-padded conv2 input
    # sem     : DMA semaphores (2,)
    # hp2     : H + 2 (static) — padded rows per image in x_hbm
    TH = xbuf.shape[1] - 2
    W = xbuf.shape[2]
    Cp = xbuf.shape[3]
    Cm = pad_scr.shape[2]

    b = pl.program_id(0)
    s = pl.program_id(1)
    ns = pl.num_programs(1)
    slot = s % 2

    def strip_copy(strip, buf_slot):
        row0 = b * hp2 + strip * TH
        return pltpu.make_async_copy(
            x_hbm.at[pl.ds(row0, TH + 2)], xbuf.at[buf_slot], sem.at[buf_slot])

    # First strip of this image: nothing was prefetched for it -> issue its own copy.
    @pl.when(s == 0)
    def _():
        strip_copy(0, 0).start()

    strip_copy(s, slot).wait()

    # Prefetch the next strip of the same image while we compute the current one.
    @pl.when(s + 1 < ns)
    def _():
        strip_copy(s + 1, 1 - slot).start()

    xv = xbuf[slot]                                     # (TH+2, W, Cp) bf16
    x2d = xv.reshape((TH + 2) * W, Cp)

    # ---- conv1 (1x1) + bn1 + relu over the strip INCLUDING its halo rows ----
    acc1 = jnp.dot(x2d, w1_ref[...], preferred_element_type=jnp.float32)
    out1 = jnp.maximum(acc1 * sb1_ref[0:1, :] + sb1_ref[1:2, :], 0.0)

    # Halo rows that lie outside the image must be zero for conv2's padding
    # (the pre-padded x rows are zero, but bn1(relu(conv1(0))) = relu(bias1) != 0).
    ridx = lax.broadcasted_iota(jnp.int32, ((TH + 2) * W, 1), 0)
    kill = jnp.logical_or(
        jnp.logical_and(ridx < W, s == 0),
        jnp.logical_and(ridx >= (TH + 1) * W, s == ns - 1))
    out1 = jnp.where(kill, 0.0, out1).astype(jnp.bfloat16)

    # ---- stage conv2 input in a bf16 scratch; only left/right columns need zeros ----
    pad_scr[:, 0:1, :] = jnp.zeros((TH + 2, 1, Cm), pad_scr.dtype)
    pad_scr[:, W + 1:W + 2, :] = jnp.zeros((TH + 2, 1, Cm), pad_scr.dtype)
    pad_scr[:, 1:W + 1, :] = out1.reshape(TH + 2, W, Cm)

    # ---- conv2 (3x3, stride 1): 3 matmuls with K = 3*Cm, live f32 accumulator ----
    acc2 = None
    for ky in range(3):
        rows = pad_scr[ky:ky + TH]                      # (TH, W+2, Cm) bf16
        patch = jnp.concatenate(
            [rows[:, kx:kx + W, :].reshape(TH * W, Cm) for kx in range(3)],
            axis=1)                                     # (TH*W, 3*Cm) bf16
        tap = jnp.dot(patch, w2_ref[ky], preferred_element_type=jnp.float32)
        acc2 = tap if acc2 is None else acc2 + tap

    # ---- bn2 + relu ----
    out2 = jnp.maximum(acc2 * sb2_ref[0:1, :] + sb2_ref[1:2, :],
                       0.0).astype(jnp.bfloat16)

    # ---- conv3 (1x1) + bn3 + identity residual + relu ----
    # TODO(synk): residual uses the bf16-rounded input (systematic but tiny precision
    #             loss on the skip connection vs. an f32 copy of x).
    acc3 = jnp.dot(out2, w3_ref[...], preferred_element_type=jnp.float32)
    res = xv[1:TH + 1].reshape(TH * W, Cp).astype(jnp.float32)
    out3 = jnp.maximum(acc3 * sb3_ref[0:1, :] + sb3_ref[1:2, :] + res, 0.0)
    o_ref[0] = out3.reshape(TH, W, Cp).astype(o_ref.dtype)


def _round_up(n, m):
    return (n + m - 1) // m * m


def _vmem_limit_bytes():
    cap = 128 * 1024 * 1024
    try:
        info = pltpu.get_tpu_info()
        cap = getattr(info, "vmem_capacity_bytes", cap) or cap
    except Exception:
        pass
    # ~3/4 of physical VMEM, capped: ~96 MiB on v5e/v6e, ~48 MiB on v7x.
    return int(min(cap * 3 // 4, 100 * 1024 * 1024))


def _pick_strip_rows(H, W, Cp, Cm, vmem_limit, max_strip_rows=None):
    """Largest divisor of H whose per-strip VMEM footprint fits the budget."""
    cap_rows = H if max_strip_rows is None else max(1, min(H, max_strip_rows))
    const_bytes = 2 * 2 * (Cp * Cm + 9 * Cm * Cm + Cm * Cp)   # double-buffered bf16 weights
    budget = max(vmem_limit // 2 - const_bytes, 1)
    chosen = 1
    for th in range(1, cap_rows + 1):
        if H % th:
            continue
        est = (2 * (th + 2) * W * Cp * 2      # x strip, 2 slots, bf16
               + 2 * th * W * Cp * 2          # output block, double-buffered, bf16
               + (th + 2) * (W + 2) * Cm * 2  # padded conv2 input scratch, bf16
               + (th + 2) * W * Cm * 4        # out1 live value, f32
               + th * W * 3 * Cm * 2          # widened conv2 patch, bf16
               + th * W * Cm * 4              # conv2 accumulator, f32
               + 2 * th * W * Cp * 4)         # conv3 acc + residual, f32
        if est <= budget:
            chosen = th
    return chosen


def _bottleneck_padded(xp_flat, w1_p, sb1, w2_r, sb2, w3_p, sb3, *, N, H, W, th,
                       vmem_limit):
    """xp_flat: (N*(H+2), W, Cp) bf16, spatially pre-padded, channel-padded."""
    Cp = xp_flat.shape[-1]
    Cm = w1_p.shape[1]
    n_strips = H // th

    const = lambda shape: pl.BlockSpec(shape, lambda b, s: (0,) * len(shape))

    return pl.pallas_call(
        functools.partial(bottleneck_kernel, hp2=H + 2),
        out_shape=jax.ShapeDtypeStruct((N, H, W, Cp), jnp.bfloat16),
        grid_spec=pltpu.PrefetchScalarGridSpec(
            num_scalar_prefetch=0,
            grid=(N, n_strips),
            in_specs=[
                pl.BlockSpec(memory_space=pl.ANY),       # x: strips DMA'd manually
                const((Cp, Cm)),                         # w1
                const((2, Cm)),                          # bn1 scale/bias
                const((3, 3 * Cm, Cm)),                  # w2 (per-ky, K = 3*Cm)
                const((2, Cm)),                          # bn2 scale/bias
                const((Cm, Cp)),                         # w3
                const((2, Cp)),                          # bn3 scale/bias
            ],
            out_specs=pl.BlockSpec((1, th, W, Cp), lambda b, s: (b, s, 0, 0)),
            scratch_shapes=[
                pltpu.VMEM((2, th + 2, W, Cp), jnp.bfloat16),   # double-buffered strip
                pltpu.VMEM((th + 2, W + 2, Cm), jnp.bfloat16),  # padded conv2 input
                pltpu.SemaphoreType.DMA((2,)),
            ],
        ),
        compiler_params=pltpu.CompilerParams(
            # Strip axis must stay "arbitrary": the manual x prefetch chains strips of
            # one image across grid steps.
            # TODO(synk): on v7x with N=1, switch to self-contained per-strip copies so
            #             the strip axis can also be "parallel" across TensorCores.
            dimension_semantics=("parallel", "arbitrary"),
            vmem_limit_bytes=vmem_limit),
    )(xp_flat, w1_p, sb1, w2_r, sb2, w3_p, sb3)


def bottleneck_forward(x_nchw,
                       w1, g1, be1, m1, v1,
                       w2, g2, be2, m2, v2,
                       w3, g3, be3, m3, v3,
                       eps=1e-5, max_strip_rows=None):
    """x_nchw: (N, Cin, H, W) float32; conv weights in PyTorch OIHW layout."""
    N, Cin, H, W = x_nchw.shape
    Cmid = w1.shape[0]          # planes
    Cout = w3.shape[0]          # planes * expansion
    assert Cout == Cin, "identity residual requires inplanes == planes * expansion"
    assert W % 8 == 0, "W must be a multiple of 8 for aligned flattened reshapes"

    LANE = 128
    Cp = _round_up(Cin, LANE)   # padded in/out channels
    Cm = _round_up(Cmid, LANE)  # padded mid channels

    vmem_limit = _vmem_limit_bytes()
    th = _pick_strip_rows(H, W, Cp, Cm, vmem_limit, max_strip_rows)

    # NCHW -> NHWC, +1 zero halo row top/bottom, channel-pad to lane width, bf16, and
    # flatten (N, H+2) so strip DMAs are single leading-axis slices.
    # (In a multi-block network keep activations in this padded NHWC/bf16 form and call
    #  _bottleneck_padded directly — this conversion is once per network, not per block.)
    x_nhwc = jnp.transpose(x_nchw, (0, 2, 3, 1))
    xp = jnp.pad(x_nhwc, ((0, 0), (1, 1), (0, 0), (0, Cp - Cin))).astype(jnp.bfloat16)
    xp_flat = xp.reshape(N * (H + 2), W, Cp)

    # Conv weights -> matmul layouts, zero-padded, bf16.
    w1_p = jnp.pad(jnp.transpose(w1[:, :, 0, 0], (1, 0)),
                   ((0, Cp - Cin), (0, Cm - Cmid))).astype(jnp.bfloat16)
    w2_r = jnp.pad(jnp.transpose(w2, (2, 3, 1, 0)),          # (KH, KW, Cin, Cout)
                   ((0, 0), (0, 0), (0, Cm - Cmid), (0, Cm - Cmid)))
    w2_r = w2_r.reshape(3, 3 * Cm, Cm).astype(jnp.bfloat16)  # rows: (kx, cin) per ky
    w3_p = jnp.pad(jnp.transpose(w3[:, :, 0, 0], (1, 0)),
                   ((0, Cm - Cmid), (0, Cp - Cout))).astype(jnp.bfloat16)

    # Fold inference-mode BN into per-channel scale/bias, packed as (2, C) f32.
    def fold_bn(g, be, m, v, cpad):
        inv = g / jnp.sqrt(v + eps)
        s = jnp.pad(inv, (0, cpad - inv.shape[0]))
        b = jnp.pad(be - m * inv, (0, cpad - be.shape[0]))
        return jnp.stack([s, b]).astype(jnp.float32)

    sb1 = fold_bn(g1, be1, m1, v1, Cm)
    sb2 = fold_bn(g2, be2, m2, v2, Cm)
    sb3 = fold_bn(g3, be3, m3, v3, Cp)

    out = _bottleneck_padded(xp_flat, w1_p, sb1, w2_r, sb2, w3_p, sb3,
                             N=N, H=H, W=W, th=th, vmem_limit=vmem_limit)

    # Strip channel padding and return to PyTorch's NCHW/f32 layout.
    out = out[:, :, :, :Cout].astype(jnp.float32)
    return jnp.transpose(out, (0, 3, 1, 2))


def reference_forward(x, w1, g1, be1, m1, v1, w2, g2, be2, m2, v2,
                      w3, g3, be3, m3, v3, eps=1e-5):
    """Pure-JAX NCHW reference (mirrors the PyTorch Bottleneck, eval-mode BN)."""
    def conv(x, w, pad):
        return lax.conv_general_dilated(
            x, w, window_strides=(1, 1), padding=((pad, pad), (pad, pad)),
            dimension_numbers=("NCHW", "OIHW", "NCHW"))

    def bn(x, g, be, m, v):
        inv = g / jnp.sqrt(v + eps)
        return x * inv.reshape(1, -1, 1, 1) + (be - m * inv).reshape(1, -1, 1, 1)

    out = jnp.maximum(bn(conv(x, w1, 0), g1, be1, m1, v1), 0.0)
    out = jnp.maximum(bn(conv(out, w2, 1), g2, be2, m2, v2), 0.0)
    out = bn(conv(out, w3, 0), g3, be3, m3, v3)
    return jnp.maximum(out + x, 0.0)


if __name__ == "__main__":
    N, planes, H, W = 2, 4, 16, 16
    inplanes = planes * 4            # identity residual (stride=1, downsample=None)

    key = jax.random.PRNGKey(0)
    ks = jax.random.split(key, 7)

    x = jax.random.normal(ks[0], (N, inplanes, H, W), jnp.float32)

    w1 = jax.random.normal(ks[1], (planes, inplanes, 1, 1), jnp.float32) * 0.1
    w2 = jax.random.normal(ks[2], (planes, planes, 3, 3), jnp.float32) * 0.1
    w3 = jax.random.normal(ks[3], (inplanes, planes, 1, 1), jnp.float32) * 0.1

    def bn_params(k, c):
        k1, k2, k3, k4 = jax.random.split(k, 4)
        g = jax.random.uniform(k1, (c,), jnp.float32, 0.5, 1.5)
        be = jax.random.normal(k2, (c,), jnp.float32) * 0.1
        m = jax.random.normal(k3, (c,), jnp.float32) * 0.1
        v = jax.random.uniform(k4, (c,), jnp.float32, 0.5, 1.5)
        return g, be, m, v

    g1, be1, m1, v1 = bn_params(ks[4], planes)
    g2, be2, m2, v2 = bn_params(ks[5], planes)
    g3, be3, m3, v3 = bn_params(ks[6], inplanes)

    # max_strip_rows=8 forces 2 row strips per image so the halo / prefetch path is
    # exercised even at this tiny 16x16 test size (real sizes derive TH from VMEM).
    out = bottleneck_forward(x, w1, g1, be1, m1, v1,
                             w2, g2, be2, m2, v2,
                             w3, g3, be3, m3, v3,
                             max_strip_rows=8)
    out = jax.block_until_ready(out)

    ref = reference_forward(x, w1, g1, be1, m1, v1,
                            w2, g2, be2, m2, v2,
                            w3, g3, be3, m3, v3)

    assert out.shape == (N, inplanes, H, W)
    max_err = jnp.max(jnp.abs(out - ref))
    # bf16 MXU operands + bf16 output -> compare to the f32 reference with bf16-level
    # tolerance.
    assert jnp.allclose(out, ref, atol=5e-2, rtol=5e-2), f"max abs err = {max_err}"

    print("KERNEL_OK")
</pallas_src>

<mosaic_0001>
module attributes {stable_mosaic.version = 11 : i64} {
  func.func @bottleneck_kernel(%arg0: i32, %arg1: i32, %arg2: memref<36x16x128xbf16, #tpu.memory_space<any>>, %arg3: memref<128x128xbf16, #tpu.memory_space<vmem>>, %arg4: memref<2x128xf32, #tpu.memory_space<vmem>>, %arg5: memref<3x384x128xbf16, #tpu.memory_space<vmem>>, %arg6: memref<2x128xf32, #tpu.memory_space<vmem>>, %arg7: memref<128x128xbf16, #tpu.memory_space<vmem>>, %arg8: memref<2x128xf32, #tpu.memory_space<vmem>>, %arg9: memref<1x8x16x128xbf16, #tpu.memory_space<vmem>>, %arg10: memref<2x10x16x128xbf16, #tpu.memory_space<vmem>>, %arg11: memref<10x18x128xbf16, #tpu.memory_space<vmem>>, %arg12: memref<2x!tpu.dma_semaphore, #tpu.memory_space<semaphore_mem>>) attributes {dimension_semantics = [#tpu.dimension_semantics<parallel>, #tpu.dimension_semantics<arbitrary>], iteration_bounds = array<i64: 2, 2>, scalar_prefetch = 0 : i64, scratch_operands = 3 : i64, tpu.core_type = #tpu.core_type<tc>, window_params = [{}, {pipeline_mode = #tpu.pipeline_mode<synchronous>, transform_indices = @transform_1, window_bounds = array<i64: 128, 128>}, {pipeline_mode = #tpu.pipeline_mode<synchronous>, transform_indices = @transform_2, window_bounds = array<i64: 2, 128>}, {pipeline_mode = #tpu.pipeline_mode<synchronous>, transform_indices = @transform_3, window_bounds = array<i64: 3, 384, 128>}, {pipeline_mode = #tpu.pipeline_mode<synchronous>, transform_indices = @transform_4, window_bounds = array<i64: 2, 128>}, {pipeline_mode = #tpu.pipeline_mode<synchronous>, transform_indices = @transform_5, window_bounds = array<i64: 128, 128>}, {pipeline_mode = #tpu.pipeline_mode<synchronous>, transform_indices = @transform_6, window_bounds = array<i64: 2, 128>}, {transform_indices = @transform_7, window_bounds = array<i64: 1, 8, 16, 128>}]} {
    %c2_i32 = arith.constant 2 : i32
    %c0_i32 = arith.constant 0 : i32
    %0 = arith.cmpi eq, %c2_i32, %c0_i32 : i32
    %c1_i32 = arith.constant 1 : i32
    %1 = arith.select %0, %c1_i32, %c2_i32 : i32
    %2 = arith.remsi %arg1, %1 : i32
    %c0_i32_0 = arith.constant 0 : i32
    %3 = arith.cmpi ne, %2, %c0_i32_0 : i32
    %c0_i32_1 = arith.constant 0 : i32
    %4 = arith.cmpi slt, %2, %c0_i32_1 : i32
    %c0_i32_2 = arith.constant 0 : i32
    %5 = arith.cmpi slt, %1, %c0_i32_2 : i32
    %6 = arith.xori %4, %5 : i1
    %7 = arith.andi %6, %3 : i1
    %8 = arith.addi %2, %1 : i32
    %9 = arith.select %7, %8, %2 : i32
    %c0_i32_3 = arith.constant 0 : i32
    %10 = arith.cmpi eq, %arg1, %c0_i32_3 : i32
    %11 = arith.extui %10 : i1 to i32
    %c0_i32_4 = arith.constant 0 : i32
    %12 = arith.cmpi ne, %11, %c0_i32_4 : i32
    scf.if %12 {
      %c18_i32_71 = arith.constant 18 : i32
      %125 = arith.muli %arg0, %c18_i32_71 : i32
      %c0_i32_72 = arith.constant 0 : i32
      %126 = arith.addi %125, %c0_i32_72 : i32
      %c0_i32_73 = arith.constant 0 : i32
      %c0_i32_74 = arith.constant 0 : i32
      %c0_i32_75 = arith.constant 0 : i32
      %c0_i32_76 = arith.constant 0 : i32
      %127 = tpu.memref_slice %arg2[%126, %c0_i32_75, %c0_i32_76] : memref<36x16x128xbf16, #tpu.memory_space<any>> -> memref<10x16x128xbf16, #tpu.memory_space<any>>
      %c0_i32_77 = arith.constant 0 : i32
      %c0_i32_78 = arith.constant 0 : i32
      %c0_i32_79 = arith.constant 0 : i32
      %128 = tpu.memref_slice %arg10[%c0_i32_73, %c0_i32_77, %c0_i32_78, %c0_i32_79] : memref<2x10x16x128xbf16, #tpu.memory_space<vmem>> -> memref<1x10x16x128xbf16, #tpu.memory_space<vmem>>
      %129 = tpu.memref_squeeze %128 : memref<1x10x16x128xbf16, #tpu.memory_space<vmem>> -> memref<10x16x128xbf16, #tpu.memory_space<vmem>>
      %130 = tpu.memref_slice %arg12[%c0_i32_74] : memref<2x!tpu.dma_semaphore, #tpu.memory_space<semaphore_mem>> -> memref<1x!tpu.dma_semaphore, #tpu.memory_space<semaphore_mem>>
      %131 = tpu.memref_squeeze %130 : memref<1x!tpu.dma_semaphore, #tpu.memory_space<semaphore_mem>> -> memref<!tpu.dma_semaphore, #tpu.memory_space<semaphore_mem>>
      tpu.enqueue_dma source(%127 : memref<10x16x128xbf16, #tpu.memory_space<any>>) target(%129 : memref<10x16x128xbf16, #tpu.memory_space<vmem>>) target_semaphore(%131 : memref<!tpu.dma_semaphore, #tpu.memory_space<semaphore_mem>>)
    } else {
    }
    %c18_i32 = arith.constant 18 : i32
    %13 = arith.muli %arg0, %c18_i32 : i32
    %c8_i32 = arith.constant 8 : i32
    %14 = arith.muli %arg1, %c8_i32 : i32
    %15 = arith.addi %13, %14 : i32
    %c0_i32_5 = arith.constant 0 : i32
    %c0_i32_6 = arith.constant 0 : i32
    %16 = tpu.memref_slice %arg2[%15, %c0_i32_5, %c0_i32_6] : memref<36x16x128xbf16, #tpu.memory_space<any>> -> memref<10x16x128xbf16, #tpu.memory_space<any>>
    %c0_i32_7 = arith.constant 0 : i32
    %c0_i32_8 = arith.constant 0 : i32
    %c0_i32_9 = arith.constant 0 : i32
    %17 = tpu.memref_slice %arg10[%9, %c0_i32_7, %c0_i32_8, %c0_i32_9] : memref<2x10x16x128xbf16, #tpu.memory_space<vmem>> -> memref<1x10x16x128xbf16, #tpu.memory_space<vmem>>
    %18 = tpu.memref_squeeze %17 : memref<1x10x16x128xbf16, #tpu.memory_space<vmem>> -> memref<10x16x128xbf16, #tpu.memory_space<vmem>>
    %19 = tpu.memref_slice %arg12[%9] : memref<2x!tpu.dma_semaphore, #tpu.memory_space<semaphore_mem>> -> memref<1x!tpu.dma_semaphore, #tpu.memory_space<semaphore_mem>>
    %20 = tpu.memref_squeeze %19 : memref<1x!tpu.dma_semaphore, #tpu.memory_space<semaphore_mem>> -> memref<!tpu.dma_semaphore, #tpu.memory_space<semaphore_mem>>
    tpu.wait_dma2 semaphore(%20 : memref<!tpu.dma_semaphore, #tpu.memory_space<semaphore_mem>>) src(%16 : memref<10x16x128xbf16, #tpu.memory_space<any>>) dst(%18 : memref<10x16x128xbf16, #tpu.memory_space<vmem>>)
    %c1_i32_10 = arith.constant 1 : i32
    %21 = arith.addi %arg1, %c1_i32_10 : i32
    %c2_i32_11 = arith.constant 2 : i32
    %22 = arith.cmpi slt, %21, %c2_i32_11 : i32
    %23 = arith.extui %22 : i1 to i32
    %c0_i32_12 = arith.constant 0 : i32
    %24 = arith.cmpi ne, %23, %c0_i32_12 : i32
    scf.if %24 {
      %c1_i32_71 = arith.constant 1 : i32
      %125 = arith.addi %arg1, %c1_i32_71 : i32
      %c1_i32_72 = arith.constant 1 : i32
      %126 = arith.subi %c1_i32_72, %9 : i32
      %c18_i32_73 = arith.constant 18 : i32
      %127 = arith.muli %arg0, %c18_i32_73 : i32
      %c8_i32_74 = arith.constant 8 : i32
      %128 = arith.muli %125, %c8_i32_74 : i32
      %129 = arith.addi %127, %128 : i32
      %c0_i32_75 = arith.constant 0 : i32
      %c0_i32_76 = arith.constant 0 : i32
      %130 = tpu.memref_slice %arg2[%129, %c0_i32_75, %c0_i32_76] : memref<36x16x128xbf16, #tpu.memory_space<any>> -> memref<10x16x128xbf16, #tpu.memory_space<any>>
      %c0_i32_77 = arith.constant 0 : i32
      %c0_i32_78 = arith.constant 0 : i32
      %c0_i32_79 = arith.constant 0 : i32
      %131 = tpu.memref_slice %arg10[%126, %c0_i32_77, %c0_i32_78, %c0_i32_79] : memref<2x10x16x128xbf16, #tpu.memory_space<vmem>> -> memref<1x10x16x128xbf16, #tpu.memory_space<vmem>>
      %132 = tpu.memref_squeeze %131 : memref<1x10x16x128xbf16, #tpu.memory_space<vmem>> -> memref<10x16x128xbf16, #tpu.memory_space<vmem>>
      %133 = tpu.memref_slice %arg12[%126] : memref<2x!tpu.dma_semaphore, #tpu.memory_space<semaphore_mem>> -> memref<1x!tpu.dma_semaphore, #tpu.memory_space<semaphore_mem>>
      %134 = tpu.memref_squeeze %133 : memref<1x!tpu.dma_semaphore, #tpu.memory_space<semaphore_mem>> -> memref<!tpu.dma_semaphore, #tpu.memory_space<semaphore_mem>>
      tpu.enqueue_dma source(%130 : memref<10x16x128xbf16, #tpu.memory_space<any>>) target(%132 : memref<10x16x128xbf16, #tpu.memory_space<vmem>>) target_semaphore(%134 : memref<!tpu.dma_semaphore, #tpu.memory_space<semaphore_mem>>)
    } else {
    }
    %25 = arith.index_cast %9 : i32 to index
    %c0 = arith.constant 0 : index
    %c0_13 = arith.constant 0 : index
    %c0_14 = arith.constant 0 : index
    %26 = vector.load %arg10[%25, %c0, %c0_13, %c0_14] : memref<2x10x16x128xbf16, #tpu.memory_space<vmem>>, vector<1x10x16x128xbf16>
    %27 = vector.shape_cast %26 : vector<1x10x16x128xbf16> to vector<10x16x128xbf16>
    %28 = vector.shape_cast %27 : vector<10x16x128xbf16> to vector<160x128xbf16>
    %c0_15 = arith.constant 0 : index
    %c0_16 = arith.constant 0 : index
    %29 = vector.load %arg3[%c0_15, %c0_16] : memref<128x128xbf16, #tpu.memory_space<vmem>>, vector<128x128xbf16>
    %cst = arith.constant dense<0.000000e+00> : vector<160x128xf32>
    %30 = tpu.matmul %28, %29, %cst {dimension_numbers = #tpu.dot_dimension_numbers<[1], [0], [0], [1], [0, 0, 1, 1], [], []>} : vector<160x128xbf16>, vector<128x128xbf16>, vector<160x128xf32> -> vector<160x128xf32>
    %c0_17 = arith.constant 0 : index
    %c0_18 = arith.constant 0 : index
    %31 = vector.load %arg4[%c0_17, %c0_18] : memref<2x128xf32, #tpu.memory_space<vmem>>, vector<1x128xf32>
    %32 = vector.broadcast %31 : vector<1x128xf32> to vector<160x128xf32>
    %33 = arith.mulf %30, %32 : vector<160x128xf32>
    %c1 = arith.constant 1 : index
    %c0_19 = arith.constant 0 : index
    %34 = vector.load %arg4[%c1, %c0_19] : memref<2x128xf32, #tpu.memory_space<vmem>>, vector<1x128xf32>
    %35 = vector.broadcast %34 : vector<1x128xf32> to vector<160x128xf32>
    %36 = arith.addf %33, %35 : vector<160x128xf32>
    %cst_20 = arith.constant 0.000000e+00 : f32
    %37 = vector.broadcast %cst_20 : f32 to vector<160x128xf32>
    %38 = arith.maximumf %36, %37 : vector<160x128xf32>
    %39 = tpu.iota {dimensions = array<i32: 0>} : vector<160x1xi32>
    %c16_i32 = arith.constant 16 : i32
    %40 = vector.broadcast %c16_i32 : i32 to vector<160x1xi32>
    %41 = arith.cmpi slt, %39, %40 : vector<160x1xi32>
    %c0_i32_21 = arith.constant 0 : i32
    %42 = arith.cmpi eq, %arg1, %c0_i32_21 : i32
    %43 = vector.broadcast %42 : i1 to vector<160x1xi1>
    %44 = arith.andi %41, %43 : vector<160x1xi1>
    %c144_i32 = arith.constant 144 : i32
    %45 = vector.broadcast %c144_i32 : i32 to vector<160x1xi32>
    %46 = arith.cmpi sge, %39, %45 : vector<160x1xi32>
    %c1_i32_22 = arith.constant 1 : i32
    %47 = arith.cmpi eq, %arg1, %c1_i32_22 : i32
    %48 = vector.broadcast %47 : i1 to vector<160x1xi1>
    %49 = arith.andi %46, %48 : vector<160x1xi1>
    %50 = arith.ori %44, %49 : vector<160x1xi1>
    %cst_23 = arith.constant 0.000000e+00 : f32
    %51 = vector.shape_cast %50 : vector<160x1xi1> to vector<160x1xi1>
    %52 = vector.broadcast %51 : vector<160x1xi1> to vector<160x128xi1>
    %53 = vector.broadcast %cst_23 : f32 to vector<160x128xf32>
    %54 = arith.select %52, %53, %38 : vector<160x128xi1>, vector<160x128xf32>
    %55 = arith.truncf %54 : vector<160x128xf32> to vector<160x128xbf16>
    %cst_24 = arith.constant 0.000000e+00 : bf16
    %56 = vector.broadcast %cst_24 : bf16 to vector<10x1x128xbf16>
    %c0_25 = arith.constant 0 : index
    %c0_26 = arith.constant 0 : index
    %c0_27 = arith.constant 0 : index
    %57 = vector.load %arg11[%c0_25, %c0_26, %c0_27] : memref<10x18x128xbf16, #tpu.memory_space<vmem>>, vector<10x1x128xbf16>
    tpu.vector_store %arg11[%c0_25, %c0_26, %c0_27], %56 {strides = array<i32>} : memref<10x18x128xbf16, #tpu.memory_space<vmem>>, vector<10x1x128xbf16>,
    %cst_28 = arith.constant 0.000000e+00 : bf16
    %58 = vector.broadcast %cst_28 : bf16 to vector<10x1x128xbf16>
    %c0_29 = arith.constant 0 : index
    %c17 = arith.constant 17 : index
    %c0_30 = arith.constant 0 : index
    %59 = vector.load %arg11[%c0_29, %c17, %c0_30] : memref<10x18x128xbf16, #tpu.memory_space<vmem>>, vector<10x1x128xbf16>
    tpu.vector_store %arg11[%c0_29, %c17, %c0_30], %58 {strides = array<i32>} : memref<10x18x128xbf16, #tpu.memory_space<vmem>>, vector<10x1x128xbf16>,
    %60 = vector.shape_cast %55 : vector<160x128xbf16> to vector<10x16x128xbf16>
    %c0_31 = arith.constant 0 : index
    %c1_32 = arith.constant 1 : index
    %c0_33 = arith.constant 0 : index
    %61 = vector.load %arg11[%c0_31, %c1_32, %c0_33] : memref<10x18x128xbf16, #tpu.memory_space<vmem>>, vector<10x16x128xbf16>
    tpu.vector_store %arg11[%c0_31, %c1_32, %c0_33], %60 {strides = array<i32>} : memref<10x18x128xbf16, #tpu.memory_space<vmem>>, vector<10x16x128xbf16>,
    %c0_34 = arith.constant 0 : index
    %c0_35 = arith.constant 0 : index
    %c0_36 = arith.constant 0 : index
    %62 = vector.load %arg11[%c0_34, %c0_35, %c0_36] : memref<10x18x128xbf16, #tpu.memory_space<vmem>>, vector<8x18x128xbf16>
    %63 = vector.extract_strided_slice %62 {offsets = [0, 0, 0], sizes = [8, 16, 128], strides = [1, 1, 1]} : vector<8x18x128xbf16> to vector<8x16x128xbf16>
    %64 = vector.shape_cast %63 : vector<8x16x128xbf16> to vector<128x128xbf16>
    %65 = vector.extract_strided_slice %62 {offsets = [0, 1, 0], sizes = [8, 16, 128], strides = [1, 1, 1]} : vector<8x18x128xbf16> to vector<8x16x128xbf16>
    %66 = vector.shape_cast %65 : vector<8x16x128xbf16> to vector<128x128xbf16>
    %67 = vector.extract_strided_slice %62 {offsets = [0, 2, 0], sizes = [8, 16, 128], strides = [1, 1, 1]} : vector<8x18x128xbf16> to vector<8x16x128xbf16>
    %68 = vector.shape_cast %67 : vector<8x16x128xbf16> to vector<128x128xbf16>
    %69 = tpu.concatenate %64, %66, %68 in 1 : vector<128x128xbf16>, vector<128x128xbf16>, vector<128x128xbf16> -> vector<128x384xbf16>
    %c0_37 = arith.constant 0 : index
    %c0_38 = arith.constant 0 : index
    %c0_39 = arith.constant 0 : index
    %70 = vector.load %arg5[%c0_37, %c0_38, %c0_39] : memref<3x384x128xbf16, #tpu.memory_space<vmem>>, vector<1x384x128xbf16>
    %71 = vector.shape_cast %70 : vector<1x384x128xbf16> to vector<384x128xbf16>
    %cst_40 = arith.constant dense<0.000000e+00> : vector<128x128xf32>
    %72 = tpu.matmul %69, %71, %cst_40 {dimension_numbers = #tpu.dot_dimension_numbers<[1], [0], [0], [1], [0, 0, 1, 1], [], []>} : vector<128x384xbf16>, vector<384x128xbf16>, vector<128x128xf32> -> vector<128x128xf32>
    %c1_41 = arith.constant 1 : index
    %c0_42 = arith.constant 0 : index
    %c0_43 = arith.constant 0 : index
    %73 = vector.load %arg11[%c1_41, %c0_42, %c0_43] : memref<10x18x128xbf16, #tpu.memory_space<vmem>>, vector<8x18x128xbf16>
    %74 = vector.extract_strided_slice %73 {offsets = [0, 0, 0], sizes = [8, 16, 128], strides = [1, 1, 1]} : vector<8x18x128xbf16> to vector<8x16x128xbf16>
    %75 = vector.shape_cast %74 : vector<8x16x128xbf16> to vector<128x128xbf16>
    %76 = vector.extract_strided_slice %73 {offsets = [0, 1, 0], sizes = [8, 16, 128], strides = [1, 1, 1]} : vector<8x18x128xbf16> to vector<8x16x128xbf16>
    %77 = vector.shape_cast %76 : vector<8x16x128xbf16> to vector<128x128xbf16>
    %78 = vector.extract_strided_slice %73 {offsets = [0, 2, 0], sizes = [8, 16, 128], strides = [1, 1, 1]} : vector<8x18x128xbf16> to vector<8x16x128xbf16>
    %79 = vector.shape_cast %78 : vector<8x16x128xbf16> to vector<128x128xbf16>
    %80 = tpu.concatenate %75, %77, %79 in 1 : vector<128x128xbf16>, vector<128x128xbf16>, vector<128x128xbf16> -> vector<128x384xbf16>
    %c1_44 = arith.constant 1 : index
    %c0_45 = arith.constant 0 : index
    %c0_46 = arith.constant 0 : index
    %81 = vector.load %arg5[%c1_44, %c0_45, %c0_46] : memref<3x384x128xbf16, #tpu.memory_space<vmem>>, vector<1x384x128xbf16>
    %82 = vector.shape_cast %81 : vector<1x384x128xbf16> to vector<384x128xbf16>
    %cst_47 = arith.constant dense<0.000000e+00> : vector<128x128xf32>
    %83 = tpu.matmul %80, %82, %cst_47 {dimension_numbers = #tpu.dot_dimension_numbers<[1], [0], [0], [1], [0, 0, 1, 1], [], []>} : vector<128x384xbf16>, vector<384x128xbf16>, vector<128x128xf32> -> vector<128x128xf32>
    %84 = arith.addf %72, %83 : vector<128x128xf32>
    %c2 = arith.constant 2 : index
    %c0_48 = arith.constant 0 : index
    %c0_49 = arith.constant 0 : index
    %85 = vector.load %arg11[%c2, %c0_48, %c0_49] : memref<10x18x128xbf16, #tpu.memory_space<vmem>>, vector<8x18x128xbf16>
    %86 = vector.extract_strided_slice %85 {offsets = [0, 0, 0], sizes = [8, 16, 128], strides = [1, 1, 1]} : vector<8x18x128xbf16> to vector<8x16x128xbf16>
    %87 = vector.shape_cast %86 : vector<8x16x128xbf16> to vector<128x128xbf16>
    %88 = vector.extract_strided_slice %85 {offsets = [0, 1, 0], sizes = [8, 16, 128], strides = [1, 1, 1]} : vector<8x18x128xbf16> to vector<8x16x128xbf16>
    %89 = vector.shape_cast %88 : vector<8x16x128xbf16> to vector<128x128xbf16>
    %90 = vector.extract_strided_slice %85 {offsets = [0, 2, 0], sizes = [8, 16, 128], strides = [1, 1, 1]} : vector<8x18x128xbf16> to vector<8x16x128xbf16>
    %91 = vector.shape_cast %90 : vector<8x16x128xbf16> to vector<128x128xbf16>
    %92 = tpu.concatenate %87, %89, %91 in 1 : vector<128x128xbf16>, vector<128x128xbf16>, vector<128x128xbf16> -> vector<128x384xbf16>
    %c2_50 = arith.constant 2 : index
    %c0_51 = arith.constant 0 : index
    %c0_52 = arith.constant 0 : index
    %93 = vector.load %arg5[%c2_50, %c0_51, %c0_52] : memref<3x384x128xbf16, #tpu.memory_space<vmem>>, vector<1x384x128xbf16>
    %94 = vector.shape_cast %93 : vector<1x384x128xbf16> to vector<384x128xbf16>
    %cst_53 = arith.constant dense<0.000000e+00> : vector<128x128xf32>
    %95 = tpu.matmul %92, %94, %cst_53 {dimension_numbers = #tpu.dot_dimension_numbers<[1], [0], [0], [1], [0, 0, 1, 1], [], []>} : vector<128x384xbf16>, vector<384x128xbf16>, vector<128x128xf32> -> vector<128x128xf32>
    %96 = arith.addf %84, %95 : vector<128x128xf32>
    %c0_54 = arith.constant 0 : index
    %c0_55 = arith.constant 0 : index
    %97 = vector.load %arg6[%c0_54, %c0_55] : memref<2x128xf32, #tpu.memory_space<vmem>>, vector<1x128xf32>
    %98 = vector.broadcast %97 : vector<1x128xf32> to vector<128x128xf32>
    %99 = arith.mulf %96, %98 : vector<128x128xf32>
    %c1_56 = arith.constant 1 : index
    %c0_57 = arith.constant 0 : index
    %100 = vector.load %arg6[%c1_56, %c0_57] : memref<2x128xf32, #tpu.memory_space<vmem>>, vector<1x128xf32>
    %101 = vector.broadcast %100 : vector<1x128xf32> to vector<128x128xf32>
    %102 = arith.addf %99, %101 : vector<128x128xf32>
    %cst_58 = arith.constant 0.000000e+00 : f32
    %103 = vector.broadcast %cst_58 : f32 to vector<128x128xf32>
    %104 = arith.maximumf %102, %103 : vector<128x128xf32>
    %105 = arith.truncf %104 : vector<128x128xf32> to vector<128x128xbf16>
    %c0_59 = arith.constant 0 : index
    %c0_60 = arith.constant 0 : index
    %106 = vector.load %arg7[%c0_59, %c0_60] : memref<128x128xbf16, #tpu.memory_space<vmem>>, vector<128x128xbf16>
    %cst_61 = arith.constant dense<0.000000e+00> : vector<128x128xf32>
    %107 = tpu.matmul %105, %106, %cst_61 {dimension_numbers = #tpu.dot_dimension_numbers<[1], [0], [0], [1], [0, 0, 1, 1], [], []>} : vector<128x128xbf16>, vector<128x128xbf16>, vector<128x128xf32> -> vector<128x128xf32>
    %108 = vector.extract_strided_slice %27 {offsets = [1, 0, 0], sizes = [8, 16, 128], strides = [1, 1, 1]} : vector<10x16x128xbf16> to vector<8x16x128xbf16>
    %109 = vector.shape_cast %108 : vector<8x16x128xbf16> to vector<128x128xbf16>
    %110 = arith.extf %109 : vector<128x128xbf16> to vector<128x128xf32>
    %c0_62 = arith.constant 0 : index
    %c0_63 = arith.constant 0 : index
    %111 = vector.load %arg8[%c0_62, %c0_63] : memref<2x128xf32, #tpu.memory_space<vmem>>, vector<1x128xf32>
    %112 = vector.broadcast %111 : vector<1x128xf32> to vector<128x128xf32>
    %113 = arith.mulf %107, %112 : vector<128x128xf32>
    %c1_64 = arith.constant 1 : index
    %c0_65 = arith.constant 0 : index
    %114 = vector.load %arg8[%c1_64, %c0_65] : memref<2x128xf32, #tpu.memory_space<vmem>>, vector<1x128xf32>
    %115 = vector.broadcast %114 : vector<1x128xf32> to vector<128x128xf32>
    %116 = arith.addf %113, %115 : vector<128x128xf32>
    %117 = arith.addf %116, %110 : vector<128x128xf32>
    %cst_66 = arith.constant 0.000000e+00 : f32
    %118 = vector.broadcast %cst_66 : f32 to vector<128x128xf32>
    %119 = arith.maximumf %117, %118 : vector<128x128xf32>
    %120 = vector.shape_cast %119 : vector<128x128xf32> to vector<8x16x128xf32>
    %121 = arith.truncf %120 : vector<8x16x128xf32> to vector<8x16x128xbf16>
    %c0_67 = arith.constant 0 : index
    %c0_68 = arith.constant 0 : index
    %c0_69 = arith.constant 0 : index
    %c0_70 = arith.constant 0 : index
    %122 = vector.load %arg9[%c0_67, %c0_68, %c0_69, %c0_70] : memref<1x8x16x128xbf16, #tpu.memory_space<vmem>>, vector<1x8x16x128xbf16>
    %123 = vector.shape_cast %122 : vector<1x8x16x128xbf16> to vector<8x16x128xbf16>
    %124 = vector.shape_cast %121 : vector<8x16x128xbf16> to vector<1x8x16x128xbf16>
    tpu.vector_store %arg9[%c0_67, %c0_68, %c0_69, %c0_70], %124 {strides = array<i32>} : memref<1x8x16x128xbf16, #tpu.memory_space<vmem>>, vector<1x8x16x128xbf16>,
    return
  }
  func.func @transform_1(%arg0: i32, %arg1: i32) -> (i32, i32) {
    %c0_i32 = arith.constant 0 : i32
    %c0_i32_0 = arith.constant 0 : i32
    %c0_i32_1 = arith.constant 0 : i32
    return %c0_i32, %c0_i32_0 : i32, i32
  }
  func.func @transform_2(%arg0: i32, %arg1: i32) -> (i32, i32) {
    %c0_i32 = arith.constant 0 : i32
    %c0_i32_0 = arith.constant 0 : i32
    %c0_i32_1 = arith.constant 0 : i32
    return %c0_i32, %c0_i32_0 : i32, i32
  }
  func.func @transform_3(%arg0: i32, %arg1: i32) -> (i32, i32, i32) {
    %c0_i32 = arith.constant 0 : i32
    %c0_i32_0 = arith.constant 0 : i32
    %c0_i32_1 = arith.constant 0 : i32
    %c0_i32_2 = arith.constant 0 : i32
    return %c0_i32, %c0_i32_0, %c0_i32_1 : i32, i32, i32
  }
  func.func @transform_4(%arg0: i32, %arg1: i32) -> (i32, i32) {
    %c0_i32 = arith.constant 0 : i32
    %c0_i32_0 = arith.constant 0 : i32
    %c0_i32_1 = arith.constant 0 : i32
    return %c0_i32, %c0_i32_0 : i32, i32
  }
  func.func @transform_5(%arg0: i32, %arg1: i32) -> (i32, i32) {
    %c0_i32 = arith.constant 0 : i32
    %c0_i32_0 = arith.constant 0 : i32
    %c0_i32_1 = arith.constant 0 : i32
    return %c0_i32, %c0_i32_0 : i32, i32
  }
  func.func @transform_6(%arg0: i32, %arg1: i32) -> (i32, i32) {
    %c0_i32 = arith.constant 0 : i32
    %c0_i32_0 = arith.constant 0 : i32
    %c0_i32_1 = arith.constant 0 : i32
    return %c0_i32, %c0_i32_0 : i32, i32
  }
  func.func @transform_7(%arg0: i32, %arg1: i32) -> (i32, i32, i32, i32) {
    %c0_i32 = arith.constant 0 : i32
    %c0_i32_0 = arith.constant 0 : i32
    %c0_i32_1 = arith.constant 0 : i32
    return %arg0, %arg1, %c0_i32, %c0_i32_0 : i32, i32, i32, i32
  }
}

</mosaic_0001>

<bundles_post_ra>
// kernel: tpu_custom_call.1
= control target key start
LH: loop header
LB: loop body
LE: loop exit
PB: predicated region body
PF: predicated region fallthrough
CT: control target
= control target key end

     0   :  { %s6933_s0 = inlined_call_operand.hbm [shape: bf16[36,16,128], index: 0, kind: input, shape index: {}]   ;;  %s6934_s1 = inlined_call_operand.hbm [shape: bf16[128,128], index: 1, kind: input, shape index: {}]   ;;  %s6935_s2 = inlined_call_operand.vmem [shape: f32[2,128], index: 2, kind: input, shape index: {}]   ;;  %s6936_s3 = inlined_call_operand.hbm [shape: bf16[3,384,128], index: 3, kind: input, shape index: {}]   ;;  %s6937_s4 = inlined_call_operand.vmem [shape: f32[2,128], index: 4, kind: input, shape index: {}]   ;;  %s6938_s5 = inlined_call_operand.hbm [shape: bf16[128,128], index: 5, kind: input, shape index: {}]   ;;  %s6939_s6 = inlined_call_operand.vmem [shape: f32[2,128], index: 6, kind: input, shape index: {}]   ;;  %s6940_s7 = inlined_call_operand.hbm [shape: bf16[2,16,16,128], index: 7, kind: output, shape index: {}]  }
   0x1   :  { %6951 = sst [smem:[#allocation29_spill]] %s6934_s1 }
   0x2   :  { %6952 = sst [smem:[#allocation30_spill]] %s6936_s3 }
   0x3   :  { %6953 = sst [smem:[#allocation31_spill]] %s6938_s5 }
   0x4   :  { %12 = vsyncpa [#allocation6], 0 }
   0x5   :  { %13 = vsyncpa [#allocation9], 0 }
   0x6   :  { %14 = vsyncpa [#allocation7], 0 }
   0x7   :  { %16 = vsyncpa [#allocation7 + $0x1], 0  ;;  %s5511_s24 = smov 0   ;;  %s5513_s25 = smov 0  }
   0x8   :  { %s5515_s26 = smov 0   ;;  %s5517_s27 = smov 0  }
   0x9   :  { %s5519_s28 = smov 0   ;;  %s5521_s29 = smov 0  }
   0xa   :  { %s5523_s30 = smov 0   ;;  %s5525_s8 = smov 0  }
   0xb LB: > { %6954 = sst [smem:[#allocation22_spill]] %s5440_s26  ;;  %s4168_s9 = sadd.s32 4294967295, %s5460_s8   ;;  %s5460_s8 = sphi %s5525_s8, %s22_s8   ;;  %s5456_s30 = sphi %s5523_s30, %s6997_s30   ;;  %s5452_s29 = sphi %s5521_s29, %s6996_s29   ;;  %s5448_s28 = sphi %s5519_s28, %s7000_s28   ;;  %s5444_s27 = sphi %s5517_s27, %s6994_s27   ;;  %s5440_s26 = sphi %s5515_s26, %s6993_s26   ;;  %s5436_s25 = sphi %s5513_s25, %s6999_s25   ;;  %s5432_s24 = sphi %s5511_s24, %s6998_s24  }
   0xc   : > { %6955 = sst [smem:[#allocation23_spill]] %s5452_s29  ;;  %s4169_s10 = sadd.s32 4294967294, %s5460_s8  }
   0xd   : > { %6956 = sst [smem:[#allocation24_spill]] %s5456_s30  ;;  %s31_s11 = sadd.s32 1, %s5452_s29 }
   0xe   : > { %s34_s12 = sadd.s32 1, %s5456_s30  ;;  %p32_p0 = scmp.ge.s32.totalorder %s31_s11, 2 }
   0xf   : > { %s169_s13 = sadd.s32 1, %s5440_s26  ;;  %p179_p1 = scmp.ne.s32.totalorder %s5440_s26, %s5436_s25 }
  0x10   : > { %p180_p2 = scmp.eq.s32.totalorder %s4168_s9, 3  ;;  %s7002_s11 = smov (%p32_p0, %s31_s11), 0 }
  0x11   : > { %6957 = sst [smem:[#allocation25_spill]] %s7002_s11  ;;  %s7004_s12 = smov (!%p32_p0, %s34_s12), %s5456_s30 }
  0x12   : > { %s165_s14 = ssub.s32 %s5452_s29, %s7002_s11  ;;  %p5563_p3 = por %p180_p2, %p179_p1 }
  0x13   : > { %p36_p4 = scmp.ge.s32.totalorder %s7004_s12, 2  ;;  %p185_p5 = scmp.ne.s32.totalorder %s5436_s25, %s5432_s24 }
  0x14   : > { %p186_p6 = scmp.eq.s32.totalorder %s4169_s10, 3  ;;  %p4170_p7 = scmp.ge.s32.totalorder %s5460_s8, 1 }
  0x15   : > { %s7006_s12 = smov (%p36_p4, %s7004_s12), 0  ;;  %p193_p9 = scmp.lt.s32.totalorder %s5460_s8, 5 }
  0x16   : > { %6959 = sst [smem:[#allocation26_spill]] %s7006_s12  ;;  %p5572_p8 = por %p186_p6, %p185_p5 }
  0x17   : > { %s164_s17 = ssub.s32 %s5456_s30, %s7006_s12  ;;  %p5579_p10 = pnand %p4170_p7, %p193_p9 }
  0x18   : > { %s6960_s16 = scalar_select %p5572_p8, 1, 0 }
  0x19   : > { %s166_s18 = sor.u32 %s165_s14, %s164_s17  ;;  %p5583_p12 = scmp.eq.s32.totalorder %s4168_s9, 0 }
  0x1a   : > { %6961 = sst [smem:[#allocation27_spill]] %s6960_s16  ;;  %p167_p11 = scmp.eq.s32.totalorder %s166_s18, 0 }
  0x1b   : > { %p4994_p13 = pneg %p5579_p10  ;;  %s5462_s23 = smov [#allocation8]  }
  0x1c   : > { %s5590_s21 = scalar_select %p167_p11, %s5440_s26, %s169_s13  }
  0x1d   : > { %p5594_p0 = pnand %p5583_p12, %p4994_p13  ;;  %s221_s10 = sshll.u32 %s5462_s23, 4  ;;  %s222_s10 = int_to_ptr.vmem [resolvable:$true] %s221_s10 }
  0x1e   : > { %6964 = sst [smem:[#allocation28_spill]] %s5590_s21  ;;  %s5238_s9 = scalar_lea.vmem %s222_s10, 9216 }
  0x1f   : > { %p5229_p1 = pneg %p5594_p0  ;;  %p5239_p2 = scmp.ne.s32.totalorder %s222_s10, %s5238_s9 }
  0x20   : > { %p5246_p6 = scmp.lt.s32.totalorder %s222_s10, %s222_s10  ;;  %p5247_p7 = scmp.lt.s32.totalorder %s5238_s9, %s5238_s9 }
  0x21   : > { %p5241_p4 = pnand %p5239_p2, %p5229_p1 }
  0x22   : > { %p5248_p9 = por %p5247_p7, %p5246_p6 }
  0x23   : > { %p5242_p5 = pneg %p5241_p4 }
  0x25   : > { %p5249_p11 = pnand %p5248_p9, %p5242_p5 }
  0x27   : > { %5252 = shalt.err (!%p5249_p11)
}
  0x28   : > { %s5463_s13 = smov 64   ;;  %s5464_s14 = smov 4  }
  0x29   : > { %s6966_s3 = sld [smem:[#allocation30_spill]]  ;;  %s5465_s23 = smov [#allocation5]  }
  0x2a   : > { %s205_s12 = sshll.u32 %s5465_s23, 4  ;;  %s5466_s11 = smov [#allocation10]   ;;  %s206_s12 = int_to_ptr.vmem [resolvable:$true] %s205_s12 }
  0x2b   : > { %s237_s30 = sshll.u32 %s5466_s11, 4  ;;  %s5264_s9 = scalar_lea.vmem %s206_s12, 1024  ;;  %s238_s30 = int_to_ptr.vmem [resolvable:$true] %s237_s30 }
  0x2c   : > { %p5265_p13 = scmp.ne.s32.totalorder %s206_s12, %s5264_s9  ;;  %p5272_p5 = scmp.lt.s32.totalorder %s206_s12, %s206_s12 }
  0x2d   : > { %p5273_p6 = scmp.lt.s32.totalorder %s5264_s9, %s5264_s9 }
  0x2e   : > { %p5267_p2 = pnand %p5265_p13, %p5229_p1 }
  0x2f   : > { %5000 = dma.hbm_to_vmem [thread:$0]  (!%p5594_p0), %s6966_s3, 9216, %s222_s10, [#allocation9], %s5463_s13, %s5463_s13, %s5464_s14  }
  0x30   : > { %p5268_p4 = pneg %p5267_p2  ;;  %p5274_p7 = por %p5273_p6, %p5272_p5 }
  0x32   : > { %p5275_p9 = pnand %p5274_p7, %p5268_p4 }
  0x34   : > { %5278 = shalt.err (!%p5275_p9)
}
  0x35   : > { %s6967_s1 = sld [smem:[#allocation29_spill]]  ;;  %s5290_s17 = scalar_lea.vmem %s238_s30, 1024 }
  0x36   : > { %p5291_p11 = scmp.ne.s32.totalorder %s238_s30, %s5290_s17  ;;  %p5298_p8 = scmp.lt.s32.totalorder %s238_s30, %s238_s30 }
  0x37   : > { %p5299_p5 = scmp.lt.s32.totalorder %s5290_s17, %s5290_s17 }
  0x38   : > { %p5293_p13 = pnand %p5291_p11, %p5229_p1 }
  0x39   : > { %p5300_p4 = por %p5299_p5, %p5298_p8 }
  0x3a   : > { %p5294_p2 = pneg %p5293_p13 }
  0x3b   : > { %4997 = dma.hbm_to_vmem [thread:$0]  (!%p5594_p0), %s6967_s1, 1024, %s206_s12, [#allocation6], %s5463_s13, %s5463_s13, %s5464_s14  }
  0x3c   : > { %p5301_p6 = pnand %p5300_p4, %p5294_p2 }
  0x3e   : > { %5304 = shalt.err (!%p5301_p6)
}
  0x3f   : > { %s6968_s5 = sld [smem:[#allocation31_spill]] }
  0x41   : > { %256 = sbr.rel (%p5579_p10) target bundleno = 1021 (0x3fd), region = 44 }
  0x45   : > { %5003 = dma.hbm_to_vmem [thread:$0]  (!%p5594_p0), %s6968_s5, 1024, %s238_s30, [#allocation9], %s5463_s13, %s5463_s13, %s5464_s14  }
  0x46   : > { %5417 = dma.done.wait (%p5583_p12), [#allocation6], 1024  }
  0x47   : > { %5419 = vsyncadd (%p5583_p12), [#allocation6], 4294966272 }
  0x48   : > { %5421 = dma.done.wait (%p5583_p12), [#allocation9], 10240  }
  0x49   : > { %5423 = vsyncadd (%p5583_p12), [#allocation9], 4294957056  ;;  %s6944_s30 = sand.u32 1, %s5436_s25   ;;  %p291_p8 = scmp.lt.s32.totalorder %s5444_s27, 0 }
  0x4a   : > { %s5647_s12 = sshll.u32 %s6944_s30, 6  ;;  %s292_s19 = ssub.s32 0, %s5444_s27 }
  0x4b   : > { %s4179_s22 = smin.u32 %s5444_s27, %s292_s19  ;;  %p6950_p10 = scmp.eq.s32.totalorder %s5444_s27, 0 }
  0x4c   : > { %s294_s13 = sand.u32 1, %s4179_s22   ;;  %s4435_s20 = smul.u32 2304, %s5448_s28 }
  0x4d   : > { %s295_s14 = ssub.s32 0, %s294_s13  ;;  %s5467_s18 = smov [#allocation2]  }
  0x4e   : > { %s7008_s14 = smov (!%p291_p8, %s295_s14), %s294_s13  ;;  %s310_s17 = scalar_lea.hbm %s6933_s0, %s4435_s20 }
  0x4f   : > { %p4181_p12 = scmp.lt.s32.totalorder %s7008_s14, 0  ;;  %s301_s9 = sadd.s32 2, %s7008_s14 }
  0x50   : > { %s318_s23 = sshll.u32 %s5467_s18, 4  ;;  %s5305_s30 = scalar_lea.hbm %s310_s17, 1280  ;;  %s5658_s23 = int_to_ptr.vmem [resolvable:$true] %s318_s23 }
  0x51   : > { %s7010_s9 = smov (!%p4181_p12, %s301_s9), %s7008_s14  ;;  %p5306_p0 = scmp.ne.s32.totalorder %s310_s17, %s5305_s30 }
  0x52   : > { %s6946_s13 = scalar_lea.hbm %s6933_s0, 4608  ;;  %p5310_p9 = scmp.lt.s32.totalorder %s310_s17, %s6933_s0 }
  0x53   : > { %p5307_p1 = pnand %p5306_p0, %p6950_p10  ;;  %p5311_p11 = scmp.lt.s32.totalorder %s6946_s13, %s5305_s30 }
  0x55   : > { %p5308_p7 = pneg %p5307_p1  ;;  %p5312_p13 = por %p5311_p11, %p5310_p9 }
  0x57   : > { %p5313_p2 = pnand %p5312_p13, %p5308_p7 }
  0x59   : > { %5316 = shalt.err (!%p5313_p2)  }
  0x5a   : > { %s5317_s14 = scalar_lea.vmem %s5658_s23, 1280  ;;  %s6945_s1 = scalar_lea.vmem %s5658_s23, 2560 }
  0x5b   : > { %p5318_p5 = scmp.ne.s32.totalorder %s5658_s23, %s5317_s14  ;;  %p5324_p8 = scmp.lt.s32.totalorder %s5658_s23, %s5658_s23 }
  0x5c   : > { %p5325_p12 = scmp.lt.s32.totalorder %s6945_s1, %s5317_s14 }
  0x5d   : > { %p5319_p4 = pnand %p5318_p5, %p6950_p10 }
  0x5e   : > { %p5326_p0 = por %p5325_p12, %p5324_p8 }
  0x5f   : > { %p5320_p6 = pneg %p5319_p4 }
  0x61   : > { %p5327_p1 = pnand %p5326_p0, %p5320_p6 }
  0x63   : > { %5330 = shalt.err (!%p5327_p1)  }
  0x64   : > { %4989 = dma.hbm_to_vmem [thread:$0]  (%p6950_p10), %s310_s17, 1280, %s5658_s23, [#allocation4] }
  0x65   : > { %s4436_s3 = smul.u32 80, %s7010_s9  ;;  %s5686_s30 = scalar_lea.vmem [#allocation11], %s5647_s12 }
  0x66   : > { %s326_s18 = scalar_lea.sflag [#allocation4], %s7010_s9 }
  0x67   : > { %s5688_s11 = scalar_lea.vmem [#allocation2], %s4436_s3 }
  0x68   : > { %5424 = dma.done.wait %s326_s18, 1280 }
  0x69   : > { %5425 = vsyncadd %s326_s18, 4294966016  ;;  %s332_s19 = sadd.s32 1, %s5444_s27  ;;  %s337_s22 = ssub.s32 1, %s7010_s9  ;;  %v5089_v0 = vld [vmem:[#allocation5 + $0x38] sm:$0xff]   ;;  %v5090_v1 = vld [vmem:[#allocation5 + $0x30] sm:$0xff]  }
  0x6a   : > { %s4095_s20 = smul.u32 18, %s5448_s28  ;;  %s4187_s10 = sshll.u32 %s5444_s27, 3 }
  0x6b   : > { %p5695_p7 = scmp.lt.s32.totalorder %s332_s19, 2  ;;  %s4437_s12 = smul.u32 80, %s337_s22 }
  0x6c   : > { %s4097_s17 = sadd.s32 %s4187_s10, %s4095_s20  ;;  %s346_s9 = scalar_lea.sflag [#allocation4], %s337_s22 }
  0x6d   : > { %s4188_s3 = sshll.u32 %s4097_s17, 7  ;;  %s345_s5 = scalar_lea.vmem [#allocation2], %s4437_s12 }
  0x6e   : > { %s4099_s18 = scalar_lea.hbm %s6933_s0, %s4188_s3  ;;  %s354_s29 = sshll.u32 %s345_s5, 4  ;;  %s355_s29 = int_to_ptr.vmem [resolvable:$true] %s354_s29 }
  0x6f   : > { %s4100_s21 = scalar_lea.hbm %s4099_s18, 1024  ;;  %s5357_s26 = scalar_lea.hbm %s4099_s18, 2304 }
  0x70   : > { %p5332_p9 = scmp.ne.s32.totalorder %s4100_s21, %s5357_s26  ;;  %p5336_p2 = scmp.lt.s32.totalorder %s4100_s21, %s6933_s0 }
  0x71   : > { %s6970_s13 = scalar_lea.hbm %s6933_s0, 4608 }
  0x72   : > { %p5333_p11 = pnand %p5332_p9, %p5695_p7  ;;  %p5337_p5 = scmp.lt.s32.totalorder %s6970_s13, %s5357_s26 }
  0x74   : > { %p5334_p13 = pneg %p5333_p11  ;;  %p5338_p4 = por %p5337_p5, %p5336_p2 }
  0x76   : > { %p5339_p6 = pnand %p5338_p4, %p5334_p13 }
  0x78   : > { %5342 = shalt.err (!%p5339_p6)  }
  0x79   : > { %s5343_s5 = scalar_lea.vmem %s355_s29, 1280  ;;  %p5350_p1 = scmp.lt.s32.totalorder %s355_s29, %s5658_s23 }
  0x7a   : > { %p5344_p8 = scmp.ne.s32.totalorder %s355_s29, %s5343_s5  ;;  %s6971_s1 = scalar_lea.vmem %s5658_s23, 2560 }
  0x7b   : > { %p5351_p9 = scmp.lt.s32.totalorder %s6971_s1, %s5343_s5 }
  0x7c   : > { %p5345_p12 = pnand %p5344_p8, %p5695_p7 }
  0x7d   : > { %p5352_p11 = por %p5351_p9, %p5350_p1 }
  0x7e   : > { %p5346_p0 = pneg %p5345_p12 }
  0x80   : > { %p5353_p10 = pnand %p5352_p11, %p5346_p0 }
  0x82   : > { %5356 = shalt.err (!%p5353_p10)  }
  0x83   : > { %4991 = dma.hbm_to_vmem [thread:$0]  (%p5695_p7), %s4100_s21, 1280, %s355_s29, %s346_s9  ;;  %4796 = vmatprep.subr.bf16.mxu0 %v5089_v0  ;;  %v5091_v2 = vld [vmem:[#allocation5 + $0x28] sm:$0xff]   ;;  %v5092_v3 = vld [vmem:[#allocation5 + $0x20] sm:$0xff]   ;;  %v5093_v5 = vld [vmem:[#allocation5 + $0x18] sm:$0xff]   ;;  %vm883_vm0 = vcmask 1040384   ;;  %vm1200_vm6 = vcmask 1043456  }
  0x84   : > { %4797 = vmatpush3.bf16.msra.mxu0 %v5089_v0  ;;  %v5097_v4 = vld [vmem:[%s5688_s11] sm:$0xff]   ;;  %v5094_v6 = vld [vmem:[#allocation5 + $0x10] sm:$0xff]   ;;  %v5096_v8 = vld [vmem:[#allocation5] sm:$0xff]   ;;  %vm884_vm1 = vsmask.f32 256  ;;  %p6976_p10 = scmp.eq.s32.totalorder %s5444_s27, 0 }
  0x85   : > { %4798 = vmatprep.subr.bf16.mxu0 %v5090_v1  ;;  %4812 = vmatprep.mubr.bf16.mxu0 %v5097_v4  ;;  %v5095_v7 = vld [vmem:[#allocation5 + $0x8] sm:$0xff]   ;;  %v360_v9 = vld [vmem:[%s5688_s11 + $0x8] sm:$0xff]   ;;  %v364_v11 = vld [vmem:[%s5688_s11 + $0x18] sm:$0xff]   ;;  %vm916_vm3 = vsmask.f32 7938  ;;  %p769_p7 = scmp.eq.s32.totalorder %s5444_s27, 1 }
  0x86   : > { %v362_v10 = vld [vmem:[%s5688_s11 + $0x10] sm:$0xff]   ;;  %v366_v12 = vld [vmem:[%s5688_s11 + $0x20] sm:$0xff]   ;;  %v368_v13 = vld [vmem:[%s5688_s11 + $0x28] sm:$0xff]   ;;  %s726_s16 = scalar_select %p6976_p10, 1, 0  ;;  %vm1515_vm10 = vcmask 1042432  }
  0x87   : > { %v370_v14 = vld [vmem:[%s5688_s11 + $0x30] sm:$0xff]   ;;  %v372_v15 = vld [vmem:[%s5688_s11 + $0x38] sm:$0xff]   ;;  %v374_v16 = vld [vmem:[%s5688_s11 + $0x40] sm:$0xff]   ;;  %s5803_s22 = scalar_select %p769_p7, 1, 0  ;;  %vm1516_vm11 = vcmask 1046532  }
  0x88   : > { %4799 = vmatpush3.bf16.msra.mxu0 %v5090_v1  ;;  %v5106_v17 = vld [vmem:[%s5688_s11 + $0x48] sm:$0xff]   ;;  %vm5729_vm2 = vmand %vm883_vm0, %vm884_vm1  ;;  %v5107_v22 = vld [vmem:[#allocation8 + $0x138] sm:$0xff]   ;;  %vm998_vm7 = vsmask.f32 4368  ;;  %vm1296_vm14 = vsmask.f32 3328 }
  0x89   : > { %4800 = vmatprep.subr.bf16.mxu0 %v5091_v2  ;;  %v889_v19 = vld [vmem:[#allocation3 + $0xc] sm:$0x1]  ;;  %vm5736_vm4 = vmand %vm883_vm0, %vm916_vm3  ;;  %v886_v23 = vld [vmem:[#allocation3] sm:$0x1]  ;;  %4540 = vmatprep.subr.bf16.mxu1 %v5107_v22  ;;  %vm1297_vm15 = vsmask.f32 7440 }
  0x8a   : > { %v890_v20 = vsel %vm5729_vm2, 0, %v889_v19  ;;  %v5108_v24 = vld [vmem:[#allocation8 + $0xf8] sm:$0xff]   ;;  %v887_v25 = vsel %vm5729_vm2, 0, %v886_v23  ;;  %v918_v28 = vld [vmem:[#allocation3 + $0x8] sm:$0x1]  ;;  %v5112_v37 = vld [vmem:[#allocation8 + $0x128] sm:$0xff]  }
  0x8b   : > { %891 = vst [vmem:[#allocation3 + $0xc] sm:$0x1] %v890_v20  ;;  %v921_v26 = vld [vmem:[#allocation3 + $0x14] sm:$0x1]  ;;  %888 = vst [vmem:[#allocation3] sm:$0x1] %v887_v25  ;;  %4541 = vmatpush3.bf16.msra.mxu1 %v5108_v24 }
  0x8c   : > { %4801 = vmatpush3.bf16.msra.mxu0 %v5091_v2  ;;  %v922_v27 = vsel %vm5736_vm4, 0, %v921_v26  ;;  %v919_v29 = vsel %vm5736_vm4, 0, %v918_v28  ;;  %v895_v30 = vld [vmem:[#allocation3 + $0x24] sm:$0x1]  ;;  %v5109_v32 = vld [vmem:[#allocation8 + $0x130] sm:$0xff]   ;;  %v5111_v34 = vld [vmem:[#allocation8 + $0x178] sm:$0xff]  }
  0x8d   : > { %4802 = vmatprep.subr.bf16.mxu0 %v5092_v3  ;;  %923 = vst [vmem:[#allocation3 + $0x14] sm:$0x1] %v922_v27  ;;  %920 = vst [vmem:[#allocation3 + $0x8] sm:$0x1] %v919_v29  ;;  %v896_v31 = vsel %vm5729_vm2, 0, %v895_v30  ;;  %v5110_v33 = vld [vmem:[#allocation8 + $0xf0] sm:$0xff]   ;;  %4542 = vmatprep.subr.bf16.mxu1 %v5109_v32  ;;  %v727_v30 = vstv %s726_s16 }
  0x8e   : > { %897 = vst [vmem:[#allocation3 + $0x24] sm:$0x1] %v896_v31  ;;  %v892_v35 = vld [vmem:[#allocation3 + $0x18] sm:$0x1]  ;;  %v5113_v38 = vld [vmem:[#allocation8 + $0xe8] sm:$0xff]   ;;  %v5114_v39 = vld [vmem:[#allocation8 + $0x170] sm:$0xff]  }
  0x8f   : > { %v893_v36 = vsel %vm5729_vm2, 0, %v892_v35  ;;  %4543 = vmatpush3.bf16.msra.mxu1 %v5110_v33  ;;  %v927_v40 = vld [vmem:[#allocation3 + $0x2c] sm:$0x1]  ;;  %v924_v42 = vld [vmem:[#allocation3 + $0x20] sm:$0x1]  ;;  %v5115_v44 = vld [vmem:[#allocation8 + $0x120] sm:$0xff]  }
  0x90   : > { %4803 = vmatpush3.bf16.msra.mxu0 %v5092_v3  ;;  %894 = vst [vmem:[#allocation3 + $0x18] sm:$0x1] %v893_v36  ;;  %4544 = vmatprep.subr.bf16.mxu1 %v5112_v37  ;;  %v928_v41 = vsel %vm5736_vm4, 0, %v927_v40  ;;  %v925_v43 = vsel %vm5736_vm4, 0, %v924_v42  ;;  %v5116_v45 = vld [vmem:[#allocation8 + $0xe0] sm:$0xff]   ;;  %v5117_v46 = vld [vmem:[#allocation8 + $0x168] sm:$0xff]   ;;  %vm5815_vm8 = vmand %vm1200_vm6, %vm916_vm3 }
  0x91   : > { %4804 = vmatprep.subr.bf16.mxu0 %v5093_v5  ;;  %929 = vst [vmem:[#allocation3 + $0x2c] sm:$0x1] %v928_v41  ;;  %926 = vst [vmem:[#allocation3 + $0x20] sm:$0x1] %v925_v43  ;;  %v901_v47 = vld [vmem:[#allocation3 + $0x3c] sm:$0x1] }
  0x92   : > { %v902_v48 = vsel %vm5729_vm2, 0, %v901_v47  ;;  %v5118_v49 = vld [vmem:[#allocation8 + $0x118] sm:$0xff]   ;;  %v5120_v53 = vld [vmem:[#allocation8 + $0x160] sm:$0xff]   ;;  %v5121_v54 = vld [vmem:[#allocation8 + $0x110] sm:$0xff]   ;;  %vm5799_vm5 = vcmp.eq.s32.totalorder %v727_v30, 1  ;;  %s4474_s10 = sshll.u32 %s5444_s27, 4 }
  0x93   : > { %4545 = vmatpush3.bf16.msra.mxu1 %v5113_v38  ;;  %903 = vst [vmem:[#allocation3 + $0x3c] sm:$0x1] %v902_v48  ;;  %v898_v50 = vld [vmem:[#allocation3 + $0x30] sm:$0x1]  ;;  %v933_v55 = vld [vmem:[#allocation3 + $0x44] sm:$0x1]  ;;  %vm5828_vm9 = vmor %vm884_vm1, %vm998_vm7 }
  0x94   : > { %4805 = vmatpush3.bf16.msra.mxu0 %v5093_v5  ;;  %4546 = vmatprep.subr.bf16.mxu1 %v5115_v44  ;;  %v5119_v51 = vld [vmem:[#allocation8 + $0xd8] sm:$0xff]   ;;  %v899_v52 = vsel %vm5729_vm2, 0, %v898_v50  ;;  %v5122_v56 = vld [vmem:[#allocation8 + $0xd0] sm:$0xff]   ;;  %v934_v58 = vsel %vm5736_vm4, 0, %v933_v55  ;;  %v930_v59 = vld [vmem:[#allocation3 + $0x38] sm:$0x1] }
  0x95   : > { %4806 = vmatprep.subr.bf16.mxu0 %v5094_v6  ;;  %900 = vst [vmem:[#allocation3 + $0x30] sm:$0x1] %v899_v52  ;;  %v5123_v57 = vld [vmem:[#allocation8 + $0x158] sm:$0xff]   ;;  %935 = vst [vmem:[#allocation3 + $0x44] sm:$0x1] %v934_v58  ;;  %v931_v60 = vsel %vm5736_vm4, 0, %v930_v59 }
  0x96   : > { %932 = vst [vmem:[#allocation3 + $0x38] sm:$0x1] %v931_v60  ;;  %v5124_v61 = vld [vmem:[#allocation8 + $0x108] sm:$0xff]   ;;  %v5126_v63 = vld [vmem:[#allocation8 + $0x150] sm:$0xff]   ;;  %v907_v0 = vld [vmem:[#allocation3 + $0x54] sm:$0x1] }
  0x97   : > { %4547 = vmatpush3.bf16.msra.mxu1 %v5116_v45  ;;  %v5125_v62 = vld [vmem:[#allocation8 + $0xc8] sm:$0xff]   ;;  %v908_v1 = vsel %vm5729_vm2, 0, %v907_v0  ;;  %v904_v2 = vld [vmem:[#allocation3 + $0x48] sm:$0x1]  ;;  %v936_v4 = vld [vmem:[#allocation3 + $0x50] sm:$0x1] }
  0x98   : > { %4807 = vmatpush3.bf16.msra.mxu0 %v5094_v6  ;;  %4548 = vmatprep.subr.bf16.mxu1 %v5118_v49  ;;  %909 = vst [vmem:[#allocation3 + $0x54] sm:$0x1] %v908_v1  ;;  %v905_v3 = vsel %vm5729_vm2, 0, %v904_v2  ;;  %v937_v5 = vsel %vm5736_vm4, 0, %v936_v4  ;;  %v939_v6 = vld [vmem:[#allocation3 + $0x5c] sm:$0x1]  ;;  %v771_v49 = vstv %s5803_s22  ;;  %vm5912_vm13 = vmor %vm1515_vm10, %vm1516_vm11 }
  0x99   : > { %4808 = vmatprep.subr.bf16.mxu0 %v5095_v7  ;;  %906 = vst [vmem:[#allocation3 + $0x48] sm:$0x1] %v905_v3  ;;  %938 = vst [vmem:[#allocation3 + $0x50] sm:$0x1] %v937_v5  ;;  %v5131_v20 = vld [vmem:[#allocation8 + $0x140] sm:$0xff]   ;;  %v5132_v22 = vld [vmem:[#allocation8 + $0x78] sm:$0xff]  }
  0x9a   : > { %v5778_v23 = vld [vmem:[#allocation8 + $0xb8] sm:$0xff]   ;;  %v5784_v24 = vld [vmem:[%s6935_s2] ss:$0 sm:$0xff]  ;;  %v5791_v25 = vld [vmem:[%s6935_s2 + $0x1] ss:$0 sm:$0xff]  ;;  %vm5878_vm12 = vcmp.eq.s32.totalorder %v771_v49, 1 }
  0x9b   : > { %4549 = vmatpush3.bf16.msra.mxu1 %v5119_v51  ;;  %v1209_v55 = vld [vmem:[#allocation3 + $0xc] sm:$0xf]  ;;  %v1206_v35 = vld [vmem:[#allocation3 + $0x8] sm:$0x1]  ;;  %vm5973_vm0 = vmor %vm1296_vm14, %vm1297_vm15  ;;  %s4429_s13 = sshll.u32 %s5448_s28, 5  ;;  %s4046_s27 = sshll.u32 %s5686_s30, 4  ;;  %s6871_s27 = int_to_ptr.vmem [resolvable:$true] %s4046_s27 }
  0x9c   : > { %4809 = vmatpush3.bf16.msra.mxu0 %v5095_v7  ;;  %4550 = vmatprep.subr.bf16.mxu1 %v5121_v54  ;;  %v940_v7 = vsel %vm5736_vm4, 0, %v939_v6  ;;  %s6989_s29 = sand.u32 1, %s5436_s25   ;;  %s5358_s21 = scalar_lea.vmem %s6871_s27, 1024 }
  0x9d   : > { %4810 = vmatprep.subr.bf16.mxu0 %v5096_v8  ;;  %941 = vst [vmem:[#allocation3 + $0x5c] sm:$0x1] %v940_v7  ;;  %v1202_v7 = vld [vmem:[#allocation3] sm:$0xf]  ;;  %s6882_s16 = scalar_lea.sflag [#allocation7], %s6989_s29  ;;  %p5359_p13 = scmp.ne.s32.totalorder %s6871_s27, %s5358_s21 }
  0x9e   : > { %s5468_s23 = smov [#allocation11]  }
  0x9f   : > { %4551 = vmatpush3.bf16.msra.mxu1 %v5122_v56  ;;  %p5360_p2 = pnand %p5359_p13, %p5563_p3  ;;  %s5362_s22 = sshll.u32 %s5468_s23, 4  ;;  %s5363_s22 = int_to_ptr.vmem [resolvable:$false] %s5362_s22 }
  0xa0   : > { %4811 = vmatpush3.bf16.msra.mxu0 %v5096_v8  ;;  %4552 = vmatprep.subr.bf16.mxu1 %v5124_v61  ;;  %v910_v8 = vld [vmem:[#allocation3 + $0x60] sm:$0x1]  ;;  %s5364_s14 = scalar_lea.vmem %s5363_s22, 2048  ;;  %p5365_p4 = scmp.lt.s32.totalorder %s6871_s27, %s5363_s22 }
  0xa1   : > { %4832 = vmatprep.subr.bf16.mxu0 %v5111_v34  ;;  %p5361_p5 = pneg %p5360_p2  ;;  %p5366_p6 = scmp.lt.s32.totalorder %s5364_s14, %s5358_s21 }
  0xa3   : > { %4813 = vmatmul.mubr.bf16.vlgmr.msra.gmra.mxu0 %v360_v9  ;;  %4553 = vmatpush3.bf16.msra.mxu1 %v5125_v62  ;;  %v5127_v9 = vld [vmem:[#allocation8 + $0x100] sm:$0xff]   ;;  %p5367_p8 = por %p5366_p6, %p5365_p4 }
  0xa4   : > { %4816 = vmatprep.mubr.bf16.mxu0 %v362_v10  ;;  %4833 = vmatpush3.bf16.msra.mxu0 %v5111_v34  ;;  %v913_v10 = vld [vmem:[#allocation3 + $0x6c] sm:$0x1] }
  0xa5   : > { %4834 = vmatprep.subr.bf16.mxu0 %v5114_v39  ;;  %4554 = vmatprep.subr.bf16.mxu1 %v5127_v9  ;;  %p5368_p12 = pnand %p5367_p8, %p5361_p5 }
  0xa8   : > { %4835 = vmatpush3.bf16.msra.mxu0 %v5114_v39 }
  0xa9   : > { %4836 = vmatprep.subr.bf16.mxu0 %v5117_v46 }
  0xab   : > { %4817 = vmatmul.mubr.bf16.gmra.mxu0 %v364_v11  ;;  %v911_v11 = vsel %vm5729_vm2, 0, %v910_v8 }
  0xac   : > { %4820 = vmatprep.mubr.bf16.mxu0 %v366_v12  ;;  %4837 = vmatpush3.bf16.msra.mxu0 %v5117_v46  ;;  %v914_v12 = vsel %vm5729_vm2, 0, %v913_v10  ;;  %912 = vst [vmem:[#allocation3 + $0x60] sm:$0x1] %v911_v11 }
  0xad   : > { %4838 = vmatprep.subr.bf16.mxu0 %v5120_v53  ;;  %915 = vst [vmem:[#allocation3 + $0x6c] sm:$0x1] %v914_v12 }
  0xb0   : > { %4839 = vmatpush3.bf16.msra.mxu0 %v5120_v53 }
  0xb1   : > { %4840 = vmatprep.subr.bf16.mxu0 %v5123_v57 }
  0xb3   : > { %4821 = vmatmul.mubr.bf16.gmra.mxu0 %v368_v13  ;;  %v5128_v13 = vld [vmem:[#allocation8 + $0xc0] sm:$0xff]  }
  0xb4   : > { %4824 = vmatprep.mubr.bf16.mxu0 %v370_v14  ;;  %4841 = vmatpush3.bf16.msra.mxu0 %v5123_v57  ;;  %v5129_v14 = vld [vmem:[#allocation8 + $0x148] sm:$0xff]  }
  0xb5   : > { %4842 = vmatprep.subr.bf16.mxu0 %v5126_v63  ;;  %4555 = vmatpush3.bf16.msra.mxu1 %v5128_v13 }
  0xb6   : > { %4620 = vmatprep.subr.bf16.mxu1 %v5132_v22 }
  0xb8   : > { %4843 = vmatpush3.bf16.msra.mxu0 %v5126_v63 }
  0xb9   : > { %4844 = vmatprep.subr.bf16.mxu0 %v5129_v14 }
  0xbb   : > { %4825 = vmatmul.mubr.bf16.gmra.mxu0 %v372_v15  ;;  %v945_v15 = vld [vmem:[#allocation3 + $0x74] sm:$0x1] }
  0xbc   : > { %4828 = vmatprep.mubr.bf16.mxu0 %v374_v16  ;;  %4845 = vmatpush3.bf16.msra.mxu0 %v5129_v14  ;;  %v946_v16 = vsel %vm5736_vm4, 0, %v945_v15  ;;  %v1213_v14 = vld [vmem:[#allocation3 + $0x14] sm:$0x1] }
  0xbd   : > { %947 = vst [vmem:[#allocation3 + $0x74] sm:$0x1] %v946_v16  ;;  %4846 = vmatprep.subr.bf16.mxu0 %v5131_v20 }
  0xc0   : > { %4847 = vmatpush3.bf16.msra.mxu0 %v5131_v20 }
  0xc1   : > { %4864 = vmatprep.subr.bf16.mxu0 %v5778_v23 }
  0xc3   : > { %4829 = vmatmul.mubr.bf16.gmra.mxu0 %v5106_v17  ;;  %v942_v17 = vld [vmem:[#allocation3 + $0x68] sm:$0x1] }
  0xc4   : > { %v943_v19 = vsel %vm5736_vm4, 0, %v942_v17 }
  0xc5   : > { %944 = vst [vmem:[#allocation3 + $0x68] sm:$0x1] %v943_v19 }
 0x163   : > { %v4814_v21 = vpop.f32.mrf.mxu0 }
 0x164   : > { %v622_v26 = vmul.f32 %v4814_v21, %v5784_v24 }
 0x165   : > { %v536_v27 = vpop.f32.mrf.mxu0 }
 0x166   : > { %v647_v28 = vadd.f32 %v5791_v25, %v622_v26  ;;  %v620_v29 = vmul.f32 %v5784_v24, %v536_v27 }
 0x167   : > { %v4815_v31 = vpop.f32.mrf.mxu0 }
 0x168   : > { %v667_v32 = vmax.f32 %v647_v28, 0.0  ;;  %v645_v33 = vadd.f32 %v5791_v25, %v620_v29  ;;  %v623_v34 = vmul.f32 %v4815_v31, %v5784_v24 }
 0x169   : > { %v539_v36 = vpop.f32.mrf.mxu0 }
 0x16a   : > { %v4440_v37 = vpack.c.bf16 %v667_v32, %v667_v32  ;;  %v665_v38 = vmax.f32 %v645_v33, 0.0  ;;  %v648_v39 = vadd.f32 %v5791_v25, %v623_v34  ;;  %v621_v40 = vmul.f32 %v5784_v24, %v539_v36 }
 0x16b   : > { %v4818_v41 = vpop.f32.mrf.mxu0 }
 0x16c   : > { %v1018_v42 = vshrl.u32 %v4440_v37, 16  ;;  %v853_v43 = vsel %vm5799_vm5, 0.0, %v665_v38  ;;  %v668_v44 = vmax.f32 %v648_v39, 0.0  ;;  %v646_v46 = vadd.f32 %v5791_v25, %v621_v40 }
 0x16d   : > { %v4438_v45 = vpack.c.bf16 %v853_v43, %v853_v43  ;;  %v626_v47 = vmul.f32 %v4818_v41, %v5784_v24  ;;  %v552_v48 = vpop.f32.mrf.mxu0  ;;  %v1021_v51 = vshll.u32 %v4440_v37, 16  ;;  %v1223_v43 = vld [vmem:[#allocation3 + $0x24] sm:$0xf] }
 0x16e   : > { %v1020_v50 = vrot.slane %v1018_v42, 7  ;;  %v4441_v52 = vpack.c.bf16 %v668_v44, %v668_v44  ;;  %v624_v53 = vmul.f32 %v5784_v24, %v552_v48  ;;  %v666_v58 = vmax.f32 %v646_v46, 0.0 }
 0x16f   : > { %v1001_v56 = vshrl.u32 %v4438_v45, 16  ;;  %v1004_v57 = vshll.u32 %v4438_v45, 16  ;;  %v651_v59 = vadd.f32 %v5791_v25, %v626_v47  ;;  %v4819_v60 = vpop.f32.mrf.mxu0 }
 0x170   : > { %v1023_v61 = vor.u32 %v1021_v51, %v1020_v50  ;;  %v1024_v62 = vrot.slane %v1020_v50, 4  ;;  %v1026_v63 = vshrl.u32 %v4441_v52, 16  ;;  %v1029_v0 = vshll.u32 %v4441_v52, 16 }
 0x171   : > { %v1003_v1 = vrot.slane %v1001_v56, 7  ;;  %v854_v2 = vsel %vm5799_vm5, 0.0, %v666_v58  ;;  %v671_v3 = vmax.f32 %v651_v59, 0.0  ;;  %v649_v4 = vadd.f32 %v5791_v25, %v624_v53  ;;  %v555_v5 = vpop.f32.mrf.mxu0 }
 0x172   : > { %v1210_v6 = vsel %vm5815_vm8, %v1023_v61, %v1209_v55  ;;  %v1028_v8 = vrot.slane %v1026_v63, 7  ;;  %v4439_v9 = vpack.c.bf16 %v854_v2, %v854_v2  ;;  %v627_v10 = vmul.f32 %v4819_v60, %v5784_v24  ;;  %v1216_v55 = vld [vmem:[#allocation3 + $0x18] sm:$0xf] }
 0x173   : > { %1211 = vst [vmem:[#allocation3 + $0xc] sm:$0xf] %v1210_v6  ;;  %v1006_v11 = vor.u32 %v1004_v57, %v1003_v1  ;;  %v1007_v12 = vrot.slane %v1003_v1, 4  ;;  %v4444_v15 = vpack.c.bf16 %v671_v3, %v671_v3  ;;  %v669_v16 = vmax.f32 %v649_v4, 0.0  ;;  %v4822_v17 = vpop.f32.mrf.mxu0 }
 0x174   : > { %v1031_v19 = vor.u32 %v1029_v0, %v1028_v8  ;;  %v1033_v20 = vrot.slane %v1028_v8, 4  ;;  %v1009_v22 = vshrl.u32 %v4439_v9, 16  ;;  %v1012_v21 = vshll.u32 %v4439_v9, 16 }
 0x175   : > { %v1203_v26 = vsel %vm5815_vm8, %v1006_v11, %v1202_v7  ;;  %v1052_v27 = vshrl.u32 %v4444_v15, 16  ;;  %v1055_v28 = vshll.u32 %v4444_v15, 16  ;;  %v4442_v29 = vpack.c.bf16 %v669_v16, %v669_v16  ;;  %v568_v30 = vpop.f32.mrf.mxu0 }
 0x176   : > { %1204 = vst [vmem:[#allocation3] sm:$0xf] %v1203_v26  ;;  %v1032_v31 = vsel %vm5828_vm9, %v1024_v62, %v1031_v19  ;;  %v1214_v32 = vsel %vm5729_vm2, %v1033_v20, %v1213_v14  ;;  %v1011_v33 = vrot.slane %v1009_v22, 7  ;;  %v652_v34 = vadd.f32 %v5791_v25, %v627_v10 }
 0x177   : > { %1212 = vst [vmem:[#allocation3 + $0x10] sm:$0xf] %v1032_v31  ;;  %1215 = vst [vmem:[#allocation3 + $0x14] sm:$0x1] %v1214_v32  ;;  %v1054_v36 = vrot.slane %v1052_v27, 7  ;;  %v1035_v37 = vshrl.u32 %v4442_v29, 16  ;;  %v625_v39 = vmul.f32 %v5784_v24, %v555_v5  ;;  %v4823_v40 = vpop.f32.mrf.mxu0  ;;  %v630_v45 = vmul.f32 %v4822_v17, %v5784_v24 }
 0x178   : > { %v1038_v38 = vshll.u32 %v4442_v29, 16  ;;  %v1014_v41 = vor.u32 %v1012_v21, %v1011_v33  ;;  %v1016_v42 = vrot.slane %v1011_v33, 4  ;;  %v672_v44 = vmax.f32 %v652_v34, 0.0  ;;  %v1220_v33 = vld [vmem:[#allocation3 + $0x20] sm:$0x1] }
 0x179   : > { %v1057_v46 = vor.u32 %v1055_v28, %v1054_v36  ;;  %v1058_v47 = vrot.slane %v1054_v36, 4  ;;  %v5841_v48 = vrot.slane %v1035_v37, 7  ;;  %v650_v50 = vadd.f32 %v5791_v25, %v625_v39  ;;  %v571_v51 = vpop.f32.mrf.mxu0 }
 0x17a   : > { %v1015_v52 = vsel %vm5828_vm9, %v1007_v12, %v1014_v41  ;;  %v1207_v53 = vsel %vm5729_vm2, %v1016_v42, %v1206_v35  ;;  %v4445_v56 = vpack.c.bf16 %v672_v44, %v672_v44  ;;  %v655_v57 = vadd.f32 %v5791_v25, %v630_v45  ;;  %v1227_v12 = vld [vmem:[#allocation3 + $0x2c] sm:$0x1] }
 0x17b   : > { %1205 = vst [vmem:[#allocation3 + $0x4] sm:$0xf] %v1015_v52  ;;  %1208 = vst [vmem:[#allocation3 + $0x8] sm:$0x1] %v1207_v53  ;;  %v1224_v58 = vsel %vm5815_vm8, %v1057_v46, %v1223_v43  ;;  %v1040_v59 = vor.u32 %v1038_v38, %v5841_v48  ;;  %v1041_v60 = vrot.slane %v5841_v48, 4  ;;  %v670_v61 = vmax.f32 %v650_v50, 0.0  ;;  %v4826_v62 = vpop.f32.mrf.mxu0 }
 0x17c   : > { %1225 = vst [vmem:[#allocation3 + $0x24] sm:$0xf] %v1224_v58  ;;  %v1060_v63 = vshrl.u32 %v4445_v56, 16  ;;  %v1063_v0 = vshll.u32 %v4445_v56, 16  ;;  %v675_v1 = vmax.f32 %v655_v57, 0.0  ;;  %v628_v2 = vmul.f32 %v5784_v24, %v568_v30 }
 0x17d   : > { %v1217_v3 = vsel %vm5815_vm8, %v1040_v59, %v1216_v55  ;;  %v4443_v4 = vpack.c.bf16 %v670_v61, %v670_v61  ;;  %v631_v5 = vmul.f32 %v4823_v40, %v5784_v24  ;;  %v629_v6 = vmul.f32 %v5784_v24, %v571_v51  ;;  %v584_v7 = vpop.f32.mrf.mxu0  ;;  %v1237_v38 = vld [vmem:[#allocation3 + $0x3c] sm:$0xf] }
 0x17e   : > { %1218 = vst [vmem:[#allocation3 + $0x18] sm:$0xf] %v1217_v3  ;;  %v1062_v8 = vrot.slane %v1060_v63, 7  ;;  %v4448_v9 = vpack.c.bf16 %v675_v1, %v675_v1  ;;  %v653_v10 = vadd.f32 %v5791_v25, %v628_v2  ;;  %v634_v11 = vmul.f32 %v4826_v62, %v5784_v24  ;;  %v1241_v62 = vld [vmem:[#allocation3 + $0x44] sm:$0x1] }
 0x17f   : > { %v1043_v14 = vshrl.u32 %v4443_v4, 16  ;;  %v1046_v15 = vshll.u32 %v4443_v4, 16  ;;  %v656_v16 = vadd.f32 %v5791_v25, %v631_v5  ;;  %v654_v17 = vadd.f32 %v5791_v25, %v629_v6  ;;  %v4827_v30 = vpop.f32.mrf.mxu0  ;;  %v1234_v4 = vld [vmem:[#allocation3 + $0x38] sm:$0x1] }
 0x180   : > { %v1065_v19 = vor.u32 %v1063_v0, %v1062_v8  ;;  %v1067_v20 = vrot.slane %v1062_v8, 4  ;;  %v1086_v22 = vshrl.u32 %v4448_v9, 16  ;;  %v1089_v21 = vshll.u32 %v4448_v9, 16 }
 0x181   : > { %v1045_v26 = vrot.slane %v1043_v14, 7  ;;  %v673_v27 = vmax.f32 %v653_v10, 0.0  ;;  %v676_v28 = vmax.f32 %v656_v16, 0.0  ;;  %v674_v29 = vmax.f32 %v654_v17, 0.0  ;;  %v587_v50 = vpop.f32.mrf.mxu0 }
 0x182   : > { %v1066_v31 = vsel %vm5828_vm9, %v1058_v47, %v1065_v19  ;;  %v1228_v32 = vsel %vm5729_vm2, %v1067_v20, %v1227_v12  ;;  %v1088_v34 = vrot.slane %v1086_v22, 7  ;;  %v659_v35 = vadd.f32 %v5791_v25, %v634_v11  ;;  %v5888_v19 = vld [vmem:[#allocation3 + $0xc] sm:$0xf] }
 0x183   : > { %1226 = vst [vmem:[#allocation3 + $0x28] sm:$0xf] %v1066_v31  ;;  %1229 = vst [vmem:[#allocation3 + $0x2c] sm:$0x1] %v1228_v32  ;;  %v1048_v36 = vor.u32 %v1046_v15, %v1045_v26  ;;  %v1050_v37 = vrot.slane %v1045_v26, 4  ;;  %v4446_v39 = vpack.c.bf16 %v673_v27, %v673_v27  ;;  %v4449_v40 = vpack.c.bf16 %v676_v28, %v676_v28  ;;  %v4830_v8 = vpop.f32.mrf.mxu0 }
 0x184   : > { %v1091_v41 = vor.u32 %v1089_v21, %v1088_v34  ;;  %v1092_v42 = vrot.slane %v1088_v34, 4  ;;  %v4447_v43 = vpack.c.bf16 %v674_v29, %v674_v29  ;;  %v679_v44 = vmax.f32 %v659_v35, 0.0  ;;  %v1251_v26 = vld [vmem:[#allocation3 + $0x54] sm:$0xf]  ;;  %v5898_v27 = vld [vmem:[#allocation3 + $0x10] sm:$0xf] }
 0x185   : > { %v1049_v45 = vsel %vm5828_vm9, %v1041_v60, %v1048_v36  ;;  %v1221_v46 = vsel %vm5729_vm2, %v1050_v37, %v1220_v33  ;;  %v1069_v47 = vshrl.u32 %v4446_v39, 16  ;;  %v1072_v48 = vshll.u32 %v4446_v39, 16  ;;  %v1230_v60 = vld [vmem:[#allocation3 + $0x30] sm:$0xf]  ;;  %v600_v32 = vpop.f32.mrf.mxu0  ;;  %v5902_v33 = vld [vmem:[#allocation3 + $0x14] sm:$0x1] }
 0x186   : > { %1219 = vst [vmem:[#allocation3 + $0x1c] sm:$0xf] %v1049_v45  ;;  %1222 = vst [vmem:[#allocation3 + $0x20] sm:$0x1] %v1221_v46  ;;  %v1238_v51 = vsel %vm5815_vm8, %v1091_v41, %v1237_v38  ;;  %v1094_v52 = vshrl.u32 %v4449_v40, 16  ;;  %v1097_v53 = vshll.u32 %v4449_v40, 16  ;;  %v4452_v58 = vpack.c.bf16 %v679_v44, %v679_v44 }
 0x187   : > { %v1077_v55 = vshrl.u32 %v4447_v43, 16  ;;  %1239 = vst [vmem:[#allocation3 + $0x3c] sm:$0xf] %v1238_v51  ;;  %v1071_v56 = vrot.slane %v1069_v47, 7  ;;  %v1080_v57 = vshll.u32 %v4447_v43, 16  ;;  %v632_v59 = vmul.f32 %v5784_v24, %v584_v7 }
 0x188   : > { %v1096_v61 = vrot.slane %v1094_v52, 7  ;;  %v635_v0 = vmul.f32 %v4827_v30, %v5784_v24  ;;  %v633_v1 = vmul.f32 %v5784_v24, %v587_v50  ;;  %v1120_v5 = vshrl.u32 %v4452_v58, 16 }
 0x189   : > { %v1079_v63 = vrot.slane %v1077_v55, 7  ;;  %v1074_v2 = vor.u32 %v1072_v48, %v1071_v56  ;;  %v1075_v3 = vrot.slane %v1071_v56, 4  ;;  %v1123_v6 = vshll.u32 %v4452_v58, 16 }
 0x18a   : > { %v1099_v7 = vor.u32 %v1097_v53, %v1096_v61  ;;  %v1101_v10 = vrot.slane %v1096_v61, 4  ;;  %v5884_v15 = vrot.slane %v1120_v5, 7  ;;  %v657_v16 = vadd.f32 %v5791_v25, %v632_v59  ;;  %v1244_v59 = vld [vmem:[#allocation3 + $0x48] sm:$0xf] }
 0x18b   : > { %v1082_v11 = vor.u32 %v1080_v57, %v1079_v63  ;;  %v1084_v12 = vrot.slane %v1079_v63, 4  ;;  %v1231_v14 = vsel %vm5815_vm8, %v1074_v2, %v1230_v60  ;;  %v660_v17 = vadd.f32 %v5791_v25, %v635_v0  ;;  %v4831_v57 = vpop.f32.mrf.mxu0  ;;  %v1255_v63 = vld [vmem:[#allocation3 + $0x5c] sm:$0x1]  ;;  %v5967_v54 = vld [vmem:[#allocation3 + $0x28] sm:$0xf] }
 0x18c   : > { %1232 = vst [vmem:[#allocation3 + $0x30] sm:$0xf] %v1231_v14  ;;  %v1100_v49 = vsel %vm5828_vm9, %v1092_v42, %v1099_v7  ;;  %v1242_v20 = vsel %vm5729_vm2, %v1101_v10, %v1241_v62  ;;  %v1125_v28 = vor.u32 %v1123_v6, %v5884_v15  ;;  %v1126_v29 = vrot.slane %v5884_v15, 4 }
 0x18d   : > { %v1083_v22 = vsel %vm5828_vm9, %v1075_v3, %v1082_v11  ;;  %v1235_v21 = vsel %vm5729_vm2, %v1084_v12, %v1234_v4  ;;  %1240 = vst [vmem:[#allocation3 + $0x40] sm:$0xf] %v1100_v49  ;;  %1243 = vst [vmem:[#allocation3 + $0x44] sm:$0x1] %v1242_v20  ;;  %v677_v30 = vmax.f32 %v657_v16, 0.0  ;;  %v680_v31 = vmax.f32 %v660_v17, 0.0  ;;  %v603_v14 = vpop.f32.mrf.mxu0 }
 0x18e   : > { %1233 = vst [vmem:[#allocation3 + $0x34] sm:$0xf] %v1083_v22  ;;  %1236 = vst [vmem:[#allocation3 + $0x38] sm:$0x1] %v1235_v21  ;;  %v658_v34 = vadd.f32 %v5791_v25, %v633_v1  ;;  %v638_v35 = vmul.f32 %v4830_v8, %v5784_v24  ;;  %v636_v36 = vmul.f32 %v5784_v24, %v600_v32  ;;  %v4262_v37 = vrot.slane %v5888_v19, 9 }
 0x18f   : > { %v1252_v38 = vsel %vm5815_vm8, %v1125_v28, %v1251_v26  ;;  %v4450_v39 = vpack.c.bf16 %v677_v30, %v677_v30  ;;  %v4453_v40 = vpack.c.bf16 %v680_v31, %v680_v31  ;;  %v1961_v42 = vrot.slane %v5898_v27, 5  ;;  %v1248_v49 = vld [vmem:[#allocation3 + $0x50] sm:$0x1] }
 0x190   : > { %1253 = vst [vmem:[#allocation3 + $0x54] sm:$0xf] %v1252_v38  ;;  %v678_v43 = vmax.f32 %v658_v34, 0.0  ;;  %v663_v44 = vadd.f32 %v5791_v25, %v638_v35  ;;  %v661_v45 = vadd.f32 %v5791_v25, %v636_v36  ;;  %v1964_v46 = vrot.slane %v5902_v33, 5 }
 0x191   : > { %v1103_v47 = vshrl.u32 %v4450_v39, 16  ;;  %v1106_v48 = vshll.u32 %v4450_v39, 16  ;;  %v1128_v50 = vshrl.u32 %v4453_v40, 16  ;;  %v1131_v51 = vshll.u32 %v4453_v40, 16  ;;  %v1265_v39 = vld [vmem:[#allocation3 + $0x6c] sm:$0xf] }
 0x192   : > { %v4451_v52 = vpack.c.bf16 %v678_v43, %v678_v43  ;;  %v683_v53 = vmax.f32 %v663_v44, 0.0  ;;  %v681_v55 = vmax.f32 %v661_v45, 0.0  ;;  %v1962_v56 = vsel %vm5912_vm13, %v4262_v37, %v1961_v42  ;;  %v1258_v37 = vld [vmem:[#allocation3 + $0x60] sm:$0xf] }
 0x193   : > { %v1105_v58 = vrot.slane %v1103_v47, 7  ;;  %v1130_v60 = vrot.slane %v1128_v50, 7  ;;  %v1963_v61 = vrot.slane %v1961_v42, 4  ;;  %v639_v62 = vmul.f32 %v4831_v57, %v5784_v24  ;;  %v5958_v57 = vld [vmem:[#allocation3 + $0x18] sm:$0xf] }
 0x194   : > { %v1111_v0 = vshrl.u32 %v4451_v52, 16  ;;  %v1114_v1 = vshll.u32 %v4451_v52, 16  ;;  %v871_v2 = vsel %vm5878_vm12, 0.0, %v683_v53  ;;  %v4454_v3 = vpack.c.bf16 %v681_v55, %v681_v55 }
 0x195   : > { %v1108_v4 = vor.u32 %v1106_v48, %v1105_v58  ;;  %v1109_v5 = vrot.slane %v1105_v58, 4  ;;  %v1133_v6 = vor.u32 %v1131_v51, %v1130_v60  ;;  %v1135_v8 = vrot.slane %v1130_v60, 4  ;;  %v5960_v58 = vld [vmem:[#allocation3 + $0x24] sm:$0xf] }
 0x196   : > { %v1113_v7 = vrot.slane %v1111_v0, 7  ;;  %v4456_v10 = vpack.c.bf16 %v871_v2, %v871_v2  ;;  %v1137_v11 = vshrl.u32 %v4454_v3, 16  ;;  %v1140_v12 = vshll.u32 %v4454_v3, 16  ;;  %v5969_v3 = vld [vmem:[#allocation3 + $0x20] sm:$0x1] }
 0x197   : > { %v1245_v15 = vsel %vm5815_vm8, %v1108_v4, %v1244_v59  ;;  %v1134_v16 = vsel %vm5828_vm9, %v1126_v29, %v1133_v6  ;;  %v1256_v17 = vsel %vm5729_vm2, %v1135_v8, %v1255_v63  ;;  %v1965_v20 = vsel %vm5912_vm13, %v1963_v61, %v1964_v46 }
 0x198   : > { %1246 = vst [vmem:[#allocation3 + $0x48] sm:$0xf] %v1245_v15  ;;  %1254 = vst [vmem:[#allocation3 + $0x58] sm:$0xf] %v1134_v16  ;;  %v1116_v22 = vor.u32 %v1114_v1, %v1113_v7  ;;  %v1118_v21 = vrot.slane %v1113_v7, 4  ;;  %v1154_v26 = vshrl.u32 %v4456_v10, 16  ;;  %v4286_v31 = vcombine.low %v1962_v56, %v1965_v20 }
 0x199   : > { %1257 = vst [vmem:[#allocation3 + $0x5c] sm:$0x1] %v1256_v17  ;;  %v1157_v28 = vshll.u32 %v4456_v10, 16  ;;  %v5933_v30 = vrot.slane %v1137_v11, 7  ;;  %v664_v32 = vadd.f32 %v5791_v25, %v639_v62  ;;  %v637_v29 = vmul.f32 %v5784_v24, %v603_v14  ;;  %v5965_v62 = vld [vmem:[#allocation3 + $0x1c] sm:$0xf] }
 0x19a   : > { %v1117_v34 = vsel %vm5828_vm9, %v1109_v5, %v1116_v22  ;;  %v1249_v35 = vsel %vm5729_vm2, %v1118_v21, %v1248_v49  ;;  %v5941_v36 = vrot.slane %v1154_v26, 7  ;;  %v1744_v38 = vshrl.u32 %v5888_v19, 16  ;;  %4848 = vmatprep.mubr.bf16.mxu0 %v4286_v31  ;;  %v1269_v11 = vld [vmem:[#allocation3 + $0x74] sm:$0x1]  ;;  %v1262_v20 = vld [vmem:[#allocation3 + $0x68] sm:$0x1] }
 0x19b   : > { %1247 = vst [vmem:[#allocation3 + $0x4c] sm:$0xf] %v1117_v34  ;;  %1250 = vst [vmem:[#allocation3 + $0x50] sm:$0x1] %v1249_v35  ;;  %v1142_v40 = vor.u32 %v1140_v12, %v5933_v30  ;;  %v1143_v42 = vrot.slane %v5933_v30, 4  ;;  %v684_v24 = vmax.f32 %v664_v32, 0.0  ;;  %v662_v43 = vadd.f32 %v5791_v25, %v637_v29 }
 0x19c   : > { %v1159_v44 = vor.u32 %v1157_v28, %v5941_v36  ;;  %v1160_v45 = vrot.slane %v5941_v36, 4  ;;  %v1746_v46 = vrot.slane %v1744_v38, 4  ;;  %v1747_v47 = vshll.u32 %v5888_v19, 16  ;;  %v5986_v32 = vld [vmem:[#allocation3 + $0x2c] sm:$0x1] }
 0x19d   : > { %v1259_v48 = vsel %vm5815_vm8, %v1142_v40, %v1258_v37  ;;  %v872_v50 = vsel %vm5878_vm12, 0.0, %v684_v24  ;;  %v682_v51 = vmax.f32 %v662_v43, 0.0  ;;  %v1753_v52 = vshll.u32 %v5898_v27, 16  ;;  %v5133_v40 = vld [vmem:[#allocation8 + $0x38] sm:$0xff]  }
 0x19e   : > { %v1266_v53 = vsel %vm5815_vm8, %v1159_v44, %v1265_v39  ;;  %1260 = vst [vmem:[#allocation3 + $0x60] sm:$0xf] %v1259_v48  ;;  %v4457_v25 = vpack.c.bf16 %v872_v50, %v872_v50  ;;  %v1749_v55 = vrot.slane %v1747_v47, 5  ;;  %v1757_v56 = vshrl.u32 %v5898_v27, 16  ;;  %v5135_v47 = vld [vmem:[#allocation8 + $0x70] sm:$0xff]  }
 0x19f   : > { %1267 = vst [vmem:[#allocation3 + $0x6c] sm:$0xf] %v1266_v53  ;;  %v4455_v59 = vpack.c.bf16 %v682_v51, %v682_v51  ;;  %v1755_v60 = vrot.slane %v1753_v52, 5  ;;  %v1763_v9 = vshll.u32 %v5902_v33, 16  ;;  %v4270_v61 = vcombine.low %v5888_v19, %v5898_v27  ;;  %v5136_v48 = vld [vmem:[#allocation8 + $0xb0] sm:$0xff]  }
 0x1a0   : > { %v1162_v63 = vshrl.u32 %v4457_v25, 16  ;;  %v1165_v0 = vshll.u32 %v4457_v25, 16  ;;  %v1750_v1 = vor.u32 %v1749_v55, %v1746_v46  ;;  %v1759_v2 = vrot.slane %v1757_v56, 4 }
 0x1a1   : > { %v1145_v4 = vshrl.u32 %v4455_v59, 16  ;;  %v1148_v5 = vshll.u32 %v4455_v59, 16  ;;  %v1765_v33 = vrot.slane %v1763_v9, 5  ;;  %v4263_v19 = vrot.slane %v5958_v57, 9  ;;  %v5138_v9 = vld [vmem:[#allocation8 + $0x30] sm:$0xff]  }
 0x1a2   : > { %v1164_v27 = vrot.slane %v1162_v63, 7  ;;  %v1751_v8 = vrot.slane %v1750_v1, 4  ;;  %v1760_v7 = vor.u32 %v1759_v2, %v1755_v60  ;;  %v1968_v10 = vrot.slane %v5965_v62, 5  ;;  %v6014_v63 = vld [vmem:[#allocation3 + $0x34] sm:$0xf] }
 0x1a3   : > { %v1147_v12 = vrot.slane %v1145_v4, 7  ;;  %v1971_v14 = vrot.slane %v5969_v3, 5  ;;  %v4264_v15 = vrot.slane %v5960_v58, 9  ;;  %v1975_v16 = vrot.slane %v5967_v54, 5  ;;  %v5140_v4 = vld [vmem:[#allocation8 + $0x68] sm:$0xff]  }
 0x1a4   : > { %v1167_v17 = vor.u32 %v1165_v0, %v1164_v27  ;;  %v1169_v49 = vrot.slane %v1164_v27, 4  ;;  %v1756_v22 = vsel %vm5973_vm0, %v1751_v8, %v1755_v60  ;;  %v1761_v21 = vrot.slane %v1760_v7, 4  ;;  %v6020_v27 = vld [vmem:[#allocation3 + $0x30] sm:$0xf]  ;;  %v6022_v8 = vld [vmem:[#allocation3 + $0x38] sm:$0x1] }
 0x1a5   : > { %v1150_v26 = vor.u32 %v1148_v5, %v1147_v12  ;;  %v1152_v28 = vrot.slane %v1147_v12, 4  ;;  %v1969_v30 = vsel %vm5912_vm13, %v4263_v19, %v1968_v10  ;;  %v1970_v31 = vrot.slane %v1968_v10, 4 }
 0x1a6   : > { %v1168_v29 = vsel %vm5828_vm9, %v1160_v45, %v1167_v17  ;;  %v1270_v34 = vsel %vm5729_vm2, %v1169_v49, %v1269_v11  ;;  %v1766_v35 = vsel %vm5973_vm0, %v1761_v21, %v1765_v33  ;;  %v1976_v36 = vsel %vm5912_vm13, %v4264_v15, %v1975_v16  ;;  %v5143_v15 = vld [vmem:[#allocation8 + $0x28] sm:$0xff]  }
 0x1a7   : > { %1268 = vst [vmem:[#allocation3 + $0x70] sm:$0xf] %v1168_v29  ;;  %1271 = vst [vmem:[#allocation3 + $0x74] sm:$0x1] %v1270_v34  ;;  %v1151_v37 = vsel %vm5828_vm9, %v1143_v42, %v1150_v26  ;;  %v1263_v38 = vsel %vm5729_vm2, %v1152_v28, %v1262_v20  ;;  %v4278_v39 = vcombine.low %v1756_v22, %v1766_v35  ;;  %v1977_v44 = vrot.slane %v1975_v16, 4 }
 0x1a8   : > { %v1972_v24 = vsel %vm5912_vm13, %v1970_v31, %v1971_v14  ;;  %1261 = vst [vmem:[#allocation3 + $0x64] sm:$0xf] %v1151_v37  ;;  %1264 = vst [vmem:[#allocation3 + $0x68] sm:$0x1] %v1263_v38  ;;  %v1978_v45 = vrot.slane %v5986_v32, 5  ;;  %v1768_v46 = vshrl.u32 %v5958_v57, 16  ;;  %v4271_v53 = vcombine.low %v5958_v57, %v5965_v62 }
 0x1a9   : > { %v4287_v43 = vcombine.low %v1969_v30, %v1972_v24  ;;  %2336 = vmatprep.mubr.bf16.mxu1 %v4278_v39  ;;  %v1771_v13 = vshll.u32 %v5958_v57, 16  ;;  %v1777_v18 = vshll.u32 %v5965_v62, 16  ;;  %v1781_v42 = vshrl.u32 %v5965_v62, 16  ;;  %v5141_v14 = vld [vmem:[#allocation8 + $0xa0] sm:$0xff]   ;;  %v6026_v22 = vld [vmem:[#allocation3 + $0x40] sm:$0xf] }
 0x1aa   : > { %v1787_v50 = vshll.u32 %v5969_v3, 16  ;;  %2337 = vmatmul.mubr.bf16.vlgmr.msra.gmra.mxu1 %v4270_v61  ;;  %v1979_v51 = vsel %vm5912_vm13, %v1977_v44, %v1978_v45  ;;  %v1770_v52 = vrot.slane %v1768_v46, 4  ;;  %v1792_v25 = vshrl.u32 %v5960_v58, 16  ;;  %v5139_v3 = vld [vmem:[#allocation8 + $0xa8] sm:$0xff]   ;;  %v6031_v31 = vld [vmem:[#allocation3 + $0x3c] sm:$0xf] }
 0x1ab   : > { %4849 = vmatmul.mubr.bf16.vlgmr.msra.gmra.mxu0 %v4287_v43  ;;  %4621 = vmatpush3.bf16.msra.mxu1 %v5133_v40  ;;  %v4288_v55 = vcombine.low %v1976_v36, %v1979_v51  ;;  %v1773_v56 = vrot.slane %v1771_v13, 5  ;;  %v1779_v59 = vrot.slane %v1777_v18, 5  ;;  %v1783_v60 = vrot.slane %v1781_v42, 4  ;;  %v5145_v24 = vld [vmem:[#allocation8 + $0x60] sm:$0xff]   ;;  %v6051_v51 = vld [vmem:[#allocation3 + $0x48] sm:$0xf] }
 0x1ac   : > { %4865 = vmatpush3.bf16.msra.mxu0 %v5778_v23  ;;  %v1789_v61 = vrot.slane %v1787_v50, 5  ;;  %4622 = vmatprep.subr.bf16.mxu1 %v5135_v47  ;;  %v1794_v0 = vrot.slane %v1792_v25, 4  ;;  %v1795_v1 = vshll.u32 %v5960_v58, 16  ;;  %v1801_v2 = vshll.u32 %v5967_v54, 16  ;;  %v5144_v47 = vld [vmem:[#allocation8 + $0x98] sm:$0xff]  }
 0x1ad   : > { %4866 = vmatprep.subr.bf16.mxu0 %v5136_v48  ;;  %4852 = vmatprep.mubr.bf16.mxu0 %v4288_v55  ;;  %v1774_v5 = vor.u32 %v1773_v56, %v1770_v52  ;;  %v1784_v33 = vor.u32 %v1783_v60, %v1779_v59  ;;  %v1805_v23 = vshrl.u32 %v5967_v54, 16  ;;  %v1811_v19 = vshll.u32 %v5986_v32, 16  ;;  %v6033_v32 = vld [vmem:[#allocation3 + $0x44] sm:$0x1]  ;;  %v6053_v52 = vld [vmem:[#allocation3 + $0x4c] sm:$0xf] }
 0x1ae   : > { %v1797_v7 = vrot.slane %v1795_v1, 5  ;;  %v1803_v10 = vrot.slane %v1801_v2, 5  ;;  %v4265_v11 = vrot.slane %v6020_v27, 9  ;;  %v1982_v12 = vrot.slane %v6014_v63, 5  ;;  %v6063_v60 = vld [vmem:[#allocation3 + $0x50] sm:$0x1] }
 0x1af   : > { %v1775_v16 = vrot.slane %v1774_v5, 4  ;;  %v1785_v17 = vrot.slane %v1784_v33, 4  ;;  %4623 = vmatpush3.bf16.msra.mxu1 %v5138_v9  ;;  %v1807_v49 = vrot.slane %v1805_v23, 4  ;;  %v1813_v20 = vrot.slane %v1811_v19, 5  ;;  %v5150_v9 = vld [vmem:[#allocation8 + $0x58] sm:$0xff]  }
 0x1b0   : > { %4867 = vmatpush3.bf16.msra.mxu0 %v5136_v48  ;;  %v1798_v21 = vor.u32 %v1797_v7, %v1794_v0  ;;  %v1983_v26 = vsel %vm5912_vm13, %v4265_v11, %v1982_v12  ;;  %v1984_v28 = vrot.slane %v1982_v12, 4  ;;  %v1985_v30 = vrot.slane %v6022_v8, 5  ;;  %4624 = vmatprep.subr.bf16.mxu1 %v5140_v4  ;;  %v5148_v48 = vld [vmem:[#allocation8 + $0x20] sm:$0xff]   ;;  %v5153_v4 = vld [vmem:[#allocation8 + $0x18] sm:$0xff]   ;;  %v5146_v7 = vld [vmem:[#allocation8 + $0x90] sm:$0xff]  }
 0x1b1   : > { %4868 = vmatprep.subr.bf16.mxu0 %v5139_v3  ;;  %v1780_v29 = vsel %vm5973_vm0, %v1775_v16, %v1779_v59  ;;  %v1790_v34 = vsel %vm5973_vm0, %v1785_v17, %v1789_v61  ;;  %v1808_v35 = vor.u32 %v1807_v49, %v1803_v10  ;;  %v4266_v36 = vrot.slane %v6031_v31, 9 }
 0x1b2   : > { %v4279_v37 = vcombine.low %v1780_v29, %v1790_v34  ;;  %v1799_v38 = vrot.slane %v1798_v21, 4  ;;  %v1986_v39 = vsel %vm5912_vm13, %v1984_v28, %v1985_v30  ;;  %v1989_v40 = vrot.slane %v6026_v22, 5  ;;  %v6079_v29 = vld [vmem:[#allocation3 + $0x54] sm:$0xf]  ;;  %v6081_v34 = vld [vmem:[#allocation3 + $0x5c] sm:$0x1] }
 0x1b3   : > { %v1809_v43 = vrot.slane %v1808_v35, 4  ;;  %v4289_v44 = vcombine.low %v1983_v26, %v1986_v39  ;;  %v1992_v45 = vrot.slane %v6033_v32, 5  ;;  %v4272_v46 = vcombine.low %v5960_v58, %v5967_v54  ;;  %4625 = vmatpush3.bf16.msra.mxu1 %v5143_v15  ;;  %v6083_v35 = vld [vmem:[#allocation3] sm:$0xf]  ;;  %v6104_v54 = vld [vmem:[#allocation3 + $0x4] sm:$0xf] }
 0x1b4   : > { %4869 = vmatpush3.bf16.msra.mxu0 %v5139_v3  ;;  %2344 = vmatprep.mubr.bf16.mxu1 %v4279_v37  ;;  %v1804_v13 = vsel %vm5973_vm0, %v1799_v38, %v1803_v10  ;;  %v1990_v18 = vsel %vm5912_vm13, %v4266_v36, %v1989_v40  ;;  %v1991_v42 = vrot.slane %v1989_v40, 4  ;;  %v1816_v50 = vshrl.u32 %v6020_v27, 16  ;;  %v5156_v10 = vld [vmem:[#allocation8 + $0x50] sm:$0xff]   ;;  %v6088_v40 = vld [vmem:[#allocation3 + $0x60] sm:$0xf] }
 0x1b5   : > { %4870 = vmatprep.subr.bf16.mxu0 %v5141_v14  ;;  %2345 = vmatmul.mubr.bf16.gmra.mxu1 %v4271_v53  ;;  %v1814_v25 = vsel %vm5973_vm0, %v1809_v43, %v1813_v20  ;;  %v1819_v55 = vshll.u32 %v6020_v27, 16  ;;  %v1825_v56 = vshll.u32 %v6014_v63, 16  ;;  %v1829_v59 = vshrl.u32 %v6014_v63, 16  ;;  %v5159_v20 = vld [vmem:[#allocation8 + $0x10] sm:$0xff]  }
 0x1b6   : > { %4853 = vmatmul.mubr.bf16.gmra.mxu0 %v4289_v44  ;;  %v4280_v61 = vcombine.low %v1804_v13, %v1814_v25  ;;  %v1993_v0 = vsel %vm5912_vm13, %v1991_v42, %v1992_v45  ;;  %v1818_v1 = vrot.slane %v1816_v50, 4  ;;  %v1835_v57 = vshll.u32 %v6022_v8, 16  ;;  %4626 = vmatprep.subr.bf16.mxu1 %v5145_v24  ;;  %v5149_v24 = vld [vmem:[#allocation8 + $0x88] sm:$0xff]   ;;  %v6099_v13 = vld [vmem:[#allocation3 + $0x68] sm:$0x1] }
 0x1b7   : > { %v4290_v62 = vcombine.low %v1990_v18, %v1993_v0  ;;  %v1821_v53 = vrot.slane %v1819_v55, 5  ;;  %v1827_v2 = vrot.slane %v1825_v56, 5  ;;  %v1831_v3 = vrot.slane %v1829_v59, 4  ;;  %4627 = vmatpush3.bf16.msra.mxu1 %v5148_v48  ;;  %v6097_v48 = vld [vmem:[#allocation3 + $0x64] sm:$0xf] }
 0x1b8   : > { %4871 = vmatpush3.bf16.msra.mxu0 %v5141_v14  ;;  %2352 = vmatprep.mubr.bf16.mxu1 %v4280_v61  ;;  %v1837_v5 = vrot.slane %v1835_v57, 5  ;;  %v4267_v33 = vrot.slane %v6051_v51, 9  ;;  %v1996_v23 = vrot.slane %v6053_v52, 5  ;;  %v1999_v19 = vrot.slane %v6063_v60, 5  ;;  %v6101_v25 = vld [vmem:[#allocation3 + $0x58] sm:$0xf] }
 0x1b9   : > { %4872 = vmatprep.subr.bf16.mxu0 %v5144_v47  ;;  %4856 = vmatprep.mubr.bf16.mxu0 %v4290_v62  ;;  %v1822_v8 = vor.u32 %v1821_v53, %v1818_v1  ;;  %v1832_v11 = vor.u32 %v1831_v3, %v1827_v2  ;;  %v4273_v12 = vcombine.low %v6020_v27, %v6014_v63  ;;  %v1840_v14 = vshrl.u32 %v6031_v31, 16  ;;  %v5166_v61 = vld [vmem:[#allocation8 + $0x8] sm:$0xff]  }
 0x1ba   : > { %4628 = vmatprep.subr.bf16.mxu1 %v5150_v9  ;;  %v1997_v15 = vsel %vm5912_vm13, %v4267_v33, %v1996_v23  ;;  %v1998_v16 = vrot.slane %v1996_v23, 4  ;;  %v1843_v17 = vshll.u32 %v6031_v31, 16  ;;  %v1849_v49 = vshll.u32 %v6026_v22, 16  ;;  %v6109_v9 = vld [vmem:[#allocation3 + $0x8] sm:$0x1] }
 0x1bb   : > { %v1823_v21 = vrot.slane %v1822_v8, 4  ;;  %v1833_v26 = vrot.slane %v1832_v11, 4  ;;  %v1842_v28 = vrot.slane %v1840_v14, 4  ;;  %v1853_v30 = vshrl.u32 %v6026_v22, 16  ;;  %4629 = vmatpush3.bf16.msra.mxu1 %v5153_v4 }
 0x1bc   : > { %4873 = vmatpush3.bf16.msra.mxu0 %v5144_v47  ;;  %v2000_v36 = vsel %vm5912_vm13, %v1998_v16, %v1999_v19  ;;  %v1845_v37 = vrot.slane %v1843_v17, 5  ;;  %v1851_v38 = vrot.slane %v1849_v49, 5  ;;  %v1859_v39 = vshll.u32 %v6033_v32, 16  ;;  %4630 = vmatprep.subr.bf16.mxu1 %v5156_v10  ;;  %v5163_v32 = vld [vmem:[#allocation8 + $0x48] sm:$0xff]   ;;  %v5170_v16 = vld [vmem:[#allocation8 + $0x40] sm:$0xff]  }
 0x1bd   : > { %4874 = vmatprep.subr.bf16.mxu0 %v5146_v7  ;;  %2353 = vmatmul.mubr.bf16.gmra.mxu1 %v4272_v46  ;;  %v1828_v43 = vsel %vm5973_vm0, %v1823_v21, %v1827_v2  ;;  %v1838_v44 = vsel %vm5973_vm0, %v1833_v26, %v1837_v5  ;;  %v4291_v45 = vcombine.low %v1997_v15, %v2000_v36  ;;  %v1855_v47 = vrot.slane %v1853_v30, 4  ;;  %v5151_v5 = vld [vmem:[#allocation8 + $0x80] sm:$0xff]   ;;  %v5154_v15 = vld [vmem:[#allocation8 + $0x1f8] sm:$0xff]   ;;  %v6132_v26 = vld [vmem:[#allocation3 + $0xc] sm:$0xf] }
 0x1be   : > { %v4281_v18 = vcombine.low %v1828_v43, %v1838_v44  ;;  %v1846_v42 = vor.u32 %v1845_v37, %v1842_v28  ;;  %v1861_v50 = vrot.slane %v1859_v39, 5  ;;  %v4268_v58 = vrot.slane %v6079_v29, 9  ;;  %v6134_v28 = vld [vmem:[#allocation3 + $0x10] sm:$0xf]  ;;  %v5173_v30 = vld [vmem:[#allocation8] sm:$0xff]  }
 0x1bf   : > { %4857 = vmatmul.mubr.bf16.gmra.mxu0 %v4291_v45  ;;  %v1856_v46 = vor.u32 %v1855_v47, %v1851_v38  ;;  %v2003_v55 = vrot.slane %v6101_v25, 5  ;;  %v2006_v56 = vrot.slane %v6081_v34, 5  ;;  %v4269_v59 = vrot.slane %v6088_v40, 9  ;;  %4631 = vmatpush3.bf16.msra.mxu1 %v5159_v20  ;;  %v6152_v44 = vld [vmem:[#allocation8 + $0x238] sm:$0xff]  }
 0x1c0   : > { %2360 = vmatprep.mubr.bf16.mxu1 %v4281_v18  ;;  %4875 = vmatpush3.bf16.msra.mxu0 %v5146_v7  ;;  %v1847_v0 = vrot.slane %v1846_v42, 4  ;;  %v2010_v1 = vrot.slane %v6097_v48, 5  ;;  %v2013_v57 = vrot.slane %v6099_v13, 5  ;;  %v4230_v62 = vrot.slane %v6083_v35, 9  ;;  %v6156_v42 = vld [vmem:[#allocation3 + $0x20] sm:$0x1] }
 0x1c1   : > { %v1857_v53 = vrot.slane %v1856_v46, 4  ;;  %v2004_v2 = vsel %vm5912_vm13, %v4268_v58, %v2003_v55  ;;  %v2005_v3 = vrot.slane %v2003_v55, 4  ;;  %4876 = vmatprep.subr.bf16.mxu0 %v5149_v24  ;;  %v1520_v4 = vrot.slane %v6104_v54, 5  ;;  %4632 = vmatprep.subr.bf16.mxu1 %v5163_v32 }
 0x1c2   : > { %v1852_v33 = vsel %vm5973_vm0, %v1847_v0, %v1851_v38  ;;  %v2011_v23 = vsel %vm5912_vm13, %v4269_v59, %v2010_v1  ;;  %v2012_v19 = vrot.slane %v2010_v1, 4  ;;  %v1523_v7 = vrot.slane %v6109_v9, 5 }
 0x1c3   : > { %v1862_v10 = vsel %vm5973_vm0, %v1857_v53, %v1861_v50  ;;  %v2007_v8 = vsel %vm5912_vm13, %v2005_v3, %v2006_v56  ;;  %v1521_v11 = vsel %vm5912_vm13, %v4230_v62, %v1520_v4  ;;  %v1522_v14 = vrot.slane %v1520_v4, 4  ;;  %4633 = vmatpush3.bf16.msra.mxu1 %v5166_v61 }
 0x1c4   : > { %v4282_v17 = vcombine.low %v1852_v33, %v1862_v10  ;;  %v4292_v49 = vcombine.low %v2004_v2, %v2007_v8  ;;  %v2014_v20 = vsel %vm5912_vm13, %v2012_v19, %v2013_v57  ;;  %4877 = vmatpush3.bf16.msra.mxu0 %v5149_v24  ;;  %v4274_v21 = vcombine.low %v6031_v31, %v6026_v22  ;;  %v6143_v24 = vld [vmem:[#allocation3 + $0x14] sm:$0x1]  ;;  %v6145_v22 = vld [vmem:[#allocation3 + $0x18] sm:$0xf]  ;;  %v6173_v10 = vld [vmem:[#allocation3 + $0x24] sm:$0xf] }
 0x1c5   : > { %2361 = vmatmul.mubr.bf16.gmra.mxu1 %v4273_v12  ;;  %v4293_v36 = vcombine.low %v2011_v23, %v2014_v20  ;;  %v1524_v37 = vsel %vm5912_vm13, %v1522_v14, %v1523_v7  ;;  %4878 = vmatprep.subr.bf16.mxu0 %v5151_v5  ;;  %v1864_v38 = vshrl.u32 %v6051_v51, 16  ;;  %v1867_v39 = vshll.u32 %v6051_v51, 16  ;;  %v6150_v12 = vld [vmem:[#allocation3 + $0x1c] sm:$0xf]  ;;  %v5155_v7 = vld [vmem:[#allocation8 + $0x1b8] sm:$0xff]  }
 0x1c6   : > { %2368 = vmatprep.mubr.bf16.mxu1 %v4282_v17  ;;  %4860 = vmatprep.mubr.bf16.mxu0 %v4292_v49  ;;  %v4254_v31 = vcombine.low %v1521_v11, %v1524_v37  ;;  %v1873_v43 = vshll.u32 %v6053_v52, 16  ;;  %v1877_v63 = vshrl.u32 %v6053_v52, 16  ;;  %v1883_v27 = vshll.u32 %v6063_v60, 16 }
 0x1c7   : > { %4861 = vmatmul.mubr.bf16.gmra.mxu0 %v4293_v36  ;;  %v1866_v45 = vrot.slane %v1864_v38, 4  ;;  %v1869_v47 = vrot.slane %v1867_v39, 5  ;;  %v4231_v32 = vrot.slane %v6132_v26, 9  ;;  %v1527_v18 = vrot.slane %v6134_v28, 5  ;;  %4634 = vmatprep.subr.bf16.mxu1 %v5170_v16  ;;  %v5160_v38 = vld [vmem:[#allocation8 + $0x1b0] sm:$0xff]  }
 0x1c8   : > { %4880 = vmatprep.mubr.bf16.mxu0 %v4254_v31  ;;  %4879 = vmatpush3.bf16.msra.mxu0 %v5151_v5  ;;  %v1875_v50 = vrot.slane %v1873_v43, 5  ;;  %v1879_v58 = vrot.slane %v1877_v63, 4  ;;  %v1885_v46 = vrot.slane %v1883_v27, 5  ;;  %v1530_v60 = vrot.slane %v6143_v24, 5  ;;  %v6190_v43 = vld [vmem:[#allocation3 + $0x38] sm:$0x1] }
 0x1c9   : > { %v1870_v55 = vor.u32 %v1869_v47, %v1866_v45  ;;  %v1528_v56 = vsel %vm5912_vm13, %v4231_v32, %v1527_v18  ;;  %v1529_v59 = vrot.slane %v1527_v18, 4  ;;  %4700 = vmatprep.subr.bf16.mxu0 %v5154_v15  ;;  %v4232_v61 = vrot.slane %v6145_v22, 9  ;;  %4635 = vmatpush3.bf16.msra.mxu1 %v5173_v30  ;;  %v6178_v15 = vld [vmem:[#allocation3 + $0x28] sm:$0xf]  ;;  %v6188_v30 = vld [vmem:[#allocation3 + $0x34] sm:$0xf] }
 0x1ca   : > { %v1880_v0 = vor.u32 %v1879_v58, %v1875_v50  ;;  %v1534_v1 = vrot.slane %v6150_v12, 5  ;;  %v1537_v57 = vrot.slane %v6156_v42, 5  ;;  %v4275_v62 = vcombine.low %v6051_v51, %v6053_v52  ;;  %4896 = vmatprep.subr.bf16.mxu1 %v6152_v44  ;;  %v5157_v52 = vld [vmem:[#allocation8 + $0x1f0] sm:$0xff]  }
 0x1cb   : > { %v1871_v53 = vrot.slane %v1870_v55, 4  ;;  %v1531_v2 = vsel %vm5912_vm13, %v1529_v59, %v1530_v60  ;;  %v1888_v3 = vshrl.u32 %v6079_v29, 16  ;;  %v1891_v4 = vshll.u32 %v6079_v29, 16 }
 0x1cc   : > { %v1881_v5 = vrot.slane %v1880_v0, 4  ;;  %v4255_v33 = vcombine.low %v1528_v56, %v1531_v2  ;;  %v1535_v23 = vsel %vm5912_vm13, %v4232_v61, %v1534_v1  ;;  %v1536_v19 = vrot.slane %v1534_v1, 4 }
 0x1cd   : > { %2369 = vmatmul.mubr.bf16.gmra.mxu1 %v4274_v21  ;;  %v1876_v51 = vsel %vm5973_vm0, %v1871_v53, %v1875_v50  ;;  %v1890_v8 = vrot.slane %v1888_v3, 4  ;;  %v1893_v11 = vrot.slane %v1891_v4, 5  ;;  %v1897_v14 = vshll.u32 %v6101_v25, 16  ;;  %v6186_v21 = vld [vmem:[#allocation3 + $0x2c] sm:$0x1]  ;;  %v5161_v50 = vld [vmem:[#allocation8 + $0x1e8] sm:$0xff]  }
 0x1ce   : > { %v1886_v16 = vsel %vm5973_vm0, %v1881_v5, %v1885_v46  ;;  %v1538_v17 = vsel %vm5912_vm13, %v1536_v19, %v1537_v57  ;;  %v1901_v49 = vshrl.u32 %v6101_v25, 16  ;;  %v1907_v20 = vshll.u32 %v6081_v34, 16  ;;  %v6194_v34 = vld [vmem:[#allocation3 + $0x30] sm:$0xf]  ;;  %v5162_v3 = vld [vmem:[#allocation8 + $0x1a8] sm:$0xff]   ;;  %v5164_v4 = vld [vmem:[#allocation8 + $0x1e0] sm:$0xff]  }
 0x1cf   : > { %v4283_v36 = vcombine.low %v1876_v51, %v1886_v16  ;;  %4881 = vmatmul.mubr.bf16.vlgmr.msra.gmra.mxu0 %v4255_v33  ;;  %v4256_v37 = vcombine.low %v1535_v23, %v1538_v17  ;;  %v1894_v39 = vor.u32 %v1893_v11, %v1890_v8  ;;  %v1899_v31 = vrot.slane %v1897_v14, 5  ;;  %v6218_v51 = vld [vmem:[#allocation3 + $0x44] sm:$0x1]  ;;  %v6224_v16 = vld [vmem:[#allocation3 + $0x48] sm:$0xf] }
 0x1d0   : > { %4701 = vmatpush3.bf16.msra.mxu0 %v5155_v7  ;;  %v1903_v63 = vrot.slane %v1901_v49, 4  ;;  %v1909_v27 = vrot.slane %v1907_v20, 5  ;;  %v4233_v45 = vrot.slane %v6173_v10, 9  ;;  %v1541_v47 = vrot.slane %v6178_v15, 5 }
 0x1d1   : > { %2376 = vmatprep.mubr.bf16.mxu1 %v4283_v36  ;;  %4884 = vmatprep.mubr.bf16.mxu0 %v4256_v37  ;;  %v1895_v32 = vrot.slane %v1894_v39, 4  ;;  %v1544_v18 = vrot.slane %v6186_v21, 5  ;;  %v4234_v58 = vrot.slane %v6194_v34, 9  ;;  %v1548_v46 = vrot.slane %v6188_v30, 5  ;;  %v6227_v37 = vld [vmem:[#allocation3 + $0x50] sm:$0x1] }
 0x1d2   : > { %4702 = vmatprep.subr.bf16.mxu0 %v5157_v52  ;;  %v1904_v60 = vor.u32 %v1903_v63, %v1899_v31  ;;  %v1542_v55 = vsel %vm5912_vm13, %v4233_v45, %v1541_v47  ;;  %v1543_v56 = vrot.slane %v1541_v47, 4  ;;  %v1551_v59 = vrot.slane %v6190_v43, 5  ;;  %v6232_v45 = vld [vmem:[#allocation3 + $0x4c] sm:$0xf] }
 0x1d3   : > { %v1900_v61 = vsel %vm5973_vm0, %v1895_v32, %v1899_v31  ;;  %v1549_v0 = vsel %vm5912_vm13, %v4234_v58, %v1548_v46  ;;  %v1550_v1 = vrot.slane %v1548_v46, 4  ;;  %v4276_v57 = vcombine.low %v6079_v29, %v6101_v25  ;;  %v6216_v25 = vld [vmem:[#allocation3 + $0x40] sm:$0xf] }
 0x1d4   : > { %4703 = vmatpush3.bf16.msra.mxu0 %v5160_v38  ;;  %v1905_v53 = vrot.slane %v1904_v60, 4  ;;  %v1545_v2 = vsel %vm5912_vm13, %v1543_v56, %v1544_v18  ;;  %v1912_v5 = vshrl.u32 %v6088_v40, 16  ;;  %v1915_v33 = vshll.u32 %v6088_v40, 16  ;;  %v5167_v38 = vld [vmem:[#allocation8 + $0x1a0] sm:$0xff]   ;;  %v5168_v18 = vld [vmem:[#allocation8 + $0x1d8] sm:$0xff]  }
 0x1d5   : > { %2377 = vmatmul.mubr.bf16.gmra.mxu1 %v4275_v62  ;;  %v4257_v23 = vcombine.low %v1542_v55, %v1545_v2  ;;  %4704 = vmatprep.subr.bf16.mxu0 %v5161_v50  ;;  %v1552_v19 = vsel %vm5912_vm13, %v1550_v1, %v1551_v59  ;;  %v1921_v7 = vshll.u32 %v6097_v48, 16  ;;  %v1925_v29 = vshrl.u32 %v6097_v48, 16  ;;  %v6222_v62 = vld [vmem:[#allocation3 + $0x3c] sm:$0xf]  ;;  %v5169_v2 = vld [vmem:[#allocation8 + $0x198] sm:$0xff]  }
 0x1d6   : > { %v1910_v52 = vsel %vm5973_vm0, %v1905_v53, %v1909_v27  ;;  %v4258_v8 = vcombine.low %v1549_v0, %v1552_v19  ;;  %v1914_v11 = vrot.slane %v1912_v5, 4  ;;  %v1917_v14 = vrot.slane %v1915_v33, 5  ;;  %v6254_v19 = vld [vmem:[#allocation3 + $0x5c] sm:$0x1] }
 0x1d7   : > { %v4284_v17 = vcombine.low %v1900_v61, %v1910_v52  ;;  %4885 = vmatmul.mubr.bf16.gmra.mxu0 %v4257_v23  ;;  %v1923_v49 = vrot.slane %v1921_v7, 5  ;;  %v1927_v20 = vrot.slane %v1925_v29, 4  ;;  %v1931_v36 = vshll.u32 %v6099_v13, 16  ;;  %v6256_v7 = vld [vmem:[#allocation3 + $0x18] sm:$0xf] }
 0x1d8   : > { %4888 = vmatprep.mubr.bf16.mxu0 %v4258_v8  ;;  %4705 = vmatpush3.bf16.msra.mxu0 %v5162_v3  ;;  %v1918_v39 = vor.u32 %v1917_v14, %v1914_v11  ;;  %v4235_v31 = vrot.slane %v6222_v62, 9  ;;  %v1555_v63 = vrot.slane %v6216_v25, 5  ;;  %v1558_v27 = vrot.slane %v6218_v51, 5  ;;  %v6260_v14 = vld [vmem:[#allocation3 + $0x1c] sm:$0xf] }
 0x1d9   : > { %2384 = vmatprep.mubr.bf16.mxu1 %v4284_v17  ;;  %4706 = vmatprep.subr.bf16.mxu0 %v5164_v4  ;;  %v1928_v47 = vor.u32 %v1927_v20, %v1923_v49  ;;  %v1933_v32 = vrot.slane %v1931_v36, 5  ;;  %v4236_v13 = vrot.slane %v6224_v16, 9  ;;  %v1562_v50 = vrot.slane %v6232_v45, 5  ;;  %v6264_v36 = vld [vmem:[#allocation3 + $0x58] sm:$0xf] }
 0x1da   : > { %v1919_v58 = vrot.slane %v1918_v39, 4  ;;  %v1556_v46 = vsel %vm5912_vm13, %v4235_v31, %v1555_v63  ;;  %v1557_v60 = vrot.slane %v1555_v63, 4  ;;  %v1565_v55 = vrot.slane %v6227_v37, 5  ;;  %v5174_v39 = vld [vmem:[#allocation8 + $0x190] sm:$0xff]  }
 0x1db   : > { %v1929_v56 = vrot.slane %v1928_v47, 4  ;;  %v1563_v59 = vsel %vm5912_vm13, %v4236_v13, %v1562_v50  ;;  %v1564_v61 = vrot.slane %v1562_v50, 4  ;;  %v4277_v0 = vcombine.low %v6088_v40, %v6097_v48  ;;  %v5171_v48 = vld [vmem:[#allocation8 + $0x1d0] sm:$0xff]   ;;  %v6270_v13 = vld [vmem:[#allocation3 + $0x20] sm:$0x1] }
 0x1dc   : > { %4707 = vmatpush3.bf16.msra.mxu0 %v5167_v38  ;;  %v1924_v1 = vsel %vm5973_vm0, %v1919_v58, %v1923_v49  ;;  %v1559_v53 = vsel %vm5912_vm13, %v1557_v60, %v1558_v27  ;;  %v1300_v3 = vshrl.u32 %v6083_v35, 16  ;;  %v1303_v4 = vshll.u32 %v6083_v35, 16 }
 0x1dd   : > { %2385 = vmatmul.mubr.bf16.gmra.mxu1 %v4276_v57  ;;  %v1934_v5 = vsel %vm5973_vm0, %v1929_v56, %v1933_v32  ;;  %v4259_v33 = vcombine.low %v1556_v46, %v1559_v53  ;;  %4708 = vmatprep.subr.bf16.mxu0 %v5168_v18  ;;  %v1566_v40 = vsel %vm5912_vm13, %v1564_v61, %v1565_v55  ;;  %v1309_v23 = vshll.u32 %v6104_v54, 16  ;;  %v6258_v57 = vld [vmem:[#allocation3 + $0x54] sm:$0xf]  ;;  %v5175_v55 = vld [vmem:[#allocation8 + $0x1c8] sm:$0xff]  }
 0x1de   : > { %v4285_v29 = vcombine.low %v1924_v1, %v1934_v5  ;;  %v4260_v52 = vcombine.low %v1563_v59, %v1566_v40  ;;  %v1302_v8 = vrot.slane %v1300_v3, 4  ;;  %v1305_v11 = vrot.slane %v1303_v4, 5 }
 0x1df   : > { %4889 = vmatmul.mubr.bf16.gmra.mxu0 %v4259_v33  ;;  %v1311_v17 = vrot.slane %v1309_v23, 5  ;;  %v1313_v49 = vshrl.u32 %v6104_v54, 16  ;;  %v1319_v20 = vshll.u32 %v6109_v9, 16  ;;  %v4237_v38 = vrot.slane %v6258_v57, 9 }
 0x1e0   : > { %2392 = vmatprep.mubr.bf16.mxu1 %v4285_v29  ;;  %4892 = vmatprep.mubr.bf16.mxu0 %v4260_v52  ;;  %v1306_v31 = vor.u32 %v1305_v11, %v1302_v8  ;;  %v1569_v63 = vrot.slane %v6264_v36, 5  ;;  %v1572_v27 = vrot.slane %v6254_v19, 5  ;;  %v2862_v47 = vshrl.u32 %v6256_v7, 16  ;;  %v5177_v8 = vld [vmem:[#allocation8 + $0x1c0] sm:$0xff]  }
 0x1e1   : > { %4709 = vmatpush3.bf16.msra.mxu0 %v5169_v2  ;;  %v1315_v32 = vrot.slane %v1313_v49, 4  ;;  %v1321_v18 = vrot.slane %v1319_v20, 5  ;;  %v2865_v9 = vshll.u32 %v6256_v7, 16  ;;  %v2871_v50 = vshll.u32 %v6260_v14, 16 }
 0x1e2   : > { %4710 = vmatprep.subr.bf16.mxu0 %v5171_v48  ;;  %v1307_v58 = vrot.slane %v1306_v31, 4  ;;  %v1570_v46 = vsel %vm5912_vm13, %v4237_v38, %v1569_v63  ;;  %v1571_v60 = vrot.slane %v1569_v63, 4  ;;  %v2864_v56 = vrot.slane %v2862_v47, 4  ;;  %v5176_v48 = vld [vmem:[#allocation8 + $0x188] sm:$0xff]   ;;  %v6292_v47 = vld [vmem:[#allocation3 + $0x28] sm:$0xf] }
 0x1e3   : > { %v1316_v59 = vor.u32 %v1315_v32, %v1311_v17  ;;  %v2867_v61 = vrot.slane %v2865_v9, 5  ;;  %v2873_v1 = vrot.slane %v2871_v50, 5  ;;  %v2875_v53 = vshrl.u32 %v6260_v14, 16  ;;  %v6290_v38 = vld [vmem:[#allocation3 + $0x24] sm:$0xf]  ;;  %v5180_v50 = vld [vmem:[#allocation8 + $0x180] sm:$0xff]  }
 0x1e4   : > { %v1312_v2 = vsel %vm5973_vm0, %v1307_v58, %v1311_v17  ;;  %v1573_v3 = vsel %vm5912_vm13, %v1571_v60, %v1572_v27  ;;  %v2881_v4 = vshll.u32 %v6270_v13, 16  ;;  %v4238_v5 = vcombine.low %v6083_v35, %v6104_v54 }
 0x1e5   : > { %2393 = vmatmul.mubr.bf16.gmra.mxu1 %v4277_v0  ;;  %4711 = vmatpush3.bf16.msra.mxu0 %v5174_v39  ;;  %v1317_v33 = vrot.slane %v1316_v59, 4  ;;  %v4261_v40 = vcombine.low %v1570_v46, %v1573_v3  ;;  %v2868_v23 = vor.u32 %v2867_v61, %v2864_v56  ;;  %v2877_v29 = vrot.slane %v2875_v53, 4 }
 0x1e6   : > { %4712 = vmatprep.subr.bf16.mxu0 %v5175_v55  ;;  %v2883_v52 = vrot.slane %v2881_v4, 5  ;;  %v1324_v11 = vshrl.u32 %v6132_v26, 16  ;;  %v1327_v17 = vshll.u32 %v6132_v26, 16  ;;  %v1333_v49 = vshll.u32 %v6134_v28, 16  ;;  %v6299_v55 = vld [vmem:[#allocation3 + $0x2c] sm:$0x1] }
 0x1e7   : > { %v1322_v20 = vsel %vm5973_vm0, %v1317_v33, %v1321_v18  ;;  %4893 = vmatmul.mubr.bf16.gmra.mxu0 %v4261_v40  ;;  %v2869_v35 = vrot.slane %v2868_v23, 4  ;;  %v2878_v54 = vor.u32 %v2877_v29, %v2873_v1  ;;  %v1337_v0 = vshrl.u32 %v6134_v28, 16 }
 0x1e8   : > { %v4246_v39 = vcombine.low %v1312_v2, %v1322_v20  ;;  %v1326_v31 = vrot.slane %v1324_v11, 4  ;;  %v1329_v63 = vrot.slane %v1327_v17, 5  ;;  %v1335_v27 = vrot.slane %v1333_v49, 5 }
 0x1e9   : > { %4713 = vmatpush3.bf16.msra.mxu0 %v5176_v48  ;;  %v2874_v32 = vsel %vm5973_vm0, %v2869_v35, %v2873_v1  ;;  %v2879_v9 = vrot.slane %v2878_v54, 4  ;;  %v1339_v18 = vrot.slane %v1337_v0, 4  ;;  %v1343_v58 = vshll.u32 %v6143_v24, 16  ;;  %v5182_v24 = vld [vmem:[#allocation8 + $0x230] sm:$0xff]   ;;  %v5185_v54 = vld [vmem:[#allocation8 + $0x228] sm:$0xff]  }
 0x1ea   : > { %2674 = vmatprep.mubr.bf16.mxu1 %v4246_v39  ;;  %4714 = vmatprep.subr.bf16.mxu0 %v5177_v8  ;;  %v1330_v46 = vor.u32 %v1329_v63, %v1326_v31  ;;  %v4350_v60 = vcombine.low %v6256_v7, %v6260_v14  ;;  %v2886_v56 = vshrl.u32 %v6290_v38, 16  ;;  %v2889_v59 = vshll.u32 %v6290_v38, 16  ;;  %v6318_v63 = vld [vmem:[#allocation3 + $0x30] sm:$0xf] }
 0x1eb   : > { %v2884_v61 = vsel %vm5973_vm0, %v2879_v9, %v2883_v52  ;;  %v1340_v1 = vor.u32 %v1339_v18, %v1335_v27  ;;  %v1345_v53 = vrot.slane %v1343_v58, 5  ;;  %v2895_v2 = vshll.u32 %v6292_v47, 16  ;;  %v6322_v9 = vld [vmem:[#allocation3 + $0x34] sm:$0xf] }
 0x1ec   : > { %v4358_v3 = vcombine.low %v2874_v32, %v2884_v61  ;;  %v1331_v4 = vrot.slane %v1330_v46, 4  ;;  %v2888_v33 = vrot.slane %v2886_v56, 4  ;;  %v2891_v40 = vrot.slane %v2889_v59, 5 }
 0x1ed   : > { %2675 = vmatmul.mubr.bf16.vlgmr.msra.gmra.mxu1 %v4238_v5  ;;  %4715 = vmatpush3.bf16.msra.mxu0 %v5180_v50  ;;  %v1341_v48 = vrot.slane %v1340_v1, 4  ;;  %v2897_v23 = vrot.slane %v2895_v2, 5  ;;  %v2899_v29 = vshrl.u32 %v6292_v47, 16  ;;  %v2905_v8 = vshll.u32 %v6299_v55, 16 }
 0x1ee   : > { %3454 = vmatprep.mubr.bf16.mxu0 %v4358_v3  ;;  %4897 = vmatpush3.bf16.msra.mxu1 %v6152_v44  ;;  %v1336_v52 = vsel %vm5973_vm0, %v1331_v4, %v1335_v27  ;;  %v2892_v11 = vor.u32 %v2891_v40, %v2888_v33  ;;  %v4239_v17 = vcombine.low %v6132_v26, %v6134_v28  ;;  %v1348_v35 = vshrl.u32 %v6145_v22, 16 }
 0x1ef   : > { %v1346_v5 = vsel %vm5973_vm0, %v1341_v48, %v1345_v53  ;;  %v2901_v49 = vrot.slane %v2899_v29, 4  ;;  %v2907_v20 = vrot.slane %v2905_v8, 5  ;;  %4898 = vmatprep.subr.bf16.mxu1 %v5182_v24  ;;  %v1351_v44 = vshll.u32 %v6145_v22, 16 }
 0x1f0   : > { %v4247_v0 = vcombine.low %v1336_v52, %v1346_v5  ;;  %3455 = vmatmul.mubr.bf16.vlgmr.msra.gmra.mxu0 %v4350_v60  ;;  %v2893_v39 = vrot.slane %v2892_v11, 4  ;;  %v1357_v31 = vshll.u32 %v6150_v12, 16  ;;  %v1350_v26 = vrot.slane %v1348_v35, 4  ;;  %v6328_v60 = vld [vmem:[#allocation3 + $0x38] sm:$0x1] }
 0x1f1   : > { %v2902_v27 = vor.u32 %v2901_v49, %v2897_v23  ;;  %v1361_v28 = vshrl.u32 %v6150_v12, 16  ;;  %v1367_v32 = vshll.u32 %v6156_v42, 16  ;;  %v1353_v18 = vrot.slane %v1351_v44, 5  ;;  %v5188_v42 = vld [vmem:[#allocation8 + $0x220] sm:$0xff]  }
 0x1f2   : > { %2682 = vmatprep.mubr.bf16.mxu1 %v4247_v0  ;;  %v2898_v50 = vsel %vm5973_vm0, %v2893_v39, %v2897_v23  ;;  %4899 = vmatpush3.bf16.msra.mxu1 %v5182_v24  ;;  %v1359_v58 = vrot.slane %v1357_v31, 5  ;;  %v4351_v46 = vcombine.low %v6290_v38, %v6292_v47  ;;  %v2910_v1 = vshrl.u32 %v6318_v63, 16  ;;  %v5191_v0 = vld [vmem:[#allocation8 + $0x218] sm:$0xff]  }
 0x1f3   : > { %v2903_v56 = vrot.slane %v2902_v27, 4  ;;  %v1363_v59 = vrot.slane %v1361_v28, 4  ;;  %v1369_v61 = vrot.slane %v1367_v32, 5  ;;  %4900 = vmatprep.subr.bf16.mxu1 %v5185_v54  ;;  %v1354_v53 = vor.u32 %v1353_v18, %v1350_v26  ;;  %v6349_v18 = vld [vmem:[#allocation3 + $0x40] sm:$0xf] }
 0x1f4   : > { %v2913_v2 = vshll.u32 %v6318_v63, 16  ;;  %v2919_v3 = vshll.u32 %v6322_v9, 16  ;;  %v2923_v24 = vshrl.u32 %v6322_v9, 16  ;;  %v2912_v40 = vrot.slane %v2910_v1, 4 }
 0x1f5   : > { %v2908_v4 = vsel %vm5973_vm0, %v2903_v56, %v2907_v20  ;;  %2683 = vmatmul.mubr.bf16.gmra.mxu1 %v4239_v17  ;;  %v1364_v33 = vor.u32 %v1363_v59, %v1359_v58  ;;  %v2929_v48 = vshll.u32 %v6328_v60, 16  ;;  %v1355_v29 = vrot.slane %v1354_v53, 4 }
 0x1f6   : > { %v4359_v23 = vcombine.low %v2898_v50, %v2908_v4  ;;  %v2915_v8 = vrot.slane %v2913_v2, 5  ;;  %v2921_v52 = vrot.slane %v2919_v3, 5  ;;  %4901 = vmatpush3.bf16.msra.mxu1 %v5185_v54  ;;  %v2925_v5 = vrot.slane %v2923_v24, 4 }
 0x1f7   : > { %v1365_v11 = vrot.slane %v1364_v33, 4  ;;  %v2931_v49 = vrot.slane %v2929_v48, 5  ;;  %v4240_v35 = vcombine.low %v6145_v22, %v6150_v12  ;;  %4902 = vmatprep.subr.bf16.mxu1 %v5188_v42  ;;  %v1360_v17 = vsel %vm5973_vm0, %v1355_v29, %v1359_v58  ;;  %v6347_v12 = vld [vmem:[#allocation3 + $0x3c] sm:$0xf]  ;;  %v6360_v48 = vld [vmem:[#allocation3 + $0x44] sm:$0x1] }
 0x1f8   : > { %3462 = vmatprep.mubr.bf16.mxu0 %v4359_v23  ;;  %v2916_v20 = vor.u32 %v2915_v8, %v2912_v40  ;;  %v1372_v39 = vshrl.u32 %v6173_v10, 16  ;;  %v1375_v44 = vshll.u32 %v6173_v10, 16  ;;  %v2926_v31 = vor.u32 %v2925_v5, %v2921_v52 }
 0x1f9   : > { %v1370_v54 = vsel %vm5973_vm0, %v1365_v11, %v1369_v61  ;;  %3463 = vmatmul.mubr.bf16.gmra.mxu0 %v4351_v46  ;;  %v1381_v27 = vshll.u32 %v6178_v15, 16  ;;  %v1385_v22 = vshrl.u32 %v6178_v15, 16  ;;  %v1391_v61 = vshll.u32 %v6186_v21, 16  ;;  %v5194_v46 = vld [vmem:[#allocation8 + $0x210] sm:$0xff]  }
 0x1fa   : > { %v4248_v26 = vcombine.low %v1360_v17, %v1370_v54  ;;  %v2917_v28 = vrot.slane %v2916_v20, 4  ;;  %v1374_v32 = vrot.slane %v1372_v39, 4  ;;  %v1377_v50 = vrot.slane %v1375_v44, 5  ;;  %4903 = vmatpush3.bf16.msra.mxu1 %v5188_v42 }
 0x1fb   : > { %v2927_v58 = vrot.slane %v2926_v31, 4  ;;  %v1383_v56 = vrot.slane %v1381_v27, 5  ;;  %v1387_v59 = vrot.slane %v1385_v22, 4  ;;  %4904 = vmatprep.subr.bf16.mxu1 %v5191_v0  ;;  %v4352_v2 = vcombine.low %v6318_v63, %v6322_v9  ;;  %v6372_v27 = vld [vmem:[#allocation3 + $0x48] sm:$0xf] }
 0x1fc   : > { %2690 = vmatprep.mubr.bf16.mxu1 %v4248_v26  ;;  %v2922_v1 = vsel %vm5973_vm0, %v2917_v28, %v2921_v52  ;;  %v1378_v53 = vor.u32 %v1377_v50, %v1374_v32  ;;  %v2934_v3 = vshrl.u32 %v6347_v12, 16  ;;  %v1393_v4 = vrot.slane %v1391_v61, 5 }
 0x1fd   : > { %v2932_v42 = vsel %vm5973_vm0, %v2927_v58, %v2931_v49  ;;  %2691 = vmatmul.mubr.bf16.gmra.mxu1 %v4240_v35  ;;  %v1388_v24 = vor.u32 %v1387_v59, %v1383_v56  ;;  %v2937_v21 = vshll.u32 %v6347_v12, 16  ;;  %v2943_v29 = vshll.u32 %v6349_v18, 16  ;;  %v5197_v49 = vld [vmem:[#allocation8 + $0x208] sm:$0xff]   ;;  %v5200_v59 = vld [vmem:[#allocation8 + $0x200] sm:$0xff]  }
 0x1fe   : > { %v4360_v33 = vcombine.low %v2922_v1, %v2932_v42  ;;  %v1379_v40 = vrot.slane %v1378_v53, 4  ;;  %v2936_v23 = vrot.slane %v2934_v3, 4  ;;  %4905 = vmatpush3.bf16.msra.mxu1 %v5191_v0  ;;  %v2947_v11 = vshrl.u32 %v6349_v18, 16 }
 0x1ff   : > { %v1389_v8 = vrot.slane %v1388_v24, 4  ;;  %v2939_v52 = vrot.slane %v2937_v21, 5  ;;  %v2953_v5 = vshll.u32 %v6360_v48, 16  ;;  %4906 = vmatprep.subr.bf16.mxu1 %v5194_v46  ;;  %v2945_v17 = vrot.slane %v2943_v29, 5 }
 0x200   : > { %3470 = vmatprep.mubr.bf16.mxu0 %v4360_v33  ;;  %v1384_v35 = vsel %vm5973_vm0, %v1379_v40, %v1383_v56  ;;  %v4241_v20 = vcombine.low %v6173_v10, %v6178_v15  ;;  %v1396_v39 = vshrl.u32 %v6194_v34, 16  ;;  %v2949_v54 = vrot.slane %v2947_v11, 4  ;;  %v6378_v56 = vld [vmem:[#allocation3 + $0x4c] sm:$0xf] }
 0x201   : > { %v1394_v0 = vsel %vm5973_vm0, %v1389_v8, %v1393_v4  ;;  %3471 = vmatmul.mubr.bf16.gmra.mxu0 %v4352_v2  ;;  %v2940_v44 = vor.u32 %v2939_v52, %v2936_v23  ;;  %v2955_v31 = vrot.slane %v2953_v5, 5  ;;  %v1399_v28 = vshll.u32 %v6194_v34, 16  ;;  %v6382_v2 = vld [vmem:[#allocation3 + $0x50] sm:$0x1] }
 0x202   : > { %v4249_v22 = vcombine.low %v1384_v35, %v1394_v0  ;;  %v1398_v26 = vrot.slane %v1396_v39, 4  ;;  %v1405_v32 = vshll.u32 %v6188_v30, 16  ;;  %4907 = vmatpush3.bf16.msra.mxu1 %v5194_v46  ;;  %v2950_v10 = vor.u32 %v2949_v54, %v2945_v17 }
 0x203   : > { %v2941_v50 = vrot.slane %v2940_v44, 4  ;;  %v1409_v15 = vshrl.u32 %v6188_v30, 16  ;;  %v1415_v58 = vshll.u32 %v6190_v43, 16  ;;  %4908 = vmatprep.subr.bf16.mxu1 %v5197_v49  ;;  %v1401_v61 = vrot.slane %v1399_v28, 5 }
 0x204   : > { %2698 = vmatprep.mubr.bf16.mxu1 %v4249_v22  ;;  %v1407_v1 = vrot.slane %v1405_v32, 5  ;;  %v4353_v53 = vcombine.low %v6347_v12, %v6349_v18  ;;  %v2958_v46 = vshrl.u32 %v6372_v27, 16  ;;  %v2951_v42 = vrot.slane %v2950_v10, 4 }
 0x205   : > { %v2946_v3 = vsel %vm5973_vm0, %v2941_v50, %v2945_v17  ;;  %2699 = vmatmul.mubr.bf16.gmra.mxu1 %v4241_v20  ;;  %v1411_v43 = vrot.slane %v1409_v15, 4  ;;  %v1417_v24 = vrot.slane %v1415_v58, 5  ;;  %v1402_v4 = vor.u32 %v1401_v61, %v1398_v26 }
 0x206   : > { %v2960_v21 = vrot.slane %v2958_v46, 4  ;;  %v2961_v33 = vshll.u32 %v6372_v27, 16  ;;  %v2967_v40 = vshll.u32 %v6378_v56, 16  ;;  %4909 = vmatpush3.bf16.msra.mxu1 %v5197_v49  ;;  %v2956_v23 = vsel %vm5973_vm0, %v2951_v42, %v2955_v31 }
 0x207   : > { %v1412_v29 = vor.u32 %v1411_v43, %v1407_v1  ;;  %v2971_v8 = vshrl.u32 %v6378_v56, 16  ;;  %v2977_v52 = vshll.u32 %v6382_v2, 16  ;;  %4910 = vmatprep.subr.bf16.mxu1 %v5200_v59  ;;  %v4361_v11 = vcombine.low %v2946_v3, %v2956_v23  ;;  %v6406_v3 = vld [vmem:[#allocation3 + $0x58] sm:$0xf] }
 0x208   : > { %v1403_v5 = vrot.slane %v1402_v4, 4  ;;  %v2963_v35 = vrot.slane %v2961_v33, 5  ;;  %v2969_v17 = vrot.slane %v2967_v40, 5  ;;  %v4242_v44 = vcombine.low %v6194_v34, %v6188_v30  ;;  %v6403_v30 = vld [vmem:[#allocation3 + $0x54] sm:$0xf] }
 0x209   : > { %v1413_v20 = vrot.slane %v1412_v29, 4  ;;  %v2973_v39 = vrot.slane %v2971_v8, 4  ;;  %v2979_v0 = vrot.slane %v2977_v52, 5  ;;  %3478 = vmatprep.mubr.bf16.mxu0 %v4361_v11  ;;  %v1420_v31 = vshrl.u32 %v6222_v62, 16 }
 0x20a   : > { %v1408_v49 = vsel %vm5973_vm0, %v1403_v5, %v1407_v1  ;;  %v2964_v54 = vor.u32 %v2963_v35, %v2960_v21  ;;  %v1423_v22 = vshll.u32 %v6222_v62, 16  ;;  %4911 = vmatpush3.bf16.msra.mxu1 %v5200_v59  ;;  %3479 = vmatmul.mubr.bf16.gmra.mxu0 %v4353_v53  ;;  %v1429_v32 = vshll.u32 %v6216_v25, 16 }
 0x20b   : > { %v1418_v26 = vsel %vm5973_vm0, %v1413_v20, %v1417_v24  ;;  %v2974_v28 = vor.u32 %v2973_v39, %v2969_v17  ;;  %v1433_v50 = vshrl.u32 %v6216_v25, 16  ;;  %v1422_v15 = vrot.slane %v1420_v31, 4  ;;  %v6412_v24 = vld [vmem:[#allocation3 + $0x5c] sm:$0x1] }
 0x20c   : > { %v4250_v34 = vcombine.low %v1408_v49, %v1418_v26  ;;  %v2965_v10 = vrot.slane %v2964_v54, 4  ;;  %v1425_v58 = vrot.slane %v1423_v22, 5  ;;  %v1431_v1 = vrot.slane %v1429_v32, 5  ;;  %v6428_v26 = vld [vmem:[#allocation3 + $0x60] sm:$0xf] }
 0x20d   : > { %v2975_v61 = vrot.slane %v2974_v28, 4  ;;  %v1435_v46 = vrot.slane %v1433_v50, 4  ;;  %v1439_v59 = vshll.u32 %v6218_v51, 16  ;;  %v4354_v43 = vcombine.low %v6372_v27, %v6378_v56 }
 0x20e   : > { %2706 = vmatprep.mubr.bf16.mxu1 %v4250_v34  ;;  %v2970_v53 = vsel %vm5973_vm0, %v2965_v10, %v2969_v17  ;;  %v1426_v42 = vor.u32 %v1425_v58, %v1422_v15  ;;  %v2982_v4 = vshrl.u32 %v6403_v30, 16  ;;  %v2985_v40 = vshll.u32 %v6403_v30, 16  ;;  %v6434_v58 = vld [vmem:[#allocation3 + $0x64] sm:$0xf] }
 0x20f   : > { %v2980_v21 = vsel %vm5973_vm0, %v2975_v61, %v2979_v0  ;;  %2707 = vmatmul.mubr.bf16.gmra.mxu1 %v4242_v44  ;;  %v1436_v33 = vor.u32 %v1435_v46, %v1431_v1  ;;  %v1441_v51 = vrot.slane %v1439_v59, 5  ;;  %v2991_v52 = vshll.u32 %v6406_v3, 16  ;;  %v6438_v59 = vld [vmem:[#allocation3 + $0x68] sm:$0x1] }
 0x210   : > { %v4362_v23 = vcombine.low %v2970_v53, %v2980_v21  ;;  %v1427_v29 = vrot.slane %v1426_v42, 4  ;;  %v2984_v8 = vrot.slane %v2982_v4, 4  ;;  %v2987_v5 = vrot.slane %v2985_v40, 5 }
 0x211   : > { %v1437_v11 = vrot.slane %v1436_v33, 4  ;;  %v2995_v35 = vshrl.u32 %v6406_v3, 16  ;;  %v3001_v17 = vshll.u32 %v6412_v24, 16  ;;  %v2993_v39 = vrot.slane %v2991_v52, 5 }
 0x212   : > { %3486 = vmatprep.mubr.bf16.mxu0 %v4362_v23  ;;  %v1432_v20 = vsel %vm5973_vm0, %v1427_v29, %v1431_v1  ;;  %v4243_v0 = vcombine.low %v6222_v62, %v6216_v25  ;;  %v1444_v44 = vshrl.u32 %v6224_v16, 16  ;;  %v2988_v54 = vor.u32 %v2987_v5, %v2984_v8 }
 0x213   : > { %v1442_v49 = vsel %vm5973_vm0, %v1437_v11, %v1441_v51  ;;  %3487 = vmatmul.mubr.bf16.gmra.mxu0 %v4354_v43  ;;  %v2997_v31 = vrot.slane %v2995_v35, 4  ;;  %v3003_v22 = vrot.slane %v3001_v17, 5  ;;  %v1447_v50 = vshll.u32 %v6224_v16, 16 }
 0x214   : > { %v4251_v28 = vcombine.low %v1432_v20, %v1442_v49  ;;  %v1446_v32 = vrot.slane %v1444_v44, 4  ;;  %v1453_v34 = vshll.u32 %v6232_v45, 16  ;;  %v2989_v10 = vrot.slane %v2988_v54, 4 }
 0x215   : > { %v2998_v15 = vor.u32 %v2997_v31, %v2993_v39  ;;  %v1457_v25 = vshrl.u32 %v6232_v45, 16  ;;  %v1463_v62 = vshll.u32 %v6227_v37, 16  ;;  %v1449_v61 = vrot.slane %v1447_v50, 5 }
 0x216   : > { %2714 = vmatprep.mubr.bf16.mxu1 %v4251_v28  ;;  %v1455_v1 = vrot.slane %v1453_v34, 5  ;;  %v4355_v46 = vcombine.low %v6403_v30, %v6406_v3  ;;  %v3006_v53 = vshrl.u32 %v6428_v26, 16  ;;  %v2994_v42 = vsel %vm5973_vm0, %v2989_v10, %v2993_v39  ;;  %v6459_v10 = vld [vmem:[#allocation3 + $0x6c] sm:$0xf] }
 0x217   : > { %v2999_v43 = vrot.slane %v2998_v15, 4  ;;  %2715 = vmatmul.mubr.bf16.gmra.mxu1 %v4243_v0  ;;  %v1459_v4 = vrot.slane %v1457_v25, 4  ;;  %v1465_v21 = vrot.slane %v1463_v62, 5  ;;  %v1450_v37 = vor.u32 %v1449_v61, %v1446_v32 }
 0x218   : > { %v3008_v33 = vrot.slane %v3006_v53, 4  ;;  %v3009_v51 = vshll.u32 %v6428_v26, 16  ;;  %v3015_v40 = vshll.u32 %v6434_v58, 16  ;;  %v3019_v8 = vshrl.u32 %v6434_v58, 16 }
 0x219   : > { %v3004_v23 = vsel %vm5973_vm0, %v2999_v43, %v3003_v22  ;;  %v1460_v29 = vor.u32 %v1459_v4, %v1455_v1  ;;  %v3025_v52 = vshll.u32 %v6438_v59, 16  ;;  %v1451_v5 = vrot.slane %v1450_v37, 4 }
 0x21a   : > { %v4363_v11 = vcombine.low %v2994_v42, %v3004_v23  ;;  %v3011_v35 = vrot.slane %v3009_v51, 5  ;;  %v3017_v17 = vrot.slane %v3015_v40, 5  ;;  %v3021_v39 = vrot.slane %v3019_v8, 4  ;;  %v6462_v42 = vld [vmem:[#allocation3 + $0x70] sm:$0xf] }
 0x21b   : > { %v1461_v20 = vrot.slane %v1460_v29, 4  ;;  %v3027_v0 = vrot.slane %v3025_v52, 5  ;;  %v4244_v44 = vcombine.low %v6224_v16, %v6232_v45  ;;  %v1456_v49 = vsel %vm5973_vm0, %v1451_v5, %v1455_v1 }
 0x21c   : > { %3494 = vmatprep.mubr.bf16.mxu0 %v4363_v11  ;;  %v3012_v54 = vor.u32 %v3011_v35, %v3008_v33  ;;  %v1468_v31 = vshrl.u32 %v6258_v57, 16  ;;  %v1471_v22 = vshll.u32 %v6258_v57, 16  ;;  %v3022_v32 = vor.u32 %v3021_v39, %v3017_v17 }
 0x21d   : > { %v1466_v28 = vsel %vm5973_vm0, %v1461_v20, %v1465_v21  ;;  %3495 = vmatmul.mubr.bf16.gmra.mxu0 %v4355_v46  ;;  %v1477_v50 = vshll.u32 %v6264_v36, 16  ;;  %v1481_v34 = vshrl.u32 %v6264_v36, 16  ;;  %v1487_v53 = vshll.u32 %v6254_v19, 16  ;;  %v6468_v21 = vld [vmem:[#allocation3 + $0x74] sm:$0x1] }
 0x21e   : > { %v4252_v16 = vcombine.low %v1456_v49, %v1466_v28  ;;  %v3013_v45 = vrot.slane %v3012_v54, 4  ;;  %v1470_v15 = vrot.slane %v1468_v31, 4  ;;  %v1473_v25 = vrot.slane %v1471_v22, 5 }
 0x21f   : > { %v3023_v62 = vrot.slane %v3022_v32, 4  ;;  %v1479_v61 = vrot.slane %v1477_v50, 5  ;;  %v1483_v1 = vrot.slane %v1481_v34, 4  ;;  %v4356_v4 = vcombine.low %v6428_v26, %v6434_v58 }
 0x220   : > { %2722 = vmatprep.mubr.bf16.mxu1 %v4252_v16  ;;  %v3018_v46 = vsel %vm5973_vm0, %v3013_v45, %v3017_v17  ;;  %v1474_v43 = vor.u32 %v1473_v25, %v1470_v15  ;;  %v3030_v37 = vshrl.u32 %v6459_v10, 16  ;;  %v1489_v19 = vrot.slane %v1487_v53, 5 }
 0x221   : > { %v3028_v33 = vsel %vm5973_vm0, %v3023_v62, %v3027_v0  ;;  %2723 = vmatmul.mubr.bf16.gmra.mxu1 %v4244_v44  ;;  %v1484_v51 = vor.u32 %v1483_v1, %v1479_v61  ;;  %v3033_v40 = vshll.u32 %v6459_v10, 16  ;;  %v3039_v52 = vshll.u32 %v6462_v42, 16 }
 0x222   : > { %v4364_v23 = vcombine.low %v3018_v46, %v3028_v33  ;;  %v1475_v29 = vrot.slane %v1474_v43, 4  ;;  %v3032_v8 = vrot.slane %v3030_v37, 4  ;;  %v3043_v35 = vshrl.u32 %v6462_v42, 16 }
 0x223   : > { %v1485_v11 = vrot.slane %v1484_v51, 4  ;;  %v3035_v5 = vrot.slane %v3033_v40, 5  ;;  %v3049_v17 = vshll.u32 %v6468_v21, 16  ;;  %v3041_v39 = vrot.slane %v3039_v52, 5 }
 0x224   : > { %3502 = vmatprep.mubr.bf16.mxu0 %v4364_v23  ;;  %v1480_v20 = vsel %vm5973_vm0, %v1475_v29, %v1479_v61  ;;  %v3045_v49 = vrot.slane %v3043_v35, 4  ;;  %v4245_v31 = vcombine.low %v6258_v57, %v6264_v36  ;;  %v3079_v22 = vrot.slane %v6260_v14, 5 }
 0x225   : > { %v1490_v0 = vsel %vm5973_vm0, %v1485_v11, %v1489_v19  ;;  %3503 = vmatmul.mubr.bf16.gmra.mxu0 %v4356_v4  ;;  %v3036_v44 = vor.u32 %v3035_v5, %v3032_v8  ;;  %v3051_v50 = vrot.slane %v3049_v17, 5  ;;  %v3086_v34 = vrot.slane %v6292_v47, 5 }
 0x226   : > { %v4253_v54 = vcombine.low %v1480_v20, %v1490_v0  ;;  %v3046_v32 = vor.u32 %v3045_v49, %v3041_v39  ;;  %v4342_v16 = vrot.slane %v6256_v7, 9  ;;  %v3081_v45 = vrot.slane %v3079_v22, 4 }
 0x227   : > { %v3037_v28 = vrot.slane %v3036_v44, 4  ;;  %v3082_v15 = vrot.slane %v6270_v13, 5  ;;  %v3093_v25 = vrot.slane %v6322_v9, 5  ;;  %v3089_v62 = vrot.slane %v6299_v55, 5 }
 0x228   : > { %2730 = vmatprep.mubr.bf16.mxu1 %v4253_v54  ;;  %v3047_v36 = vrot.slane %v3046_v32, 4  ;;  %v3088_v14 = vrot.slane %v3086_v34, 4  ;;  %v3080_v61 = vsel %vm5912_vm13, %v4342_v16, %v3079_v22  ;;  %v3096_v1 = vrot.slane %v6328_v60, 5 }
 0x229   : > { %v3042_v57 = vsel %vm5973_vm0, %v3037_v28, %v3041_v39  ;;  %2731 = vmatmul.mubr.bf16.gmra.mxu1 %v4245_v31  ;;  %v3083_v47 = vsel %vm5912_vm13, %v3081_v45, %v3082_v15  ;;  %v3095_v7 = vrot.slane %v3093_v25, 4  ;;  %v4344_v55 = vrot.slane %v6318_v63, 9 }
 0x22a   : > { %v3052_v13 = vsel %vm5973_vm0, %v3047_v36, %v3051_v50  ;;  %v4366_v9 = vcombine.low %v3080_v61, %v3083_v47  ;;  %v4343_v46 = vrot.slane %v6290_v38, 9  ;;  %v3090_v43 = vsel %vm5912_vm13, %v3088_v14, %v3089_v62  ;;  %v5203_v50 = vld [vmem:[#allocation10 + $0x38] sm:$0xff]  }
 0x22b   : > { %v4365_v53 = vcombine.low %v3042_v57, %v3052_v13  ;;  %v3100_v4 = vrot.slane %v6349_v18, 5  ;;  %v4357_v37 = vcombine.low %v6459_v10, %v6462_v42  ;;  %v3097_v60 = vsel %vm5912_vm13, %v3095_v7, %v3096_v1  ;;  %4928 = vmatprep.subr.bf16.mxu0 %v5203_v50  ;;  %4960 = vmatprep.subr.bf16.mxu1 %v5203_v50  ;;  %v5205_v57 = vld [vmem:[#allocation10 + $0x28] sm:$0xff]  }
 0x22c   : > { %4912 = vmatprep.mubr.bf16.mxu1 %v4366_v9  ;;  %v3107_v6 = vrot.slane %v6378_v56, 5  ;;  %v3087_v63 = vsel %vm5912_vm13, %v4343_v46, %v3086_v34  ;;  %v3094_v33 = vsel %vm5912_vm13, %v4344_v55, %v3093_v25  ;;  %v4345_v18 = vrot.slane %v6347_v12, 9  ;;  %4929 = vmatpush3.bf16.msra.mxu0 %v5203_v50  ;;  %v5204_v34 = vld [vmem:[#allocation10 + $0x30] sm:$0xff]  }
 0x22d   : > { %3510 = vmatprep.mubr.bf16.mxu0 %v4365_v53  ;;  %v4367_v38 = vcombine.low %v3087_v63, %v3090_v43  ;;  %v4368_v51 = vcombine.low %v3094_v33, %v3097_v60  ;;  %v3102_v19 = vrot.slane %v3100_v4, 4  ;;  %v3103_v40 = vrot.slane %v6360_v48, 5  ;;  %4930 = vmatprep.subr.bf16.mxu0 %v5204_v34 }
 0x22e   : > { %3511 = vmatmul.mubr.bf16.gmra.mxu0 %v4357_v37  ;;  %v4346_v23 = vrot.slane %v6372_v27, 9  ;;  %v3109_v29 = vrot.slane %v3107_v6, 4  ;;  %v3110_v56 = vrot.slane %v6382_v2, 5  ;;  %v3101_v8 = vsel %vm5912_vm13, %v4345_v18, %v3100_v4  ;;  %v5206_v4 = vld [vmem:[#allocation10 + $0x20] sm:$0xff]  }
 0x22f   : > { %v3104_v52 = vsel %vm5912_vm13, %v3102_v19, %v3103_v40  ;;  %v3114_v11 = vrot.slane %v6406_v3, 5  ;;  %v3121_v27 = vrot.slane %v6434_v58, 5  ;;  %v4347_v2 = vrot.slane %v6403_v30, 9  ;;  %v5207_v19 = vld [vmem:[#allocation10 + $0x18] sm:$0xff]  }
 0x230   : > { %v3108_v12 = vsel %vm5912_vm13, %v4346_v23, %v3107_v6  ;;  %v3111_v48 = vsel %vm5912_vm13, %v3109_v29, %v3110_v56  ;;  %v4369_v5 = vcombine.low %v3101_v8, %v3104_v52  ;;  %v3117_v20 = vrot.slane %v6412_v24, 5  ;;  %4931 = vmatpush3.bf16.msra.mxu0 %v5204_v34  ;;  %v5208_v56 = vld [vmem:[#allocation10 + $0x10] sm:$0xff]  }
 0x231   : > { %4913 = vmatmul.mubr.bf16.vlgmr.msra.gmra.mxu1 %v4367_v38  ;;  %v4370_v35 = vcombine.low %v3108_v12, %v3111_v48  ;;  %v3116_v17 = vrot.slane %v3114_v11, 4  ;;  %v4348_v39 = vrot.slane %v6428_v26, 9  ;;  %v3123_v0 = vrot.slane %v3121_v27, 4  ;;  %4932 = vmatprep.subr.bf16.mxu0 %v5205_v57 }
 0x232   : > { %4916 = vmatprep.mubr.bf16.mxu1 %v4368_v51  ;;  %v3124_v3 = vrot.slane %v6438_v59, 5  ;;  %v3115_v44 = vsel %vm5912_vm13, %v4347_v2, %v3114_v11  ;;  %v3128_v49 = vrot.slane %v6462_v42, 5  ;;  %v4349_v31 = vrot.slane %v6459_v10, 9  ;;  %4968 = vmatpush3.bf16.msra.mxu1 %v5203_v50 }
 0x233   : > { %v3118_v58 = vsel %vm5912_vm13, %v3116_v17, %v3117_v20  ;;  %v3122_v30 = vsel %vm5912_vm13, %v4348_v39, %v3121_v27  ;;  %v3131_v22 = vrot.slane %v6468_v21, 5  ;;  %4961 = vmatprep.subr.bf16.mxu1 %v5204_v34  ;;  %v5209_v17 = vld [vmem:[#allocation10 + $0x8] sm:$0xff]   ;;  %v5210_v20 = vld [vmem:[#allocation10] sm:$0xff]  }
 0x234   : > { %v3125_v24 = vsel %vm5912_vm13, %v3123_v0, %v3124_v3  ;;  %v4371_v54 = vcombine.low %v3115_v44, %v3118_v58  ;;  %v3130_v59 = vrot.slane %v3128_v49, 4  ;;  %v3129_v28 = vsel %vm5912_vm13, %v4349_v31, %v3128_v49  ;;  %4933 = vmatpush3.bf16.msra.mxu0 %v5205_v57 }
 0x235   : > { %v4372_v26 = vcombine.low %v3122_v30, %v3125_v24  ;;  %4934 = vmatprep.subr.bf16.mxu0 %v5206_v4 }
 0x236   : > { %v3132_v42 = vsel %vm5912_vm13, %v3130_v59, %v3131_v22  ;;  %4969 = vmatpush3.bf16.msra.mxu1 %v5204_v34 }
 0x237   : > { %v4373_v32 = vcombine.low %v3129_v28, %v3132_v42  ;;  %4962 = vmatprep.subr.bf16.mxu1 %v5205_v57 }
 0x238   : > { %4935 = vmatpush3.bf16.msra.mxu0 %v5206_v4 }
 0x239   : > { %4917 = vmatmul.mubr.bf16.gmra.mxu1 %v4369_v5  ;;  %4936 = vmatprep.subr.bf16.mxu0 %v5207_v19 }
 0x23a   : > { %4920 = vmatprep.mubr.bf16.mxu1 %v4370_v35  ;;  %4970 = vmatpush3.bf16.msra.mxu1 %v5205_v57 }
 0x23b   : > { %4963 = vmatprep.subr.bf16.mxu1 %v5206_v4 }
 0x23c   : > { %4937 = vmatpush3.bf16.msra.mxu0 %v5207_v19 }
 0x23d   : > { %4938 = vmatprep.subr.bf16.mxu0 %v5208_v56 }
 0x23e   : > { %4971 = vmatpush3.bf16.msra.mxu1 %v5206_v4 }
 0x23f   : > { %4964 = vmatprep.subr.bf16.mxu1 %v5207_v19 }
 0x240   : > { %4939 = vmatpush3.bf16.msra.mxu0 %v5208_v56 }
 0x241   : > { %4921 = vmatmul.mubr.bf16.gmra.mxu1 %v4371_v54  ;;  %4940 = vmatprep.subr.bf16.mxu0 %v5209_v17 }
 0x242   : > { %4924 = vmatprep.mubr.bf16.mxu1 %v4372_v26  ;;  %4972 = vmatpush3.bf16.msra.mxu1 %v5207_v19 }
 0x243   : > { %4965 = vmatprep.subr.bf16.mxu1 %v5208_v56 }
 0x244   : > { %4941 = vmatpush3.bf16.msra.mxu0 %v5209_v17 }
 0x245   : > { %4942 = vmatprep.subr.bf16.mxu0 %v5210_v20 }
 0x246   : > { %4973 = vmatpush3.bf16.msra.mxu1 %v5208_v56 }
 0x247   : > { %4966 = vmatprep.subr.bf16.mxu1 %v5209_v17 }
 0x248   : > { %4943 = vmatpush3.bf16.msra.mxu0 %v5210_v20 }
 0x249   : > { %4925 = vmatmul.mubr.bf16.gmra.mxu1 %v4373_v32 }
 0x24a   : > { %4974 = vmatpush3.bf16.msra.mxu1 %v5209_v17 }
 0x24b   : > { %4967 = vmatprep.subr.bf16.mxu1 %v5210_v20 }
 0x24e   : > { %4975 = vmatpush3.bf16.msra.mxu1 %v5210_v20 }
 0x26a   : > { %v4556_v10 = vpop.f32.mrf.mxu1 }
 0x26b   : > { %v4850_v21 = vpop.f32.mrf.mxu0 }
 0x26c   : > { %v4557_v16 = vpop.f32.mrf.mxu1 }
 0x26d   : > { %v2435_v45 = vpop.f32.mrf.mxu0  ;;  %v4558_v15 = vadd.f32 %v4557_v16, %v4556_v10 }
 0x26e   : > { %v4559_v25 = vpop.f32.mrf.mxu1 }
 0x26f   : > { %v4851_v41 = vpop.f32.mrf.mxu0  ;;  %v6545_v62 = vadd.f32 %v4558_v15, %v2435_v45 }
 0x270   : > { %v4560_v36 = vpop.f32.mrf.mxu1 }
 0x271   : > { %v2438_v14 = vpop.f32.mrf.mxu0  ;;  %v4561_v61 = vadd.f32 %v4560_v36, %v4559_v25 }
 0x273   : > { %v6547_v47 = vadd.f32 %v4561_v61, %v2438_v14 }
 0x275   : > { %v4562_v7 = vpop.f32.mrf.mxu1 }
 0x276   : > { %v4854_v1 = vpop.f32.mrf.mxu0 }
 0x277   : > { %v4563_v13 = vpop.f32.mrf.mxu1 }
 0x278   : > { %v2451_v9 = vpop.f32.mrf.mxu0  ;;  %v4564_v55 = vadd.f32 %v4563_v13, %v4562_v7 }
 0x279   : > { %v4565_v53 = vpop.f32.mrf.mxu1 }
 0x27a   : > { %v4855_v46 = vpop.f32.mrf.mxu0  ;;  %v6549_v43 = vadd.f32 %v4850_v21, %v4564_v55 }
 0x27b   : > { %v4566_v37 = vpop.f32.mrf.mxu1 }
 0x27c   : > { %v2454_v60 = vpop.f32.mrf.mxu0  ;;  %v4567_v6 = vadd.f32 %v4566_v37, %v4565_v53 }
 0x27d   : > { %v4568_v63 = vpop.f32.mrf.mxu1 }
 0x27e   : > { %v6551_v38 = vadd.f32 %v4851_v41, %v4567_v6 }
 0x27f   : > { %v4569_v33 = vpop.f32.mrf.mxu1  ;;  %v4858_v51 = vpop.f32.mrf.mxu0 }
 0x280   : > { %v4570_v18 = vadd.f32 %v4569_v33, %v4568_v63 }
 0x281   : > { %v4571_v40 = vpop.f32.mrf.mxu1  ;;  %v2467_v23 = vpop.f32.mrf.mxu0 }
 0x282   : > { %v6553_v29 = vadd.f32 %v4570_v18, %v2451_v9 }
 0x283   : > { %v4572_v8 = vpop.f32.mrf.mxu1  ;;  %v4859_v52 = vpop.f32.mrf.mxu0 }
 0x284   : > { %v4573_v11 = vadd.f32 %v4572_v8, %v4571_v40 }
 0x285   : > { %v4574_v12 = vpop.f32.mrf.mxu1  ;;  %v2470_v48 = vpop.f32.mrf.mxu0 }
 0x286   : > { %v6555_v27 = vadd.f32 %v4573_v11, %v2454_v60 }
 0x287   : > { %v4575_v5 = vpop.f32.mrf.mxu1  ;;  %v6557_v35 = vpop.f32.mrf.mxu0 }
 0x288   : > { %v4576_v2 = vadd.f32 %v4575_v5, %v4574_v12 }
 0x289   : > { %v4577_v39 = vpop.f32.mrf.mxu1  ;;  %v2483_v0 = vpop.f32.mrf.mxu0 }
 0x28a   : > { %v6559_v3 = vadd.f32 %v4854_v1, %v4576_v2 }
 0x28b   : > { %v4578_v44 = vpop.f32.mrf.mxu1  ;;  %v4863_v58 = vpop.f32.mrf.mxu0 }
 0x28c   : > { %v4579_v49 = vadd.f32 %v4578_v44, %v4577_v39 }
 0x28d   : > { %v4580_v30 = vpop.f32.mrf.mxu1  ;;  %v2486_v24 = vpop.f32.mrf.mxu0 }
 0x28e   : > { %v6561_v54 = vadd.f32 %v4855_v46, %v4579_v49 }
 0x28f   : > { %v4581_v26 = vpop.f32.mrf.mxu1  ;;  %v6563_v31 = vpop.f32.mrf.mxu0 }
 0x290   : > { %v4582_v59 = vadd.f32 %v4581_v26, %v4580_v30 }
 0x291   : > { %v4583_v22 = vpop.f32.mrf.mxu1  ;;  %v2773_v28 = vpop.f32.mrf.mxu0 }
 0x292   : > { %v6565_v42 = vadd.f32 %v4582_v59, %v2467_v23 }
 0x293   : > { %v4584_v32 = vpop.f32.mrf.mxu1  ;;  %v6567_v50 = vpop.f32.mrf.mxu0 }
 0x294   : > { %v4585_v34 = vadd.f32 %v4584_v32, %v4583_v22 }
 0x295   : > { %v4586_v10 = vpop.f32.mrf.mxu1  ;;  %v2776_v21 = vpop.f32.mrf.mxu0 }
 0x296   : > { %v6569_v16 = vadd.f32 %v4585_v34, %v2470_v48 }
 0x297   : > { %v4587_v45 = vpop.f32.mrf.mxu1  ;;  %v6571_v15 = vpop.f32.mrf.mxu0 }
 0x298   : > { %v4588_v25 = vadd.f32 %v4587_v45, %v4586_v10 }
 0x299   : > { %v4589_v41 = vpop.f32.mrf.mxu1  ;;  %v6573_v57 = vpop.f32.mrf.mxu0 }
 0x29a   : > { %v6575_v36 = vadd.f32 %v4858_v51, %v4588_v25 }
 0x29b   : > { %v4590_v14 = vpop.f32.mrf.mxu1  ;;  %v6577_v61 = vpop.f32.mrf.mxu0 }
 0x29c   : > { %v4591_v7 = vadd.f32 %v4590_v14, %v4589_v41 }
 0x29d   : > { %v4592_v1 = vpop.f32.mrf.mxu1  ;;  %v6579_v13 = vpop.f32.mrf.mxu0 }
 0x29e   : > { %v6581_v9 = vadd.f32 %v4859_v52, %v4591_v7 }
 0x29f   : > { %v4593_v55 = vpop.f32.mrf.mxu1  ;;  %v6583_v53 = vpop.f32.mrf.mxu0 }
 0x2a0   : > { %v4594_v46 = vadd.f32 %v4593_v55, %v4592_v1 }
 0x2a1   : > { %v4595_v4 = vpop.f32.mrf.mxu1  ;;  %v6585_v37 = vpop.f32.mrf.mxu0 }
 0x2a2   : > { %v6587_v60 = vadd.f32 %v4594_v46, %v2483_v0 }
 0x2a3   : > { %v4596_v6 = vpop.f32.mrf.mxu1  ;;  %v6589_v63 = vpop.f32.mrf.mxu0 }
 0x2a4   : > { %v4597_v33 = vadd.f32 %v4596_v6, %v4595_v4 }
 0x2a5   : > { %v4598_v51 = vpop.f32.mrf.mxu1  ;;  %v6591_v18 = vpop.f32.mrf.mxu0 }
 0x2a6   : > { %v6593_v19 = vadd.f32 %v4597_v33, %v2486_v24 }
 0x2a7   : > { %v4599_v40 = vpop.f32.mrf.mxu1  ;;  %v6595_v23 = vpop.f32.mrf.mxu0 }
 0x2a8   : > { %v4600_v56 = vadd.f32 %v4599_v40, %v4598_v51 }
 0x2a9   : > { %v4601_v8 = vpop.f32.mrf.mxu1  ;;  %v6597_v52 = vpop.f32.mrf.mxu0 }
 0x2aa   : > { %v6600_v11 = vadd.f32 %v6557_v35, %v4600_v56 }
 0x2ab   : > { %v4602_v12 = vpop.f32.mrf.mxu1  ;;  %v6602_v48 = vpop.f32.mrf.mxu0 }
 0x2ac   : > { %v4603_v5 = vadd.f32 %v4602_v12, %v4601_v8 }
 0x2ad   : > { %v4636_v2 = vpop.f32.mrf.mxu1  ;;  %v6604_v17 = vpop.f32.mrf.mxu0 }
 0x2ae   : > { %v6606_v20 = vadd.f32 %v4863_v58, %v4603_v5 }
 0x2af   : > { %v4637_v39 = vpop.f32.mrf.mxu1 }
 0x2b0   : > { %v4638_v0 = vadd.f32 %v4637_v39, %v4636_v2  ;;  %v6608_v44 = vpop.f32.mrf.mxu0 }
 0x2b1   : > { %v4639_v49 = vpop.f32.mrf.mxu1 }
 0x2b2   : > { %v2677_v30 = vadd.f32 %v4638_v0, %v6545_v62  ;;  %v6611_v24 = vpop.f32.mrf.mxu0 }
 0x2b3   : > { %v4640_v35 = vpop.f32.mrf.mxu1 }
 0x2b4   : > { %v4641_v26 = vadd.f32 %v4640_v35, %v4639_v49  ;;  %v6613_v59 = vpop.f32.mrf.mxu0  ;;  %v6615_v22 = vadd.f32 %v2773_v28, %v2677_v30 }
 0x2b5   : > { %v4642_v32 = vpop.f32.mrf.mxu1 }
 0x2b6   : > { %v2680_v34 = vadd.f32 %v4641_v26, %v6547_v47  ;;  %v6618_v58 = vpop.f32.mrf.mxu0 }
 0x2b7   : > { %v4643_v10 = vpop.f32.mrf.mxu1 }
 0x2b8   : > { %v4644_v45 = vadd.f32 %v4643_v10, %v4642_v32  ;;  %v6620_v25 = vadd.f32 %v2776_v21, %v2680_v34 }
 0x2b9   : > { %v6622_v41 = vpop.f32.mrf.mxu0  ;;  %v4645_v62 = vpop.f32.mrf.mxu1 }
 0x2ba   : > { %v2685_v14 = vadd.f32 %v4644_v45, %v6549_v43 }
 0x2bb   : > { %v6625_v7 = vpop.f32.mrf.mxu0  ;;  %v4646_v1 = vpop.f32.mrf.mxu1 }
 0x2bc   : > { %v4647_v55 = vadd.f32 %v4646_v1, %v4645_v62  ;;  %v6628_v28 = vadd.f32 %v6563_v31, %v2685_v14 }
 0x2bd   : > { %v6630_v46 = vpop.f32.mrf.mxu0  ;;  %v4648_v47 = vpop.f32.mrf.mxu1 }
 0x2be   : > { %v2688_v4 = vadd.f32 %v4647_v55, %v6551_v38 }
 0x2bf   : > { %v6633_v6 = vpop.f32.mrf.mxu0  ;;  %v4649_v21 = vpop.f32.mrf.mxu1 }
 0x2c0   : > { %v4650_v33 = vadd.f32 %v4649_v21, %v4648_v47  ;;  %v6636_v51 = vadd.f32 %v6567_v50, %v2688_v4 }
 0x2c1   : > { %v6638_v43 = vpop.f32.mrf.mxu0  ;;  %v4651_v40 = vpop.f32.mrf.mxu1 }
 0x2c2   : > { %v2693_v56 = vadd.f32 %v4650_v33, %v6553_v29 }
 0x2c3   : > { %v6641_v8 = vpop.f32.mrf.mxu0  ;;  %v4652_v31 = vpop.f32.mrf.mxu1 }
 0x2c4   : > { %v4653_v12 = vadd.f32 %v4652_v31, %v4651_v40  ;;  %v6644_v5 = vadd.f32 %v6573_v57, %v2693_v56 }
 0x2c5   : > { %v6646_v38 = vpop.f32.mrf.mxu0  ;;  %v4654_v2 = vpop.f32.mrf.mxu1 }
 0x2c6   : > { %v2696_v39 = vadd.f32 %v4653_v12, %v6555_v27 }
 0x2c7   : > { %v6649_v0 = vpop.f32.mrf.mxu0  ;;  %v4655_v50 = vpop.f32.mrf.mxu1 }
 0x2c8   : > { %v4656_v49 = vadd.f32 %v4655_v50, %v4654_v2  ;;  %v6652_v30 = vadd.f32 %v6579_v13, %v2696_v39 }
 0x2c9   : > { %v4657_v29 = vpop.f32.mrf.mxu1 }
 0x2ca   : > { %v2701_v35 = vadd.f32 %v4656_v49, %v6559_v3  ;;  %v6655_v26 = vpop.f32.mrf.mxu0 }
 0x2cb   : > { %v4658_v32 = vpop.f32.mrf.mxu1 }
 0x2cc   : > { %v4659_v57 = vadd.f32 %v4658_v32, %v4657_v29  ;;  %v6658_v34 = vadd.f32 %v6571_v15, %v2701_v35  ;;  %v6660_v10 = vpop.f32.mrf.mxu0 }
 0x2ce   : > { %v2704_v27 = vadd.f32 %v4659_v57, %v6561_v54  ;;  %v6663_v45 = vpop.f32.mrf.mxu0 }
 0x2cf   : > { %v4660_v62 = vpop.f32.mrf.mxu1 }
 0x2d0   : > { %v6666_v13 = vadd.f32 %v6577_v61, %v2704_v27  ;;  %v6668_v14 = vpop.f32.mrf.mxu0 }
 0x2d1   : > { %v4661_v3 = vpop.f32.mrf.mxu1 }
 0x2d2   : > { %v4662_v1 = vadd.f32 %v4661_v3, %v4660_v62 }
 0x2d3   : > { %v6670_v55 = vpop.f32.mrf.mxu0  ;;  %v4663_v47 = vpop.f32.mrf.mxu1 }
 0x2d4   : > { %v2709_v15 = vadd.f32 %v4662_v1, %v6565_v42 }
 0x2d5   : > { %v6673_v4 = vpop.f32.mrf.mxu0  ;;  %v4664_v21 = vpop.f32.mrf.mxu1 }
 0x2d6   : > { %v4665_v33 = vadd.f32 %v4664_v21, %v4663_v47  ;;  %v6676_v54 = vadd.f32 %v6585_v37, %v2709_v15 }
 0x2d7   : > { %v6678_v40 = vpop.f32.mrf.mxu0  ;;  %v4666_v61 = vpop.f32.mrf.mxu1 }
 0x2d8   : > { %v2712_v56 = vadd.f32 %v4665_v33, %v6569_v16 }
 0x2d9   : > { %v6681_v31 = vpop.f32.mrf.mxu0  ;;  %v4667_v12 = vpop.f32.mrf.mxu1 }
 0x2da   : > { %v4668_v2 = vadd.f32 %v4667_v12, %v4666_v61  ;;  %v6684_v39 = vadd.f32 %v6591_v18, %v2712_v56 }
 0x2db   : > { %v4669_v42 = vpop.f32.mrf.mxu1 }
 0x2dc   : > { %v2717_v50 = vadd.f32 %v4668_v2, %v6575_v36 }
 0x2dd   : > { %v6687_v49 = vpop.f32.mrf.mxu0  ;;  %v4670_v29 = vpop.f32.mrf.mxu1 }
 0x2de   : > { %v4671_v37 = vadd.f32 %v4670_v29, %v4669_v42  ;;  %v6690_v35 = vadd.f32 %v6583_v53, %v2717_v50  ;;  %v4718_v50 = vadd.f32 %v6611_v24, %v6608_v44  ;;  %v6738_v24 = vld [vmem:[%s6937_s4 + $0x1] ss:$0 sm:$0xff] }
 0x2df   : > { %v6693_v16 = vpop.f32.mrf.mxu0 }
 0x2e0   : > { %v2720_v32 = vadd.f32 %v4671_v37, %v6581_v9  ;;  %v4727_v37 = vadd.f32 %v6633_v6, %v6630_v46 }
 0x2e1   : > { %v4672_v57 = vpop.f32.mrf.mxu1  ;;  %v6698_v3 = vpop.f32.mrf.mxu0 }
 0x2e2   : > { %v6696_v27 = vadd.f32 %v6589_v63, %v2720_v32 }
 0x2e3   : > { %v4673_v18 = vpop.f32.mrf.mxu1  ;;  %v6704_v21 = vpop.f32.mrf.mxu0 }
 0x2e4   : > { %v4674_v62 = vadd.f32 %v4673_v18, %v4672_v57  ;;  %v4721_v18 = vadd.f32 %v6618_v58, %v6613_v59 }
 0x2e5   : > { %v4675_v36 = vpop.f32.mrf.mxu1  ;;  %v6710_v56 = vpop.f32.mrf.mxu0 }
 0x2e6   : > { %v2725_v1 = vadd.f32 %v4674_v62, %v6587_v60  ;;  %v4724_v60 = vadd.f32 %v6625_v7, %v6622_v41 }
 0x2e7   : > { %v4676_v47 = vpop.f32.mrf.mxu1 }
 0x2e8   : > { %v4677_v15 = vadd.f32 %v4676_v47, %v4675_v36  ;;  %v6702_v53 = vadd.f32 %v6597_v52, %v2725_v1  ;;  %v6718_v52 = vpop.f32.mrf.mxu0 }
 0x2e9   : > { %v4678_v9 = vpop.f32.mrf.mxu1 }
 0x2ea   : > { %v2728_v33 = vadd.f32 %v4677_v15, %v6593_v19  ;;  %v6730_v41 = vpop.f32.mrf.mxu0 }
 0x2eb   : > { %v4679_v61 = vpop.f32.mrf.mxu1 }
 0x2ec   : > { %v6708_v63 = vadd.f32 %v6604_v17, %v2728_v33  ;;  %v6725_v17 = vld [vmem:[%s6937_s4] ss:$0 sm:$0xff]  ;;  %v6744_v47 = vpop.f32.mrf.mxu0  ;;  %v4730_v33 = vadd.f32 %v6641_v8, %v6638_v43 }
 0x2ed   : > { %v6712_v12 = vpop.f32.mrf.mxu1 }
 0x2ef   : > { %v6714_v2 = vpop.f32.mrf.mxu1 }
 0x2f1   : > { %v4914_v42 = vpop.f32.mrf.mxu1 }
 0x2f2   : > { %v3562_v19 = vadd.f32 %v4914_v42, %v4724_v60 }
 0x2f3   : > { %v3553_v29 = vpop.f32.mrf.mxu1 }
 0x2f4   : > { %v3618_v32 = vadd.f32 %v3562_v19, %v6628_v28  ;;  %v3554_v57 = vadd.f32 %v4718_v50, %v3553_v29  ;;  %v4736_v28 = vadd.f32 %v6660_v10, %v6655_v26  ;;  %v4739_v26 = vadd.f32 %v6668_v14, %v6663_v45 }
 0x2f5   : > { %v4915_v7 = vpop.f32.mrf.mxu1  ;;  %v4733_v45 = vadd.f32 %v6649_v0, %v6646_v38  ;;  %v4742_v38 = vadd.f32 %v6673_v4, %v6670_v55 }
 0x2f6   : > { %v3639_v44 = vmul.f32 %v6725_v17, %v3618_v32  ;;  %v3616_v62 = vadd.f32 %v3554_v57, %v6615_v22  ;;  %v3565_v36 = vadd.f32 %v4915_v7, %v4727_v37  ;;  %v4758_v37 = vpop.f32.mrf.mxu0 }
 0x2f7   : > { %v3556_v46 = vpop.f32.mrf.mxu1 }
 0x2f8   : > { %v3619_v6 = vadd.f32 %v3565_v36, %v6636_v51  ;;  %v3557_v1 = vadd.f32 %v4721_v18, %v3556_v46  ;;  %v3660_v59 = vadd.f32 %v6738_v24, %v3639_v44  ;;  %v3637_v58 = vmul.f32 %v6725_v17, %v3616_v62 }
 0x2f9   : > { %v4918_v15 = vpop.f32.mrf.mxu1  ;;  %v4680_v62 = vadd.f32 %v4679_v61, %v4678_v9  ;;  %v4751_v61 = vadd.f32 %v6704_v21, %v6698_v3 }
 0x2fa   : > { %v3640_v22 = vmul.f32 %v6725_v17, %v3619_v6  ;;  %v3617_v60 = vadd.f32 %v3557_v1, %v6620_v25  ;;  %v3578_v42 = vadd.f32 %v4918_v15, %v4736_v28  ;;  %v3676_v32 = vmax.f32 %v3660_v59, 0.0  ;;  %v4759_v28 = vpop.f32.mrf.mxu0 }
 0x2fb   : > { %v3569_v51 = vpop.f32.mrf.mxu1  ;;  %v3658_v43 = vadd.f32 %v6738_v24, %v3637_v58  ;;  %v2733_v4 = vadd.f32 %v4680_v62, %v6600_v11 }
 0x2fc   : > { %v3661_v10 = vadd.f32 %v6738_v24, %v3640_v22  ;;  %v3638_v50 = vmul.f32 %v6725_v17, %v3617_v60  ;;  %v3622_v19 = vadd.f32 %v3578_v42, %v6658_v34  ;;  %v3570_v29 = vadd.f32 %v4730_v33, %v3569_v51 }
 0x2fd   : > { %v4919_v57 = vpop.f32.mrf.mxu1  ;;  %v4748_v34 = vadd.f32 %v6693_v16, %v6687_v49  ;;  %v4745_v49 = vadd.f32 %v6681_v31, %v6678_v40  ;;  %v4683_v42 = vadd.f32 %v6714_v2, %v6712_v12 }
 0x2fe   : > { %v3677_v8 = vmax.f32 %v3661_v10, 0.0  ;;  %v3643_v25 = vmul.f32 %v6725_v17, %v3622_v19  ;;  %v3620_v7 = vadd.f32 %v3570_v29, %v6644_v5  ;;  %v3581_v18 = vadd.f32 %v4919_v57, %v4739_v26  ;;  %v4761_v26 = vpop.f32.mrf.mxu0 }
 0x2ff   : > { %v3572_v14 = vpop.f32.mrf.mxu1  ;;  %v3659_v44 = vadd.f32 %v6738_v24, %v3638_v50  ;;  %v3674_v5 = vmax.f32 %v3658_v43, 0.0  ;;  %v4754_v57 = vadd.f32 %v6718_v52, %v6710_v56  ;;  %v2736_v43 = vadd.f32 %v4683_v42, %v6606_v20 }
 0x300   : > { %v3691_v36 = vpack.c.bf16 %v3677_v8, %v3676_v32  ;;  %v3623_v46 = vadd.f32 %v3581_v18, %v6666_v13  ;;  %v3641_v6 = vmul.f32 %v6725_v17, %v3620_v7  ;;  %v3573_v1 = vadd.f32 %v4733_v45, %v3572_v14 }
 0x301   : > { %v4922_v59 = vpop.f32.mrf.mxu1  ;;  %v3675_v58 = vmax.f32 %v3659_v44, 0.0  ;;  %v3664_v0 = vadd.f32 %v6738_v24, %v3643_v25  ;;  %v2830_v45 = vadd.f32 %v6595_v23, %v2733_v4 }
 0x302   : > { %v3644_v15 = vmul.f32 %v6725_v17, %v3623_v46  ;;  %v3594_v33 = vadd.f32 %v4922_v59, %v4748_v34  ;;  %v3621_v13 = vadd.f32 %v3573_v1, %v6652_v30  ;;  %v3662_v31 = vadd.f32 %v6738_v24, %v3641_v6 }
 0x303   : > { %v3585_v16 = vpop.f32.mrf.mxu1  ;;  %v3690_v9 = vpack.c.bf16 %v3675_v58, %v3674_v5  ;;  %v3680_v51 = vmax.f32 %v3664_v0, 0.0  ;;  %v4757_v46 = vadd.f32 %v6744_v47, %v6730_v41 }
 0x304   : > { %v3665_v22 = vadd.f32 %v6738_v24, %v3644_v15  ;;  %v3626_v60 = vadd.f32 %v3594_v33, %v6690_v35  ;;  %v3586_v55 = vadd.f32 %v4742_v38, %v3585_v16  ;;  %v3642_v40 = vmul.f32 %v6725_v17, %v3621_v13 }
 0x305   : > { %4944 = vmatprep.mubr.bf16.mxu0 %v3690_v9  ;;  %v4923_v30 = vpop.f32.mrf.mxu1  ;;  %v4760_v35 = vadd.f32 %v4759_v28, %v4758_v37  ;;  %v3678_v25 = vmax.f32 %v3662_v31, 0.0 }
 0x306   : > { %v3681_v10 = vmax.f32 %v3665_v22, 0.0  ;;  %v3624_v3 = vadd.f32 %v3586_v55, %v6676_v54  ;;  %v3597_v21 = vadd.f32 %v4923_v30, %v4751_v61  ;;  %4945 = vmatmul.mubr.bf16.vlgmr.msra.gmra.mxu0 %v3691_v36  ;;  %v3647_v50 = vmul.f32 %v6725_v17, %v3626_v60  ;;  %v4762_v54 = vpop.f32.mrf.mxu0 }
 0x307   : > { %v3588_v11 = vpop.f32.mrf.mxu1  ;;  %v3663_v19 = vadd.f32 %v6738_v24, %v3642_v40  ;;  %v4763_v56 = vadd.f32 %v4762_v54, %v4761_v26 }
 0x308   : > { %v3693_v12 = vpack.c.bf16 %v3681_v10, %v3680_v51  ;;  %v3645_v2 = vmul.f32 %v6725_v17, %v3624_v3  ;;  %v3627_v29 = vadd.f32 %v3597_v21, %v6696_v27  ;;  %v3589_v32 = vadd.f32 %v4745_v49, %v3588_v11  ;;  %v6820_v51 = vld [vmem:[%s6939_s6 + $0x1] ss:$0 sm:$0xff] }
 0x309   : > { %v4926_v8 = vpop.f32.mrf.mxu1  ;;  %v3679_v37 = vmax.f32 %v3663_v19, 0.0  ;;  %v3668_v62 = vadd.f32 %v6738_v24, %v3647_v50  ;;  %v5219_v3 = vld [vmem:[%s5688_s11 + $0x10] sm:$0xff]   ;;  %v5220_v19 = vld [vmem:[%s5688_s11 + $0x8] sm:$0xff]  }
 0x30a   : > { %v3648_v7 = vmul.f32 %v6725_v17, %v3627_v29  ;;  %v3625_v18 = vadd.f32 %v3589_v32, %v6684_v39  ;;  %v3610_v14 = vadd.f32 %v4926_v8, %v4760_v35  ;;  %v3666_v27 = vadd.f32 %v6738_v24, %v3645_v2 }
 0x30b   : > { %v3601_v44 = vpop.f32.mrf.mxu1  ;;  %v3692_v34 = vpack.c.bf16 %v3679_v37, %v3678_v25  ;;  %v2833_v39 = vadd.f32 %v6602_v48, %v2736_v43  ;;  %v3684_v0 = vmax.f32 %v3668_v62, 0.0  ;;  %v3861_v21 = vunpack.c.l.bf16 %v5219_v3 }
 0x30c   : > { %v3646_v20 = vmul.f32 %v6725_v17, %v3625_v18  ;;  %v3630_v52 = vadd.f32 %v3610_v14, %v2830_v45  ;;  %v3602_v36 = vadd.f32 %v4754_v57, %v3601_v44  ;;  %v3669_v23 = vadd.f32 %v6738_v24, %v3648_v7 }
 0x30d   : > { %4948 = vmatprep.mubr.bf16.mxu1 %v3692_v34  ;;  %v4927_v28 = vpop.f32.mrf.mxu1  ;;  %v3682_v38 = vmax.f32 %v3666_v27, 0.0  ;;  %v3862_v2 = vunpack.c.h.bf16 %v5219_v3  ;;  %v3860_v43 = vunpack.c.h.bf16 %v5220_v19 }
 0x30e   : > { %v3651_v6 = vmul.f32 %v6725_v17, %v3630_v52  ;;  %v3628_v1 = vadd.f32 %v3602_v36, %v6702_v53  ;;  %v3613_v59 = vadd.f32 %v4927_v28, %v4763_v56  ;;  %4949 = vmatmul.mubr.bf16.vlgmr.msra.gmra.mxu1 %v3693_v12  ;;  %v3667_v5 = vadd.f32 %v6738_v24, %v3646_v20  ;;  %v5221_v20 = vld [vmem:[%s5688_s11 + $0x18] sm:$0xff]   ;;  %v5222_v36 = vld [vmem:[%s5688_s11 + $0x20] sm:$0xff]  }
 0x30f   : > { %v3604_v58 = vpop.f32.mrf.mxu1  ;;  %v3685_v15 = vmax.f32 %v3669_v23, 0.0  ;;  %v3859_v12 = vunpack.c.l.bf16 %v5220_v19  ;;  %v3863_v52 = vunpack.c.l.bf16 %v5221_v20 }
 0x310   : > { %v3649_v41 = vmul.f32 %v6725_v17, %v3628_v1  ;;  %v3631_v47 = vadd.f32 %v3613_v59, %v2833_v39  ;;  %v3605_v33 = vadd.f32 %v4757_v46, %v3604_v58  ;;  %v3683_v48 = vmax.f32 %v3667_v5, 0.0 }
 0x311   : > { %v3695_v49 = vpack.c.bf16 %v3685_v15, %v3684_v0  ;;  %v3672_v53 = vadd.f32 %v6738_v24, %v3651_v6  ;;  %v3865_v46 = vunpack.c.l.bf16 %v5222_v36  ;;  %v3866_v5 = vunpack.c.h.bf16 %v5222_v36 }
 0x312   : > { %v3652_v13 = vmul.f32 %v6725_v17, %v3631_v47  ;;  %v3629_v16 = vadd.f32 %v3605_v33, %v6708_v63  ;;  %v3694_v9 = vpack.c.bf16 %v3683_v48, %v3682_v38  ;;  %v3670_v22 = vadd.f32 %v6738_v24, %v3649_v41 }
 0x313   : > { %v3688_v4 = vmax.f32 %v3672_v53, 0.0  ;;  %v3864_v0 = vunpack.c.h.bf16 %v5221_v20 }
 0x314   : > { %v3650_v61 = vmul.f32 %v6725_v17, %v3629_v16  ;;  %4952 = vmatprep.mubr.bf16.mxu1 %v3694_v9  ;;  %v3673_v60 = vadd.f32 %v6738_v24, %v3652_v13  ;;  %v3686_v26 = vmax.f32 %v3670_v22, 0.0  ;;  %v6815_v17 = vld [vmem:[%s6939_s6] ss:$0 sm:$0xff] }
 0x316   : > { %4953 = vmatmul.mubr.bf16.gmra.mxu1 %v3695_v49  ;;  %v3671_v55 = vadd.f32 %v6738_v24, %v3650_v61  ;;  %v3689_v42 = vmax.f32 %v3673_v60, 0.0  ;;  %v5223_v61 = vld [vmem:[%s5688_s11 + $0x30] sm:$0xff]  }
 0x317   : > { %v3869_v22 = vunpack.c.l.bf16 %v5223_v61 }
 0x318   : > { %v3687_v40 = vmax.f32 %v3671_v55, 0.0  ;;  %v3697_v63 = vpack.c.bf16 %v3689_v42, %v3688_v4 }
 0x31a   : > { %v3696_v30 = vpack.c.bf16 %v3687_v40, %v3686_v26 }
 0x31c   : > { %4956 = vmatprep.mubr.bf16.mxu1 %v3696_v30 }
 0x31e   : > { %4957 = vmatmul.mubr.bf16.gmra.mxu1 %v3697_v63  ;;  %v3870_v63 = vunpack.c.h.bf16 %v5223_v61 }
 0x3c6   : > { %v4946_v31 = vpop.f32.mrf.mxu0 }
 0x3c7   : > { %v3882_v24 = vmul.f32 %v4946_v31, %v6815_v17 }
 0x3c8   : > { %v3796_v10 = vpop.f32.mrf.mxu0 }
 0x3c9   : > { %v3903_v35 = vadd.f32 %v6820_v51, %v3882_v24  ;;  %v3880_v50 = vmul.f32 %v6815_v17, %v3796_v10  ;;  %v5224_v10 = vld [vmem:[%s5688_s11 + $0x28] sm:$0xff]  }
 0x3ca   : > { %v4947_v11 = vpop.f32.mrf.mxu0  ;;  %v3867_v3 = vunpack.c.l.bf16 %v5224_v10 }
 0x3cb   : > { %v3901_v29 = vadd.f32 %v6820_v51, %v3880_v50  ;;  %v3883_v32 = vmul.f32 %v4947_v11, %v6815_v17  ;;  %v3919_v54 = vadd.f32 %v3903_v35, %v3861_v21 }
 0x3cc   : > { %v3799_v57 = vpop.f32.mrf.mxu0 }
 0x3cd   : > { %v3904_v8 = vadd.f32 %v6820_v51, %v3883_v32  ;;  %v3881_v25 = vmul.f32 %v6815_v17, %v3799_v57  ;;  %v3917_v7 = vadd.f32 %v3901_v29, %v3859_v12  ;;  %v3935_v34 = vmax.f32 %v3919_v54, 0.0  ;;  %v5225_v54 = vld [vmem:[%s5688_s11 + $0x40] sm:$0xff]  }
 0x3ce   : > { %v4950_v37 = vpop.f32.mrf.mxu1  ;;  %v3874_v20 = vunpack.c.h.bf16 %v5225_v54 }
 0x3cf   : > { %v3920_v18 = vadd.f32 %v3904_v8, %v3862_v2  ;;  %v3902_v45 = vadd.f32 %v6820_v51, %v3881_v25  ;;  %v3886_v14 = vmul.f32 %v4950_v37, %v6815_v17  ;;  %v3933_v23 = vmax.f32 %v3917_v7, 0.0 }
 0x3d0   : > { %v3812_v44 = vpop.f32.mrf.mxu1  ;;  %v3868_v2 = vunpack.c.h.bf16 %v5224_v10  ;;  %v3873_v8 = vunpack.c.l.bf16 %v5225_v54 }
 0x3d1   : > { %v3936_v27 = vmax.f32 %v3920_v18, 0.0  ;;  %v3918_v62 = vadd.f32 %v3902_v45, %v3860_v43  ;;  %v3884_v56 = vmul.f32 %v6815_v17, %v3812_v44  ;;  %v3907_v39 = vadd.f32 %v6820_v51, %v3886_v14 }
 0x3d2   : > { %v4951_v28 = vpop.f32.mrf.mxu1 }
 0x3d3   : > { %v4483_v6 = vpack.c.bf16 %v3936_v27, %v3935_v34  ;;  %v3934_v1 = vmax.f32 %v3918_v62, 0.0  ;;  %v3905_v59 = vadd.f32 %v6820_v51, %v3884_v56  ;;  %v3887_v58 = vmul.f32 %v4951_v28, %v6815_v17  ;;  %v5226_v34 = vld [vmem:[%s5688_s11 + $0x38] sm:$0xff]   ;;  %s4043_s11 = sadd.s32 %s4474_s10, %s4429_s13 }
 0x3d4   : > { %v3815_v38 = vpop.f32.mrf.mxu1  ;;  %v3923_v47 = vadd.f32 %v3907_v39, %v3865_v46  ;;  %v3871_v27 = vunpack.c.l.bf16 %v5226_v34  ;;  %s4430_s28 = sshll.u32 %s4043_s11, 6 }
 0x3d5   : > { %4515 = vst [vmem:[%s5686_s30 + $0x8] sm:$0xff] %v4483_v6   ;;  %v4478_v15 = vpack.c.bf16 %v3934_v1, %v3933_v23  ;;  %v3885_v41 = vmul.f32 %v6815_v17, %v3815_v38  ;;  %v3908_v33 = vadd.f32 %v6820_v51, %v3887_v58  ;;  %v3921_v49 = vadd.f32 %v3905_v59, %v3863_v52  ;;  %s6877_s26 = scalar_lea.hbm %s6940_s7, %s4430_s28 }
 0x3d6   : > { %v4954_v48 = vpop.f32.mrf.mxu1  ;;  %v3939_v42 = vmax.f32 %v3923_v47, 0.0  ;;  %v3872_v6 = vunpack.c.h.bf16 %v5226_v34 }
 0x3d7   : > { %4479 = vst [vmem:[%s5686_s30] sm:$0xff] %v4478_v15   ;;  %v3906_v13 = vadd.f32 %v6820_v51, %v3885_v41  ;;  %v3890_v16 = vmul.f32 %v4954_v48, %v6815_v17  ;;  %v3924_v9 = vadd.f32 %v3908_v33, %v3866_v5  ;;  %v3937_v30 = vmax.f32 %v3921_v49, 0.0 }
 0x3d8   : > { %v3828_v53 = vpop.f32.mrf.mxu1 }
 0x3d9   : > { %v3922_v60 = vadd.f32 %v3906_v13, %v3864_v0  ;;  %v3911_v55 = vadd.f32 %v6820_v51, %v3890_v16  ;;  %v3888_v4 = vmul.f32 %v6815_v17, %v3828_v53  ;;  %v3940_v26 = vmax.f32 %v3924_v9, 0.0 }
 0x3da   : > { %v4955_v40 = vpop.f32.mrf.mxu1 }
 0x3db   : > { %v3938_v31 = vmax.f32 %v3922_v60, 0.0  ;;  %v3891_v24 = vmul.f32 %v4955_v40, %v6815_v17  ;;  %v4493_v21 = vpack.c.bf16 %v3940_v26, %v3939_v42  ;;  %v3909_v35 = vadd.f32 %v6820_v51, %v3888_v4 }
 0x3dc   : > { %v3831_v50 = vpop.f32.mrf.mxu1  ;;  %v3927_v19 = vadd.f32 %v3911_v55, %v3869_v22 }
 0x3dd   : > { %v4488_v11 = vpack.c.bf16 %v3938_v31, %v3937_v30  ;;  %v3912_v12 = vadd.f32 %v6820_v51, %v3891_v24  ;;  %4517 = vst [vmem:[%s5686_s30 + $0x18] sm:$0xff] %v4493_v21   ;;  %v3889_v29 = vmul.f32 %v6815_v17, %v3831_v50  ;;  %v3925_v25 = vadd.f32 %v3909_v35, %v3867_v3 }
 0x3de   : > { %v4958_v32 = vpop.f32.mrf.mxu1  ;;  %v3943_v18 = vmax.f32 %v3927_v19, 0.0 }
 0x3df   : > { %4516 = vst [vmem:[%s5686_s30 + $0x10] sm:$0xff] %v4488_v11   ;;  %v3928_v57 = vadd.f32 %v3912_v12, %v3870_v63  ;;  %v3894_v43 = vmul.f32 %v4958_v32, %v6815_v17  ;;  %v3910_v37 = vadd.f32 %v6820_v51, %v3889_v29  ;;  %v3941_v39 = vmax.f32 %v3925_v25, 0.0 }
 0x3e0   : > { %v3844_v7 = vpop.f32.mrf.mxu1 }
 0x3e1   : > { %v3944_v45 = vmax.f32 %v3928_v57, 0.0  ;;  %v3915_v14 = vadd.f32 %v6820_v51, %v3894_v43  ;;  %v3892_v44 = vmul.f32 %v6815_v17, %v3844_v7  ;;  %v3926_v62 = vadd.f32 %v3910_v37, %v3868_v2 }
 0x3e2   : > { %v4959_v56 = vpop.f32.mrf.mxu1 }
 0x3e3   : > { %v4503_v52 = vpack.c.bf16 %v3944_v45, %v3943_v18  ;;  %v3913_v36 = vadd.f32 %v6820_v51, %v3892_v44  ;;  %v3895_v46 = vmul.f32 %v4959_v56, %v6815_v17  ;;  %v3942_v28 = vmax.f32 %v3926_v62, 0.0 }
 0x3e4   : > { %v3847_v23 = vpop.f32.mrf.mxu1  ;;  %v3931_v1 = vadd.f32 %v3915_v14, %v3873_v8 }
 0x3e5   : > { %4519 = vst [vmem:[%s5686_s30 + $0x28] sm:$0xff] %v4503_v52   ;;  %v3916_v59 = vadd.f32 %v6820_v51, %v3895_v46  ;;  %v3893_v5 = vmul.f32 %v6815_v17, %v3847_v23  ;;  %v4498_v58 = vpack.c.bf16 %v3942_v28, %v3941_v39  ;;  %v3929_v38 = vadd.f32 %v3913_v36, %v3871_v27 }
 0x3e6   : > { %v3947_v41 = vmax.f32 %v3931_v1, 0.0 }
 0x3e7   : > { %v3932_v0 = vadd.f32 %v3916_v59, %v3874_v20  ;;  %v3914_v15 = vadd.f32 %v6820_v51, %v3893_v5  ;;  %4518 = vst [vmem:[%s5686_s30 + $0x20] sm:$0xff] %v4498_v58   ;;  %v3945_v48 = vmax.f32 %v3929_v38, 0.0 }
 0x3e9   : > { %v3948_v47 = vmax.f32 %v3932_v0, 0.0  ;;  %v3930_v33 = vadd.f32 %v3914_v15, %v3872_v6 }
 0x3eb   : > { %v4513_v49 = vpack.c.bf16 %v3948_v47, %v3947_v41  ;;  %v3946_v13 = vmax.f32 %v3930_v33, 0.0 }
 0x3ed   : > { %4521 = vst [vmem:[%s5686_s30 + $0x38] sm:$0xff] %v4513_v49   ;;  %v4508_v17 = vpack.c.bf16 %v3946_v13, %v3945_v48 }
 0x3ef   : > { %4520 = vst [vmem:[%s5686_s30 + $0x30] sm:$0xff] %v4508_v17  }
 0x3f0   : > { %5371 = shalt.err (!%p5368_p12)
}
 0x3f1   : > { %s5372_s30 = scalar_lea.hbm %s6877_s26, 1024  ;;  %s5376_s3 = scalar_lea.hbm %s6940_s7, 4096 }
 0x3f2   : > { %p5373_p0 = scmp.ne.s32.totalorder %s6877_s26, %s5372_s30  ;;  %p5377_p11 = scmp.lt.s32.totalorder %s6877_s26, %s6940_s7 }
 0x3f3   : > { %p5378_p10 = scmp.lt.s32.totalorder %s5376_s3, %s5372_s30 }
 0x3f4   : > { %p5374_p1 = pnand %p5373_p0, %p5563_p3 }
 0x3f5   : > { %p5379_p7 = por %p5378_p10, %p5377_p11 }
 0x3f6   : > { %p5375_p9 = pneg %p5374_p1 }
 0x3f8   : > { %p5380_p13 = pnand %p5379_p7, %p5375_p9 }
 0x3fa   : > { %5383 = shalt.err (!%p5380_p13)
}
 0x3fb   : > { %s5469_s19 = smov 64   ;;  %s5470_s20 = smov 4  }
 0x3fc   : > { %4992 = dma.vmem_to_hbm [thread:$0]  (%p5563_p3), %s6871_s27, 1024, %s6877_s26, %s6882_s16, %s5469_s19, %s5469_s19, %s5470_s20  }
 0x3fd PF: > { %s6990_s10 = sld [smem:[#allocation27_spill]]  ;;  %p5016_p2 = scmp.ge.s32.totalorder %s5460_s8, 2 }
 0x3fe   : > { %s4061_s13 = sand.u32 1, %s5432_s24  }
 0x3ff   : > { %s4062_s11 = scalar_lea.sflag [#allocation7], %s4061_s13 }
 0x403   : > { %p6991_p5 = scmp.ne.s32.totalorder %s6990_s10, 0 }
 0x405   : > { %p5005_p4 = pnand %p5016_p2, %p6991_p5 }
 0x407   : > { %p5006_p6 = pneg %p5005_p4 }
 0x409   : > { %5427 = dma.done.wait (%p5006_p6), %s4062_s11, 1024  }
 0x40a   : > { %5429 = vsyncadd (%p5006_p6), %s4062_s11, 4294966272  ;;  %s22_s8 = sadd.s32 1, %s5460_s8   ;;  %s6992_s28 = sld [smem:[#allocation22_spill]] }
 0x40b   : > { %p19_p8 = scmp.ge.s32.totalorder %s22_s8, 6   ;;  %s6993_s26 = sld [smem:[#allocation28_spill]] }
 0x40c   : > { %s6994_s27 = sld [smem:[#allocation23_spill]]  ;;  %s6998_s24 = smov %s5436_s25 }
 0x40d   : > { %s6995_s15 = sld [smem:[#allocation24_spill]] }
 0x40e   : > { %s6996_s29 = sld [smem:[#allocation25_spill]] }
 0x40f   : > { %s6997_s30 = sld [smem:[#allocation26_spill]]  ;;  %21 = sbr.rel (!%p19_p8) target bundleno = 11 (0xb), region = 116 }
 0x410   : > { %s6999_s25 = smov %s6992_s28 }
 0x413   : > { %s7000_s28 = smov %s6995_s15 }
 0x414   :  { %4067 = vsyncpa [#allocation6], 1 }
 0x415   :  { %4069 = vsyncpa [#allocation6 + $0x1], 1 }
 0x416   :  { %4070 = vsyncpa [#allocation9], 1 }
 0x417   :  { %4071 = vsyncpa [#allocation7], 1 }
 0x418   :  { %4073 = vsyncpa [#allocation7 + $0x1], 1 }
 0x419   :  { %4074 = vsyncmov [#allocation4] }
 0x41c   :  { %s4075_s5 = vpop.sfrf %4074 }
 0x41d   :  { %p4433_p3 = scmp.ne.s32.totalorder %s4075_s5, 0 }
 0x41f   :  { %4079 = shalt.err (%p4433_p3)  }
 0x420   :  { %4081 = vsyncmov [#allocation4 + $0x1] }
 0x423   :  { %s4082_s1 = vpop.sfrf %4081 }
 0x424   :  { %p4434_p12 = scmp.ne.s32.totalorder %s4082_s1, 0 }
 0x426   :  { %4086 = shalt.err (%p4434_p12)  }

</bundles_post_ra>
